<compile_context>
chip_gen: v6e
topology: v6e:2x2x1
jax: 0.10.0
libtpu: 0.0.40
codegen_flags: <defaults>
</compile_context>

<pallas_src>
import functools

import jax
import jax.numpy as jnp
from jax import lax
from jax.experimental import pallas as pl
from jax.experimental.pallas import tpu as pltpu

_WL = 8  # interior W offset inside the padded scratch (sublane-aligned, 8 % 8 == 0)


# --------------------------------------------------------------------------
# Fused kernel: conv3x3+BN1+ReLU -> conv3x3+BN2 -> +residual -> ReLU
# --------------------------------------------------------------------------
def _fused_resblock_kernel(x_ref, w1_ref, w2_ref, s1_ref, b1_ref, s2_ref,
                           b2_ref, out_ref, xpad_sc, hpad_sc,
                           *, NB, H, W, C, compute_dtype):
    f32 = jnp.float32
    cd = compute_dtype
    M = NB * H * W

    x = x_ref[...]                                   # (NB, H, W, C) f32 (residual too)

    def write_padded(pad_ref, interior):
        """Store `interior` (NB,H,W,C) at the sublane-aligned offset and zero
        ONLY the 1-pixel halo the taps read (no full-buffer zero fill)."""
        zrow = jnp.zeros((NB, 1, W + _WL + 1, C), cd)
        pad_ref[:, 0:1, :, :] = zrow                               # top halo row
        pad_ref[:, H + 1:H + 2, :, :] = zrow                       # bottom halo row
        zcol = jnp.zeros((NB, H, 1, C), cd)
        pad_ref[:, 1:H + 1, _WL - 1:_WL, :] = zcol                 # left halo col
        pad_ref[:, 1:H + 1, _WL + W:_WL + W + 1, :] = zcol         # right halo col
        pad_ref[:, 1:H + 1, _WL:_WL + W, :] = interior             # aligned bulk store

    def conv3x3(pad_ref, w_ref):
        """3x3 / stride-1 conv read from the padded scratch.
        w_ref: (9, C, Cout) with tap index t = kh*3 + kw."""
        cout = w_ref.shape[-1]

        def tap(kh, kw):
            v = pad_ref[:, kh:kh + H, _WL - 1 + kw:_WL - 1 + kw + W, :]
            return v.reshape(M, C)                   # (M, C) compute dtype

        if C % 128 == 0:
            # Lane-aligned concat (offsets are multiples of 128) -> ONE MXU dot
            # with K = 9*C: no zero-init accumulator, no per-tap VPU adds.
            slab = jnp.concatenate(
                [tap(kh, kw) for kh in range(3) for kw in range(3)], axis=-1)
            wf = w_ref[...].reshape(9 * C, cout)
            return jnp.dot(slab, wf, preferred_element_type=f32)

        # C < 128: the lane-offset concat would be a big shuffle; do 9 short-K
        # dots from direct slices, accumulator seeded from the first dot.
        acc = jnp.dot(tap(0, 0), w_ref[0], preferred_element_type=f32)
        for t in range(1, 9):
            kh, kw = divmod(t, 3)
            acc = acc + jnp.dot(tap(kh, kw), w_ref[t],
                                preferred_element_type=f32)
        return acc                                   # (M, cout) f32

    # conv1 + folded BN1 (+ conv bias) + ReLU; intermediate never leaves VMEM.
    write_padded(xpad_sc, x.astype(cd))
    h = conv3x3(xpad_sc, w1_ref) * s1_ref[0] + b1_ref[0]           # f32 epilogue
    h = jnp.maximum(h, 0.0)

    # conv2 + folded BN2 (+ conv bias) + residual add + ReLU (f32 epilogue).
    write_padded(hpad_sc, h.reshape(NB, H, W, C).astype(cd))
    y = conv3x3(hpad_sc, w2_ref) * s2_ref[0] + b2_ref[0]
    y = y.reshape(NB, H, W, C) + x
    out_ref[...] = jnp.maximum(y, 0.0).astype(out_ref.dtype)


# --------------------------------------------------------------------------
# Wrappers
# --------------------------------------------------------------------------
def _pick_batch_block(n, hw):
    """Images per grid step: raise matmul M toward >=128 while keeping the
    parallel grid length even when possible (v7x has 2 TensorCores)."""
    nb = 1
    while nb < n and n % (2 * nb) == 0 and nb * hw < 128:
        nb *= 2
    return nb


def residual_block_forward_nhwc(x_nhwc, params, *, compute_dtype=jnp.bfloat16,
                                single_buffer_weights=False):
    """Fused forward, NHWC. MXU operands in `compute_dtype` (bf16 default),
    f32 accumulation + f32 elementwise epilogue (v5e-safe)."""
    N, H, W, C = x_nhwc.shape
    w1 = params["w1_fold"].astype(compute_dtype)     # (9, C, C) = (kh*3+kw, cin, cout)
    w2 = params["w2_fold"].astype(compute_dtype)
    assert w1.shape == (9, C, C) and w2.shape == (9, C, C), (
        "fused kernel covers the stride=1 / downsample=None (Cin == Cout) path")
    s1, b1 = params["scale1"], params["shift1"]      # (1, C) f32
    s2, b2 = params["scale2"], params["shift2"]

    NB = _pick_batch_block(N, H * W)
    assert N % NB == 0
    grid = (N // NB,)

    # Honest double-buffered VMEM footprint + 2x headroom, capped for v7x (64 MiB).
    comp_b = jnp.dtype(compute_dtype).itemsize
    n_wbuf = 1 if single_buffer_weights else 2
    x_block = NB * H * W * C * 4
    pad_buf = NB * (H + 2) * (W + _WL + 1) * C * comp_b
    w_bytes = 9 * C * C * comp_b
    slab_k = 9 * C if C % 128 == 0 else C
    temps = NB * H * W * (slab_k * comp_b + 3 * C * 4)   # im2col slab + f32 temporaries
    per_step = (2 * x_block + 2 * x_block + 2 * n_wbuf * w_bytes
                + 2 * pad_buf + temps + 4 * 2 * C * 4)
    vmem_limit = int(min(max(2 * per_step, 8 << 20), 40 << 20))

    def w_spec():
        if single_buffer_weights:
            # Block index is grid-constant -> no need for a second pipeline buffer
            # (frees ~9.4 MiB per f32 weight at C=512; important on v7x).
            return pl.BlockSpec((9, C, C), lambda n: (0, 0, 0),
                                pipeline_mode=pl.Buffered(1))
        return pl.BlockSpec((9, C, C), lambda n: (0, 0, 0))

    kern = functools.partial(_fused_resblock_kernel, NB=NB, H=H, W=W, C=C,
                             compute_dtype=compute_dtype)
    return pl.pallas_call(
        kern,
        out_shape=jax.ShapeDtypeStruct((N, H, W, C), x_nhwc.dtype),
        grid=grid,
        in_specs=[
            pl.BlockSpec((NB, H, W, C), lambda n: (n, 0, 0, 0)),   # x (+ residual)
            w_spec(),                                              # w1
            w_spec(),                                              # w2
            pl.BlockSpec((1, C), lambda n: (0, 0)),                # scale1
            pl.BlockSpec((1, C), lambda n: (0, 0)),                # shift1
            pl.BlockSpec((1, C), lambda n: (0, 0)),                # scale2
            pl.BlockSpec((1, C), lambda n: (0, 0)),                # shift2
        ],
        out_specs=pl.BlockSpec((NB, H, W, C), lambda n: (n, 0, 0, 0)),
        scratch_shapes=[
            pltpu.VMEM((NB, H + 2, W + _WL + 1, C), compute_dtype),   # padded x
            pltpu.VMEM((NB, H + 2, W + _WL + 1, C), compute_dtype),   # padded h
        ],
        compiler_params=pltpu.CompilerParams(
            dimension_semantics=("parallel",),
            vmem_limit_bytes=vmem_limit,
        ),
    )(x_nhwc, w1, w2, s1, b1, s2, b2)


def residual_block_forward(x_nchw, params, *, compute_dtype=jnp.bfloat16,
                           single_buffer_weights=False):
    """PyTorch-semantics forward. Input/output NCHW float32.

    NOTE: in a full ResNet the NCHW<->NHWC conversion belongs at the stem,
    not per residual block.
    """
    x_nhwc = jnp.transpose(x_nchw, (0, 2, 3, 1))
    y_nhwc = residual_block_forward_nhwc(
        x_nhwc, params, compute_dtype=compute_dtype,
        single_buffer_weights=single_buffer_weights)
    return jnp.transpose(y_nhwc, (0, 3, 1, 2))


# --------------------------------------------------------------------------
# Parameter setup (deterministic, PyTorch-equivalent shapes; BN2 randomized)
# --------------------------------------------------------------------------
def init_residual_block_params(key, inchannels, outchannels, eps=1e-5):
    assert inchannels == outchannels, "downsample=None path requires Cin==Cout"
    C = outchannels
    ks = jax.random.split(key, 12)
    # Conv weights in PyTorch OIHW layout (Cout, Cin, 3, 3) + default bias=True.
    w1_oihw = 0.1 * jax.random.normal(ks[0], (C, inchannels, 3, 3), jnp.float32)
    w2_oihw = 0.1 * jax.random.normal(ks[1], (C, C, 3, 3), jnp.float32)
    cb1 = 0.05 * jax.random.normal(ks[2], (C,), jnp.float32)
    cb2 = 0.05 * jax.random.normal(ks[3], (C,), jnp.float32)
    # Eval-mode BatchNorm params (both BNs randomized, per correctness review).
    gamma1 = jax.random.uniform(ks[4], (C,), minval=0.5, maxval=1.5)
    beta1 = 0.1 * jax.random.normal(ks[5], (C,))
    mean1 = 0.05 * jax.random.normal(ks[6], (C,))
    var1 = jax.random.uniform(ks[7], (C,), minval=0.5, maxval=1.5)
    gamma2 = jax.random.uniform(ks[8], (C,), minval=0.5, maxval=1.5)
    beta2 = 0.1 * jax.random.normal(ks[9], (C,))
    mean2 = 0.05 * jax.random.normal(ks[10], (C,))
    var2 = jax.random.uniform(ks[11], (C,), minval=0.5, maxval=1.5)

    def fold_bn(gamma, beta, mean, var, conv_bias):
        scale = gamma / jnp.sqrt(var + eps)
        shift = beta + (conv_bias - mean) * scale          # conv bias folded in
        return (scale.reshape(1, -1).astype(jnp.float32),
                shift.reshape(1, -1).astype(jnp.float32))

    def fold_w(w_oihw):
        # OIHW -> (kh, kw, cin, cout) -> (kh*3+kw, cin, cout)
        w = jnp.transpose(w_oihw, (2, 3, 1, 0))
        return w.reshape(9, w.shape[2], w.shape[3])

    s1, b1 = fold_bn(gamma1, beta1, mean1, var1, cb1)
    s2, b2 = fold_bn(gamma2, beta2, mean2, var2, cb2)
    return {
        "w1_oihw": w1_oihw, "w2_oihw": w2_oihw, "bias1": cb1, "bias2": cb2,
        "gamma1": gamma1, "beta1": beta1, "mean1": mean1, "var1": var1,
        "gamma2": gamma2, "beta2": beta2, "mean2": mean2, "var2": var2,
        "w1_fold": fold_w(w1_oihw), "w2_fold": fold_w(w2_oihw),
        "scale1": s1, "shift1": b1, "scale2": s2, "shift2": b2,
        "eps": eps,
    }


# --------------------------------------------------------------------------
# Pure-JAX reference (unfused BN path, validates the folding too)
# --------------------------------------------------------------------------
def residual_block_reference(x_nchw, params):
    eps = params["eps"]

    def conv(x, w, b):
        y = lax.conv_general_dilated(
            x, w, window_strides=(1, 1), padding=((1, 1), (1, 1)),
            dimension_numbers=("NCHW", "OIHW", "NCHW"))
        return y + b.reshape(1, -1, 1, 1)

    def bn(y, g, be, m, v):
        inv = (g / jnp.sqrt(v + eps)).reshape(1, -1, 1, 1)
        return (y - m.reshape(1, -1, 1, 1)) * inv + be.reshape(1, -1, 1, 1)

    h = jnp.maximum(bn(conv(x_nchw, params["w1_oihw"], params["bias1"]),
                       params["gamma1"], params["beta1"],
                       params["mean1"], params["var1"]), 0.0)
    y = bn(conv(h, params["w2_oihw"], params["bias2"]),
           params["gamma2"], params["beta2"], params["mean2"], params["var2"])
    return jnp.maximum(y + x_nchw, 0.0)


# --------------------------------------------------------------------------
if __name__ == "__main__":
    key = jax.random.PRNGKey(0)
    kx, kp, kx2, kp2 = jax.random.split(key, 4)

    # --- small-C path (C < 128 -> 9 short-K dots; demo shapes) ----------------
    N, C, H, W = 2, 4, 16, 16
    x = jax.random.normal(kx, (N, C, H, W), jnp.float32)
    params = init_residual_block_params(kp, inchannels=C, outchannels=C)
    ref = residual_block_reference(x, params)

    out_f32 = jax.block_until_ready(
        residual_block_forward(x, params, compute_dtype=jnp.float32))
    assert out_f32.shape == (N, C, H, W)
    assert jnp.allclose(out_f32, ref, atol=1e-3, rtol=1e-3), (
        f"f32 max abs err {jnp.max(jnp.abs(out_f32 - ref))}")

    out_bf16 = jax.block_until_ready(residual_block_forward(x, params))  # bf16 default
    assert jnp.allclose(out_bf16, ref, atol=5e-1, rtol=5e-2), (
        f"bf16 max abs err {jnp.max(jnp.abs(out_bf16 - ref))}")

    # --- lane-aligned path (C % 128 == 0 -> single K=9C dot; NB=2 batching) ---
    N2, C2, H2, W2 = 4, 128, 8, 8
    x2 = jax.random.normal(kx2, (N2, C2, H2, W2), jnp.float32)
    params2 = init_residual_block_params(kp2, inchannels=C2, outchannels=C2)
    ref2 = residual_block_reference(x2, params2)

    out2_f32 = jax.block_until_ready(
        residual_block_forward(x2, params2, compute_dtype=jnp.float32))
    assert jnp.allclose(out2_f32, ref2, atol=1e-3, rtol=1e-3), (
        f"f32(C=128) max abs err {jnp.max(jnp.abs(out2_f32 - ref2))}")

    out2_bf16 = jax.block_until_ready(residual_block_forward(x2, params2))
    assert jnp.allclose(out2_bf16, ref2, atol=5e-1, rtol=5e-2), (
        f"bf16(C=128) max abs err {jnp.max(jnp.abs(out2_bf16 - ref2))}")

    print("KERNEL_OK")
</pallas_src>

<mosaic_0001>
module attributes {stable_mosaic.version = 11 : i64} {
  func.func @_fused_resblock_kernel(%arg0: i32, %arg1: memref<1x16x16x4xf32, #tpu.memory_space<vmem>>, %arg2: memref<9x4x4xf32, #tpu.memory_space<vmem>>, %arg3: memref<9x4x4xf32, #tpu.memory_space<vmem>>, %arg4: memref<1x4xf32, #tpu.memory_space<vmem>>, %arg5: memref<1x4xf32, #tpu.memory_space<vmem>>, %arg6: memref<1x4xf32, #tpu.memory_space<vmem>>, %arg7: memref<1x4xf32, #tpu.memory_space<vmem>>, %arg8: memref<1x16x16x4xf32, #tpu.memory_space<vmem>>, %arg9: memref<1x18x25x4xf32, #tpu.memory_space<vmem>>, %arg10: memref<1x18x25x4xf32, #tpu.memory_space<vmem>>) attributes {dimension_semantics = [#tpu.dimension_semantics<parallel>], iteration_bounds = array<i64: 2>, scalar_prefetch = 0 : i64, scratch_operands = 2 : i64, tpu.core_type = #tpu.core_type<tc>, window_params = [{transform_indices = @transform_0, window_bounds = array<i64: 1, 16, 16, 4>}, {pipeline_mode = #tpu.pipeline_mode<synchronous>, transform_indices = @transform_1, window_bounds = array<i64: 9, 4, 4>}, {pipeline_mode = #tpu.pipeline_mode<synchronous>, transform_indices = @transform_2, window_bounds = array<i64: 9, 4, 4>}, {pipeline_mode = #tpu.pipeline_mode<synchronous>, transform_indices = @transform_3, window_bounds = array<i64: 1, 4>}, {pipeline_mode = #tpu.pipeline_mode<synchronous>, transform_indices = @transform_4, window_bounds = array<i64: 1, 4>}, {pipeline_mode = #tpu.pipeline_mode<synchronous>, transform_indices = @transform_5, window_bounds = array<i64: 1, 4>}, {pipeline_mode = #tpu.pipeline_mode<synchronous>, transform_indices = @transform_6, window_bounds = array<i64: 1, 4>}, {transform_indices = @transform_7, window_bounds = array<i64: 1, 16, 16, 4>}]} {
    %c0 = arith.constant 0 : index
    %c0_0 = arith.constant 0 : index
    %c0_1 = arith.constant 0 : index
    %c0_2 = arith.constant 0 : index
    %0 = vector.load %arg1[%c0, %c0_0, %c0_1, %c0_2] : memref<1x16x16x4xf32, #tpu.memory_space<vmem>>, vector<1x16x16x4xf32>
    %cst = arith.constant 0.000000e+00 : f32
    %1 = vector.broadcast %cst : f32 to vector<1x1x25x4xf32>
    %c0_3 = arith.constant 0 : index
    %c0_4 = arith.constant 0 : index
    %c0_5 = arith.constant 0 : index
    %c0_6 = arith.constant 0 : index
    %2 = vector.load %arg9[%c0_3, %c0_4, %c0_5, %c0_6] : memref<1x18x25x4xf32, #tpu.memory_space<vmem>>, vector<1x1x25x4xf32>
    tpu.vector_store %arg9[%c0_3, %c0_4, %c0_5, %c0_6], %1 {strides = array<i32>} : memref<1x18x25x4xf32, #tpu.memory_space<vmem>>, vector<1x1x25x4xf32>,
    %c0_7 = arith.constant 0 : index
    %c17 = arith.constant 17 : index
    %c0_8 = arith.constant 0 : index
    %c0_9 = arith.constant 0 : index
    %3 = vector.load %arg9[%c0_7, %c17, %c0_8, %c0_9] : memref<1x18x25x4xf32, #tpu.memory_space<vmem>>, vector<1x1x25x4xf32>
    tpu.vector_store %arg9[%c0_7, %c17, %c0_8, %c0_9], %1 {strides = array<i32>} : memref<1x18x25x4xf32, #tpu.memory_space<vmem>>, vector<1x1x25x4xf32>,
    %cst_10 = arith.constant 0.000000e+00 : f32
    %4 = vector.broadcast %cst_10 : f32 to vector<1x16x1x4xf32>
    %c0_11 = arith.constant 0 : index
    %c1 = arith.constant 1 : index
    %c7 = arith.constant 7 : index
    %c0_12 = arith.constant 0 : index
    %5 = vector.load %arg9[%c0_11, %c1, %c7, %c0_12] : memref<1x18x25x4xf32, #tpu.memory_space<vmem>>, vector<1x16x1x4xf32>
    tpu.vector_store %arg9[%c0_11, %c1, %c7, %c0_12], %4 {strides = array<i32>} : memref<1x18x25x4xf32, #tpu.memory_space<vmem>>, vector<1x16x1x4xf32>,
    %c0_13 = arith.constant 0 : index
    %c1_14 = arith.constant 1 : index
    %c24 = arith.constant 24 : index
    %c0_15 = arith.constant 0 : index
    %6 = vector.load %arg9[%c0_13, %c1_14, %c24, %c0_15] : memref<1x18x25x4xf32, #tpu.memory_space<vmem>>, vector<1x16x1x4xf32>
    tpu.vector_store %arg9[%c0_13, %c1_14, %c24, %c0_15], %4 {strides = array<i32>} : memref<1x18x25x4xf32, #tpu.memory_space<vmem>>, vector<1x16x1x4xf32>,
    %c0_16 = arith.constant 0 : index
    %c1_17 = arith.constant 1 : index
    %c8 = arith.constant 8 : index
    %c0_18 = arith.constant 0 : index
    %7 = vector.load %arg9[%c0_16, %c1_17, %c8, %c0_18] : memref<1x18x25x4xf32, #tpu.memory_space<vmem>>, vector<1x16x16x4xf32>
    tpu.vector_store %arg9[%c0_16, %c1_17, %c8, %c0_18], %0 {strides = array<i32>} : memref<1x18x25x4xf32, #tpu.memory_space<vmem>>, vector<1x16x16x4xf32>,
    %c0_19 = arith.constant 0 : index
    %c0_20 = arith.constant 0 : index
    %c7_21 = arith.constant 7 : index
    %c0_22 = arith.constant 0 : index
    %8 = vector.load %arg9[%c0_19, %c0_20, %c7_21, %c0_22] : memref<1x18x25x4xf32, #tpu.memory_space<vmem>>, vector<1x16x16x4xf32>
    %9 = vector.shape_cast %8 : vector<1x16x16x4xf32> to vector<256x4xf32>
    %c0_23 = arith.constant 0 : index
    %c0_24 = arith.constant 0 : index
    %c0_25 = arith.constant 0 : index
    %10 = vector.load %arg2[%c0_23, %c0_24, %c0_25] : memref<9x4x4xf32, #tpu.memory_space<vmem>>, vector<1x4x4xf32>
    %11 = vector.shape_cast %10 : vector<1x4x4xf32> to vector<4x4xf32>
    %cst_26 = arith.constant dense<0.000000e+00> : vector<256x4xf32>
    %12 = tpu.matmul %9, %11, %cst_26 {dimension_numbers = #tpu.dot_dimension_numbers<[1], [0], [0], [1], [0, 0, 1, 1], [], []>} : vector<256x4xf32>, vector<4x4xf32>, vector<256x4xf32> -> vector<256x4xf32>
    %c0_27 = arith.constant 0 : index
    %c0_28 = arith.constant 0 : index
    %c8_29 = arith.constant 8 : index
    %c0_30 = arith.constant 0 : index
    %13 = vector.load %arg9[%c0_27, %c0_28, %c8_29, %c0_30] : memref<1x18x25x4xf32, #tpu.memory_space<vmem>>, vector<1x16x16x4xf32>
    %14 = vector.shape_cast %13 : vector<1x16x16x4xf32> to vector<256x4xf32>
    %c1_31 = arith.constant 1 : index
    %c0_32 = arith.constant 0 : index
    %c0_33 = arith.constant 0 : index
    %15 = vector.load %arg2[%c1_31, %c0_32, %c0_33] : memref<9x4x4xf32, #tpu.memory_space<vmem>>, vector<1x4x4xf32>
    %16 = vector.shape_cast %15 : vector<1x4x4xf32> to vector<4x4xf32>
    %cst_34 = arith.constant dense<0.000000e+00> : vector<256x4xf32>
    %17 = tpu.matmul %14, %16, %cst_34 {dimension_numbers = #tpu.dot_dimension_numbers<[1], [0], [0], [1], [0, 0, 1, 1], [], []>} : vector<256x4xf32>, vector<4x4xf32>, vector<256x4xf32> -> vector<256x4xf32>
    %18 = arith.addf %12, %17 : vector<256x4xf32>
    %c0_35 = arith.constant 0 : index
    %c0_36 = arith.constant 0 : index
    %c9 = arith.constant 9 : index
    %c0_37 = arith.constant 0 : index
    %19 = vector.load %arg9[%c0_35, %c0_36, %c9, %c0_37] : memref<1x18x25x4xf32, #tpu.memory_space<vmem>>, vector<1x16x16x4xf32>
    %20 = vector.shape_cast %19 : vector<1x16x16x4xf32> to vector<256x4xf32>
    %c2 = arith.constant 2 : index
    %c0_38 = arith.constant 0 : index
    %c0_39 = arith.constant 0 : index
    %21 = vector.load %arg2[%c2, %c0_38, %c0_39] : memref<9x4x4xf32, #tpu.memory_space<vmem>>, vector<1x4x4xf32>
    %22 = vector.shape_cast %21 : vector<1x4x4xf32> to vector<4x4xf32>
    %cst_40 = arith.constant dense<0.000000e+00> : vector<256x4xf32>
    %23 = tpu.matmul %20, %22, %cst_40 {dimension_numbers = #tpu.dot_dimension_numbers<[1], [0], [0], [1], [0, 0, 1, 1], [], []>} : vector<256x4xf32>, vector<4x4xf32>, vector<256x4xf32> -> vector<256x4xf32>
    %24 = arith.addf %18, %23 : vector<256x4xf32>
    %c0_41 = arith.constant 0 : index
    %c1_42 = arith.constant 1 : index
    %c7_43 = arith.constant 7 : index
    %c0_44 = arith.constant 0 : index
    %25 = vector.load %arg9[%c0_41, %c1_42, %c7_43, %c0_44] : memref<1x18x25x4xf32, #tpu.memory_space<vmem>>, vector<1x16x16x4xf32>
    %26 = vector.shape_cast %25 : vector<1x16x16x4xf32> to vector<256x4xf32>
    %c3 = arith.constant 3 : index
    %c0_45 = arith.constant 0 : index
    %c0_46 = arith.constant 0 : index
    %27 = vector.load %arg2[%c3, %c0_45, %c0_46] : memref<9x4x4xf32, #tpu.memory_space<vmem>>, vector<1x4x4xf32>
    %28 = vector.shape_cast %27 : vector<1x4x4xf32> to vector<4x4xf32>
    %cst_47 = arith.constant dense<0.000000e+00> : vector<256x4xf32>
    %29 = tpu.matmul %26, %28, %cst_47 {dimension_numbers = #tpu.dot_dimension_numbers<[1], [0], [0], [1], [0, 0, 1, 1], [], []>} : vector<256x4xf32>, vector<4x4xf32>, vector<256x4xf32> -> vector<256x4xf32>
    %30 = arith.addf %24, %29 : vector<256x4xf32>
    %c0_48 = arith.constant 0 : index
    %c1_49 = arith.constant 1 : index
    %c8_50 = arith.constant 8 : index
    %c0_51 = arith.constant 0 : index
    %31 = vector.load %arg9[%c0_48, %c1_49, %c8_50, %c0_51] : memref<1x18x25x4xf32, #tpu.memory_space<vmem>>, vector<1x16x16x4xf32>
    %32 = vector.shape_cast %31 : vector<1x16x16x4xf32> to vector<256x4xf32>
    %c4 = arith.constant 4 : index
    %c0_52 = arith.constant 0 : index
    %c0_53 = arith.constant 0 : index
    %33 = vector.load %arg2[%c4, %c0_52, %c0_53] : memref<9x4x4xf32, #tpu.memory_space<vmem>>, vector<1x4x4xf32>
    %34 = vector.shape_cast %33 : vector<1x4x4xf32> to vector<4x4xf32>
    %cst_54 = arith.constant dense<0.000000e+00> : vector<256x4xf32>
    %35 = tpu.matmul %32, %34, %cst_54 {dimension_numbers = #tpu.dot_dimension_numbers<[1], [0], [0], [1], [0, 0, 1, 1], [], []>} : vector<256x4xf32>, vector<4x4xf32>, vector<256x4xf32> -> vector<256x4xf32>
    %36 = arith.addf %30, %35 : vector<256x4xf32>
    %c0_55 = arith.constant 0 : index
    %c1_56 = arith.constant 1 : index
    %c9_57 = arith.constant 9 : index
    %c0_58 = arith.constant 0 : index
    %37 = vector.load %arg9[%c0_55, %c1_56, %c9_57, %c0_58] : memref<1x18x25x4xf32, #tpu.memory_space<vmem>>, vector<1x16x16x4xf32>
    %38 = vector.shape_cast %37 : vector<1x16x16x4xf32> to vector<256x4xf32>
    %c5 = arith.constant 5 : index
    %c0_59 = arith.constant 0 : index
    %c0_60 = arith.constant 0 : index
    %39 = vector.load %arg2[%c5, %c0_59, %c0_60] : memref<9x4x4xf32, #tpu.memory_space<vmem>>, vector<1x4x4xf32>
    %40 = vector.shape_cast %39 : vector<1x4x4xf32> to vector<4x4xf32>
    %cst_61 = arith.constant dense<0.000000e+00> : vector<256x4xf32>
    %41 = tpu.matmul %38, %40, %cst_61 {dimension_numbers = #tpu.dot_dimension_numbers<[1], [0], [0], [1], [0, 0, 1, 1], [], []>} : vector<256x4xf32>, vector<4x4xf32>, vector<256x4xf32> -> vector<256x4xf32>
    %42 = arith.addf %36, %41 : vector<256x4xf32>
    %c0_62 = arith.constant 0 : index
    %c2_63 = arith.constant 2 : index
    %c7_64 = arith.constant 7 : index
    %c0_65 = arith.constant 0 : index
    %43 = vector.load %arg9[%c0_62, %c2_63, %c7_64, %c0_65] : memref<1x18x25x4xf32, #tpu.memory_space<vmem>>, vector<1x16x16x4xf32>
    %44 = vector.shape_cast %43 : vector<1x16x16x4xf32> to vector<256x4xf32>
    %c6 = arith.constant 6 : index
    %c0_66 = arith.constant 0 : index
    %c0_67 = arith.constant 0 : index
    %45 = vector.load %arg2[%c6, %c0_66, %c0_67] : memref<9x4x4xf32, #tpu.memory_space<vmem>>, vector<1x4x4xf32>
    %46 = vector.shape_cast %45 : vector<1x4x4xf32> to vector<4x4xf32>
    %cst_68 = arith.constant dense<0.000000e+00> : vector<256x4xf32>
    %47 = tpu.matmul %44, %46, %cst_68 {dimension_numbers = #tpu.dot_dimension_numbers<[1], [0], [0], [1], [0, 0, 1, 1], [], []>} : vector<256x4xf32>, vector<4x4xf32>, vector<256x4xf32> -> vector<256x4xf32>
    %48 = arith.addf %42, %47 : vector<256x4xf32>
    %c0_69 = arith.constant 0 : index
    %c2_70 = arith.constant 2 : index
    %c8_71 = arith.constant 8 : index
    %c0_72 = arith.constant 0 : index
    %49 = vector.load %arg9[%c0_69, %c2_70, %c8_71, %c0_72] : memref<1x18x25x4xf32, #tpu.memory_space<vmem>>, vector<1x16x16x4xf32>
    %50 = vector.shape_cast %49 : vector<1x16x16x4xf32> to vector<256x4xf32>
    %c7_73 = arith.constant 7 : index
    %c0_74 = arith.constant 0 : index
    %c0_75 = arith.constant 0 : index
    %51 = vector.load %arg2[%c7_73, %c0_74, %c0_75] : memref<9x4x4xf32, #tpu.memory_space<vmem>>, vector<1x4x4xf32>
    %52 = vector.shape_cast %51 : vector<1x4x4xf32> to vector<4x4xf32>
    %cst_76 = arith.constant dense<0.000000e+00> : vector<256x4xf32>
    %53 = tpu.matmul %50, %52, %cst_76 {dimension_numbers = #tpu.dot_dimension_numbers<[1], [0], [0], [1], [0, 0, 1, 1], [], []>} : vector<256x4xf32>, vector<4x4xf32>, vector<256x4xf32> -> vector<256x4xf32>
    %54 = arith.addf %48, %53 : vector<256x4xf32>
    %c0_77 = arith.constant 0 : index
    %c2_78 = arith.constant 2 : index
    %c9_79 = arith.constant 9 : index
    %c0_80 = arith.constant 0 : index
    %55 = vector.load %arg9[%c0_77, %c2_78, %c9_79, %c0_80] : memref<1x18x25x4xf32, #tpu.memory_space<vmem>>, vector<1x16x16x4xf32>
    %56 = vector.shape_cast %55 : vector<1x16x16x4xf32> to vector<256x4xf32>
    %c8_81 = arith.constant 8 : index
    %c0_82 = arith.constant 0 : index
    %c0_83 = arith.constant 0 : index
    %57 = vector.load %arg2[%c8_81, %c0_82, %c0_83] : memref<9x4x4xf32, #tpu.memory_space<vmem>>, vector<1x4x4xf32>
    %58 = vector.shape_cast %57 : vector<1x4x4xf32> to vector<4x4xf32>
    %cst_84 = arith.constant dense<0.000000e+00> : vector<256x4xf32>
    %59 = tpu.matmul %56, %58, %cst_84 {dimension_numbers = #tpu.dot_dimension_numbers<[1], [0], [0], [1], [0, 0, 1, 1], [], []>} : vector<256x4xf32>, vector<4x4xf32>, vector<256x4xf32> -> vector<256x4xf32>
    %60 = arith.addf %54, %59 : vector<256x4xf32>
    %c0_85 = arith.constant 0 : index
    %c0_86 = arith.constant 0 : index
    %61 = vector.load %arg4[%c0_85, %c0_86] : memref<1x4xf32, #tpu.memory_space<vmem>>, vector<1x4xf32>
    %62 = vector.shape_cast %61 : vector<1x4xf32> to vector<4xf32>
    %63 = vector.shape_cast %62 : vector<4xf32> to vector<1x4xf32>
    %64 = vector.broadcast %63 : vector<1x4xf32> to vector<256x4xf32>
    %65 = arith.mulf %60, %64 : vector<256x4xf32>
    %c0_87 = arith.constant 0 : index
    %c0_88 = arith.constant 0 : index
    %66 = vector.load %arg5[%c0_87, %c0_88] : memref<1x4xf32, #tpu.memory_space<vmem>>, vector<1x4xf32>
    %67 = vector.shape_cast %66 : vector<1x4xf32> to vector<4xf32>
    %68 = vector.shape_cast %67 : vector<4xf32> to vector<1x4xf32>
    %69 = vector.broadcast %68 : vector<1x4xf32> to vector<256x4xf32>
    %70 = arith.addf %65, %69 : vector<256x4xf32>
    %cst_89 = arith.constant 0.000000e+00 : f32
    %71 = vector.broadcast %cst_89 : f32 to vector<256x4xf32>
    %72 = arith.maximumf %70, %71 : vector<256x4xf32>
    %73 = vector.shape_cast %72 : vector<256x4xf32> to vector<1x16x16x4xf32>
    %cst_90 = arith.constant 0.000000e+00 : f32
    %74 = vector.broadcast %cst_90 : f32 to vector<1x1x25x4xf32>
    %c0_91 = arith.constant 0 : index
    %c0_92 = arith.constant 0 : index
    %c0_93 = arith.constant 0 : index
    %c0_94 = arith.constant 0 : index
    %75 = vector.load %arg10[%c0_91, %c0_92, %c0_93, %c0_94] : memref<1x18x25x4xf32, #tpu.memory_space<vmem>>, vector<1x1x25x4xf32>
    tpu.vector_store %arg10[%c0_91, %c0_92, %c0_93, %c0_94], %74 {strides = array<i32>} : memref<1x18x25x4xf32, #tpu.memory_space<vmem>>, vector<1x1x25x4xf32>,
    %c0_95 = arith.constant 0 : index
    %c17_96 = arith.constant 17 : index
    %c0_97 = arith.constant 0 : index
    %c0_98 = arith.constant 0 : index
    %76 = vector.load %arg10[%c0_95, %c17_96, %c0_97, %c0_98] : memref<1x18x25x4xf32, #tpu.memory_space<vmem>>, vector<1x1x25x4xf32>
    tpu.vector_store %arg10[%c0_95, %c17_96, %c0_97, %c0_98], %74 {strides = array<i32>} : memref<1x18x25x4xf32, #tpu.memory_space<vmem>>, vector<1x1x25x4xf32>,
    %cst_99 = arith.constant 0.000000e+00 : f32
    %77 = vector.broadcast %cst_99 : f32 to vector<1x16x1x4xf32>
    %c0_100 = arith.constant 0 : index
    %c1_101 = arith.constant 1 : index
    %c7_102 = arith.constant 7 : index
    %c0_103 = arith.constant 0 : index
    %78 = vector.load %arg10[%c0_100, %c1_101, %c7_102, %c0_103] : memref<1x18x25x4xf32, #tpu.memory_space<vmem>>, vector<1x16x1x4xf32>
    tpu.vector_store %arg10[%c0_100, %c1_101, %c7_102, %c0_103], %77 {strides = array<i32>} : memref<1x18x25x4xf32, #tpu.memory_space<vmem>>, vector<1x16x1x4xf32>,
    %c0_104 = arith.constant 0 : index
    %c1_105 = arith.constant 1 : index
    %c24_106 = arith.constant 24 : index
    %c0_107 = arith.constant 0 : index
    %79 = vector.load %arg10[%c0_104, %c1_105, %c24_106, %c0_107] : memref<1x18x25x4xf32, #tpu.memory_space<vmem>>, vector<1x16x1x4xf32>
    tpu.vector_store %arg10[%c0_104, %c1_105, %c24_106, %c0_107], %77 {strides = array<i32>} : memref<1x18x25x4xf32, #tpu.memory_space<vmem>>, vector<1x16x1x4xf32>,
    %c0_108 = arith.constant 0 : index
    %c1_109 = arith.constant 1 : index
    %c8_110 = arith.constant 8 : index
    %c0_111 = arith.constant 0 : index
    %80 = vector.load %arg10[%c0_108, %c1_109, %c8_110, %c0_111] : memref<1x18x25x4xf32, #tpu.memory_space<vmem>>, vector<1x16x16x4xf32>
    tpu.vector_store %arg10[%c0_108, %c1_109, %c8_110, %c0_111], %73 {strides = array<i32>} : memref<1x18x25x4xf32, #tpu.memory_space<vmem>>, vector<1x16x16x4xf32>,
    %c0_112 = arith.constant 0 : index
    %c0_113 = arith.constant 0 : index
    %c7_114 = arith.constant 7 : index
    %c0_115 = arith.constant 0 : index
    %81 = vector.load %arg10[%c0_112, %c0_113, %c7_114, %c0_115] : memref<1x18x25x4xf32, #tpu.memory_space<vmem>>, vector<1x16x16x4xf32>
    %82 = vector.shape_cast %81 : vector<1x16x16x4xf32> to vector<256x4xf32>
    %c0_116 = arith.constant 0 : index
    %c0_117 = arith.constant 0 : index
    %c0_118 = arith.constant 0 : index
    %83 = vector.load %arg3[%c0_116, %c0_117, %c0_118] : memref<9x4x4xf32, #tpu.memory_space<vmem>>, vector<1x4x4xf32>
    %84 = vector.shape_cast %83 : vector<1x4x4xf32> to vector<4x4xf32>
    %cst_119 = arith.constant dense<0.000000e+00> : vector<256x4xf32>
    %85 = tpu.matmul %82, %84, %cst_119 {dimension_numbers = #tpu.dot_dimension_numbers<[1], [0], [0], [1], [0, 0, 1, 1], [], []>} : vector<256x4xf32>, vector<4x4xf32>, vector<256x4xf32> -> vector<256x4xf32>
    %c0_120 = arith.constant 0 : index
    %c0_121 = arith.constant 0 : index
    %c8_122 = arith.constant 8 : index
    %c0_123 = arith.constant 0 : index
    %86 = vector.load %arg10[%c0_120, %c0_121, %c8_122, %c0_123] : memref<1x18x25x4xf32, #tpu.memory_space<vmem>>, vector<1x16x16x4xf32>
    %87 = vector.shape_cast %86 : vector<1x16x16x4xf32> to vector<256x4xf32>
    %c1_124 = arith.constant 1 : index
    %c0_125 = arith.constant 0 : index
    %c0_126 = arith.constant 0 : index
    %88 = vector.load %arg3[%c1_124, %c0_125, %c0_126] : memref<9x4x4xf32, #tpu.memory_space<vmem>>, vector<1x4x4xf32>
    %89 = vector.shape_cast %88 : vector<1x4x4xf32> to vector<4x4xf32>
    %cst_127 = arith.constant dense<0.000000e+00> : vector<256x4xf32>
    %90 = tpu.matmul %87, %89, %cst_127 {dimension_numbers = #tpu.dot_dimension_numbers<[1], [0], [0], [1], [0, 0, 1, 1], [], []>} : vector<256x4xf32>, vector<4x4xf32>, vector<256x4xf32> -> vector<256x4xf32>
    %91 = arith.addf %85, %90 : vector<256x4xf32>
    %c0_128 = arith.constant 0 : index
    %c0_129 = arith.constant 0 : index
    %c9_130 = arith.constant 9 : index
    %c0_131 = arith.constant 0 : index
    %92 = vector.load %arg10[%c0_128, %c0_129, %c9_130, %c0_131] : memref<1x18x25x4xf32, #tpu.memory_space<vmem>>, vector<1x16x16x4xf32>
    %93 = vector.shape_cast %92 : vector<1x16x16x4xf32> to vector<256x4xf32>
    %c2_132 = arith.constant 2 : index
    %c0_133 = arith.constant 0 : index
    %c0_134 = arith.constant 0 : index
    %94 = vector.load %arg3[%c2_132, %c0_133, %c0_134] : memref<9x4x4xf32, #tpu.memory_space<vmem>>, vector<1x4x4xf32>
    %95 = vector.shape_cast %94 : vector<1x4x4xf32> to vector<4x4xf32>
    %cst_135 = arith.constant dense<0.000000e+00> : vector<256x4xf32>
    %96 = tpu.matmul %93, %95, %cst_135 {dimension_numbers = #tpu.dot_dimension_numbers<[1], [0], [0], [1], [0, 0, 1, 1], [], []>} : vector<256x4xf32>, vector<4x4xf32>, vector<256x4xf32> -> vector<256x4xf32>
    %97 = arith.addf %91, %96 : vector<256x4xf32>
    %c0_136 = arith.constant 0 : index
    %c1_137 = arith.constant 1 : index
    %c7_138 = arith.constant 7 : index
    %c0_139 = arith.constant 0 : index
    %98 = vector.load %arg10[%c0_136, %c1_137, %c7_138, %c0_139] : memref<1x18x25x4xf32, #tpu.memory_space<vmem>>, vector<1x16x16x4xf32>
    %99 = vector.shape_cast %98 : vector<1x16x16x4xf32> to vector<256x4xf32>
    %c3_140 = arith.constant 3 : index
    %c0_141 = arith.constant 0 : index
    %c0_142 = arith.constant 0 : index
    %100 = vector.load %arg3[%c3_140, %c0_141, %c0_142] : memref<9x4x4xf32, #tpu.memory_space<vmem>>, vector<1x4x4xf32>
    %101 = vector.shape_cast %100 : vector<1x4x4xf32> to vector<4x4xf32>
    %cst_143 = arith.constant dense<0.000000e+00> : vector<256x4xf32>
    %102 = tpu.matmul %99, %101, %cst_143 {dimension_numbers = #tpu.dot_dimension_numbers<[1], [0], [0], [1], [0, 0, 1, 1], [], []>} : vector<256x4xf32>, vector<4x4xf32>, vector<256x4xf32> -> vector<256x4xf32>
    %103 = arith.addf %97, %102 : vector<256x4xf32>
    %c0_144 = arith.constant 0 : index
    %c1_145 = arith.constant 1 : index
    %c8_146 = arith.constant 8 : index
    %c0_147 = arith.constant 0 : index
    %104 = vector.load %arg10[%c0_144, %c1_145, %c8_146, %c0_147] : memref<1x18x25x4xf32, #tpu.memory_space<vmem>>, vector<1x16x16x4xf32>
    %105 = vector.shape_cast %104 : vector<1x16x16x4xf32> to vector<256x4xf32>
    %c4_148 = arith.constant 4 : index
    %c0_149 = arith.constant 0 : index
    %c0_150 = arith.constant 0 : index
    %106 = vector.load %arg3[%c4_148, %c0_149, %c0_150] : memref<9x4x4xf32, #tpu.memory_space<vmem>>, vector<1x4x4xf32>
    %107 = vector.shape_cast %106 : vector<1x4x4xf32> to vector<4x4xf32>
    %cst_151 = arith.constant dense<0.000000e+00> : vector<256x4xf32>
    %108 = tpu.matmul %105, %107, %cst_151 {dimension_numbers = #tpu.dot_dimension_numbers<[1], [0], [0], [1], [0, 0, 1, 1], [], []>} : vector<256x4xf32>, vector<4x4xf32>, vector<256x4xf32> -> vector<256x4xf32>
    %109 = arith.addf %103, %108 : vector<256x4xf32>
    %c0_152 = arith.constant 0 : index
    %c1_153 = arith.constant 1 : index
    %c9_154 = arith.constant 9 : index
    %c0_155 = arith.constant 0 : index
    %110 = vector.load %arg10[%c0_152, %c1_153, %c9_154, %c0_155] : memref<1x18x25x4xf32, #tpu.memory_space<vmem>>, vector<1x16x16x4xf32>
    %111 = vector.shape_cast %110 : vector<1x16x16x4xf32> to vector<256x4xf32>
    %c5_156 = arith.constant 5 : index
    %c0_157 = arith.constant 0 : index
    %c0_158 = arith.constant 0 : index
    %112 = vector.load %arg3[%c5_156, %c0_157, %c0_158] : memref<9x4x4xf32, #tpu.memory_space<vmem>>, vector<1x4x4xf32>
    %113 = vector.shape_cast %112 : vector<1x4x4xf32> to vector<4x4xf32>
    %cst_159 = arith.constant dense<0.000000e+00> : vector<256x4xf32>
    %114 = tpu.matmul %111, %113, %cst_159 {dimension_numbers = #tpu.dot_dimension_numbers<[1], [0], [0], [1], [0, 0, 1, 1], [], []>} : vector<256x4xf32>, vector<4x4xf32>, vector<256x4xf32> -> vector<256x4xf32>
    %115 = arith.addf %109, %114 : vector<256x4xf32>
    %c0_160 = arith.constant 0 : index
    %c2_161 = arith.constant 2 : index
    %c7_162 = arith.constant 7 : index
    %c0_163 = arith.constant 0 : index
    %116 = vector.load %arg10[%c0_160, %c2_161, %c7_162, %c0_163] : memref<1x18x25x4xf32, #tpu.memory_space<vmem>>, vector<1x16x16x4xf32>
    %117 = vector.shape_cast %116 : vector<1x16x16x4xf32> to vector<256x4xf32>
    %c6_164 = arith.constant 6 : index
    %c0_165 = arith.constant 0 : index
    %c0_166 = arith.constant 0 : index
    %118 = vector.load %arg3[%c6_164, %c0_165, %c0_166] : memref<9x4x4xf32, #tpu.memory_space<vmem>>, vector<1x4x4xf32>
    %119 = vector.shape_cast %118 : vector<1x4x4xf32> to vector<4x4xf32>
    %cst_167 = arith.constant dense<0.000000e+00> : vector<256x4xf32>
    %120 = tpu.matmul %117, %119, %cst_167 {dimension_numbers = #tpu.dot_dimension_numbers<[1], [0], [0], [1], [0, 0, 1, 1], [], []>} : vector<256x4xf32>, vector<4x4xf32>, vector<256x4xf32> -> vector<256x4xf32>
    %121 = arith.addf %115, %120 : vector<256x4xf32>
    %c0_168 = arith.constant 0 : index
    %c2_169 = arith.constant 2 : index
    %c8_170 = arith.constant 8 : index
    %c0_171 = arith.constant 0 : index
    %122 = vector.load %arg10[%c0_168, %c2_169, %c8_170, %c0_171] : memref<1x18x25x4xf32, #tpu.memory_space<vmem>>, vector<1x16x16x4xf32>
    %123 = vector.shape_cast %122 : vector<1x16x16x4xf32> to vector<256x4xf32>
    %c7_172 = arith.constant 7 : index
    %c0_173 = arith.constant 0 : index
    %c0_174 = arith.constant 0 : index
    %124 = vector.load %arg3[%c7_172, %c0_173, %c0_174] : memref<9x4x4xf32, #tpu.memory_space<vmem>>, vector<1x4x4xf32>
    %125 = vector.shape_cast %124 : vector<1x4x4xf32> to vector<4x4xf32>
    %cst_175 = arith.constant dense<0.000000e+00> : vector<256x4xf32>
    %126 = tpu.matmul %123, %125, %cst_175 {dimension_numbers = #tpu.dot_dimension_numbers<[1], [0], [0], [1], [0, 0, 1, 1], [], []>} : vector<256x4xf32>, vector<4x4xf32>, vector<256x4xf32> -> vector<256x4xf32>
    %127 = arith.addf %121, %126 : vector<256x4xf32>
    %c0_176 = arith.constant 0 : index
    %c2_177 = arith.constant 2 : index
    %c9_178 = arith.constant 9 : index
    %c0_179 = arith.constant 0 : index
    %128 = vector.load %arg10[%c0_176, %c2_177, %c9_178, %c0_179] : memref<1x18x25x4xf32, #tpu.memory_space<vmem>>, vector<1x16x16x4xf32>
    %129 = vector.shape_cast %128 : vector<1x16x16x4xf32> to vector<256x4xf32>
    %c8_180 = arith.constant 8 : index
    %c0_181 = arith.constant 0 : index
    %c0_182 = arith.constant 0 : index
    %130 = vector.load %arg3[%c8_180, %c0_181, %c0_182] : memref<9x4x4xf32, #tpu.memory_space<vmem>>, vector<1x4x4xf32>
    %131 = vector.shape_cast %130 : vector<1x4x4xf32> to vector<4x4xf32>
    %cst_183 = arith.constant dense<0.000000e+00> : vector<256x4xf32>
    %132 = tpu.matmul %129, %131, %cst_183 {dimension_numbers = #tpu.dot_dimension_numbers<[1], [0], [0], [1], [0, 0, 1, 1], [], []>} : vector<256x4xf32>, vector<4x4xf32>, vector<256x4xf32> -> vector<256x4xf32>
    %133 = arith.addf %127, %132 : vector<256x4xf32>
    %c0_184 = arith.constant 0 : index
    %c0_185 = arith.constant 0 : index
    %134 = vector.load %arg6[%c0_184, %c0_185] : memref<1x4xf32, #tpu.memory_space<vmem>>, vector<1x4xf32>
    %135 = vector.shape_cast %134 : vector<1x4xf32> to vector<4xf32>
    %136 = vector.shape_cast %135 : vector<4xf32> to vector<1x4xf32>
    %137 = vector.broadcast %136 : vector<1x4xf32> to vector<256x4xf32>
    %138 = arith.mulf %133, %137 : vector<256x4xf32>
    %c0_186 = arith.constant 0 : index
    %c0_187 = arith.constant 0 : index
    %139 = vector.load %arg7[%c0_186, %c0_187] : memref<1x4xf32, #tpu.memory_space<vmem>>, vector<1x4xf32>
    %140 = vector.shape_cast %139 : vector<1x4xf32> to vector<4xf32>
    %141 = vector.shape_cast %140 : vector<4xf32> to vector<1x4xf32>
    %142 = vector.broadcast %141 : vector<1x4xf32> to vector<256x4xf32>
    %143 = arith.addf %138, %142 : vector<256x4xf32>
    %144 = vector.shape_cast %143 : vector<256x4xf32> to vector<1x16x16x4xf32>
    %145 = arith.addf %144, %0 : vector<1x16x16x4xf32>
    %cst_188 = arith.constant 0.000000e+00 : f32
    %146 = vector.broadcast %cst_188 : f32 to vector<1x16x16x4xf32>
    %147 = arith.maximumf %145, %146 : vector<1x16x16x4xf32>
    %c0_189 = arith.constant 0 : index
    %c0_190 = arith.constant 0 : index
    %c0_191 = arith.constant 0 : index
    %c0_192 = arith.constant 0 : index
    %148 = vector.load %arg8[%c0_189, %c0_190, %c0_191, %c0_192] : memref<1x16x16x4xf32, #tpu.memory_space<vmem>>, vector<1x16x16x4xf32>
    tpu.vector_store %arg8[%c0_189, %c0_190, %c0_191, %c0_192], %147 {strides = array<i32>} : memref<1x16x16x4xf32, #tpu.memory_space<vmem>>, vector<1x16x16x4xf32>,
    return
  }
  func.func @transform_0(%arg0: i32) -> (i32, i32, i32, i32) {
    %c0_i32 = arith.constant 0 : i32
    %c0_i32_0 = arith.constant 0 : i32
    %c0_i32_1 = arith.constant 0 : i32
    %c0_i32_2 = arith.constant 0 : i32
    return %arg0, %c0_i32, %c0_i32_0, %c0_i32_1 : i32, i32, i32, i32
  }
  func.func @transform_1(%arg0: i32) -> (i32, i32, i32) {
    %c0_i32 = arith.constant 0 : i32
    %c0_i32_0 = arith.constant 0 : i32
    %c0_i32_1 = arith.constant 0 : i32
    %c0_i32_2 = arith.constant 0 : i32
    return %c0_i32, %c0_i32_0, %c0_i32_1 : i32, i32, i32
  }
  func.func @transform_2(%arg0: i32) -> (i32, i32, i32) {
    %c0_i32 = arith.constant 0 : i32
    %c0_i32_0 = arith.constant 0 : i32
    %c0_i32_1 = arith.constant 0 : i32
    %c0_i32_2 = arith.constant 0 : i32
    return %c0_i32, %c0_i32_0, %c0_i32_1 : i32, i32, i32
  }
  func.func @transform_3(%arg0: i32) -> (i32, i32) {
    %c0_i32 = arith.constant 0 : i32
    %c0_i32_0 = arith.constant 0 : i32
    %c0_i32_1 = arith.constant 0 : i32
    return %c0_i32, %c0_i32_0 : i32, i32
  }
  func.func @transform_4(%arg0: i32) -> (i32, i32) {
    %c0_i32 = arith.constant 0 : i32
    %c0_i32_0 = arith.constant 0 : i32
    %c0_i32_1 = arith.constant 0 : i32
    return %c0_i32, %c0_i32_0 : i32, i32
  }
  func.func @transform_5(%arg0: i32) -> (i32, i32) {
    %c0_i32 = arith.constant 0 : i32
    %c0_i32_0 = arith.constant 0 : i32
    %c0_i32_1 = arith.constant 0 : i32
    return %c0_i32, %c0_i32_0 : i32, i32
  }
  func.func @transform_6(%arg0: i32) -> (i32, i32) {
    %c0_i32 = arith.constant 0 : i32
    %c0_i32_0 = arith.constant 0 : i32
    %c0_i32_1 = arith.constant 0 : i32
    return %c0_i32, %c0_i32_0 : i32, i32
  }
  func.func @transform_7(%arg0: i32) -> (i32, i32, i32, i32) {
    %c0_i32 = arith.constant 0 : i32
    %c0_i32_0 = arith.constant 0 : i32
    %c0_i32_1 = arith.constant 0 : i32
    %c0_i32_2 = arith.constant 0 : i32
    return %arg0, %c0_i32, %c0_i32_0, %c0_i32_1 : i32, i32, i32, i32
  }
}

</mosaic_0001>

<bundles_post_ra>
// kernel: tpu_custom_call.1
= control target key start
LH: loop header
LB: loop body
LE: loop exit
PB: predicated region body
PF: predicated region fallthrough
CT: control target
= control target key end

     0   :  { %s9873_s24 = smov 0   ;;  %s13348_s0 = inlined_call_operand.vmem [shape: f32[2,16,16,4], index: 0, kind: input, shape index: {}]   ;;  %s13349_s1 = inlined_call_operand.vmem [shape: f32[9,4,4], index: 1, kind: input, shape index: {}]   ;;  %s13350_s2 = inlined_call_operand.vmem [shape: f32[9,4,4], index: 2, kind: input, shape index: {}]   ;;  %s13351_s3 = inlined_call_operand.vmem [shape: f32[1,4], index: 3, kind: input, shape index: {}]   ;;  %s13352_s4 = inlined_call_operand.vmem [shape: f32[1,4], index: 4, kind: input, shape index: {}]   ;;  %s13353_s5 = inlined_call_operand.vmem [shape: f32[1,4], index: 5, kind: input, shape index: {}]   ;;  %s13354_s6 = inlined_call_operand.vmem [shape: f32[1,4], index: 6, kind: input, shape index: {}]   ;;  %s13355_s7 = inlined_call_operand.vmem [shape: f32[2,16,16,4], index: 7, kind: output, shape index: {}]  }
   0x1 LB: > { %s7693_s25 = sadd.s32 4294967295, %s9830_s24   ;;  %p7697_p0 = scmp.ge.s32.totalorder %s9830_s24, 1  ;;  %s9830_s24 = sphi %s9873_s24, %s17_s24  }
   0x2   : > { %p237_p1 = scmp.lt.s32.totalorder %s9830_s24, 3 }
   0x4   : > { %p238_p2 = pnand %p7697_p0, %p237_p1 }
   0x6   : > { %241 = sbr.rel (%p238_p2) target bundleno = 1047 (0x417), region = 48 }
   0xb   : > { %v7702_v0 = vld [vmem:[%s13349_s1 + $0x4] sm:$0xf]  ;;  %vm550_vm0 = vcmask 1043456   ;;  %v419_v1 = vld [vmem:[%s13349_s1] sm:$0xf]  ;;  %vm311_vm1 = vcmask 31744  }
   0xc   : > { %8914 = vmatprep.subr.msk.mxu0 %vm550_vm0, %v7702_v0  ;;  %8964 = vmatprep.subr.msk.mxu1 %vm550_vm0, %v419_v1  ;;  %v9892_v2 = vld [vmem:[%s13349_s1 + $0x8] sm:$0xf]  ;;  %p9896_p3 = scmp.lt.s32.totalorder %s7693_s25, 1  ;;  %vm315_vm2 = vcmask 24576   ;;  %v9832_v3 = vmov 0.0  }
   0xd   : > { %8915 = vmatpush3.msk.msra.mxu0 %vm550_vm0, %v7702_v0  ;;  %313 = vst.msk [vmem:[#allocation2 + $0x8] sm:$0xff] %vm311_vm1, %v9832_v3  ;;  %312 = vst.msk [vmem:[#allocation2] sm:$0xff] %vm311_vm1, %v9832_v3  ;;  %8965 = vmatpush3.msk.msra.mxu1 %vm550_vm0, %v419_v1  ;;  %v7803_v4 = vld [vmem:[%s13349_s1 + $0xc] sm:$0xf]  ;;  %v10109_v11 = vld [vmem:[%s13349_s1 + $0x10] sm:$0xf] }
   0xe   : > { %314 = vst.msk [vmem:[#allocation2 + $0x10] sm:$0xff] %vm311_vm1, %v9832_v3  ;;  %318 = vst.msk [vmem:[#allocation2 + $0x220] sm:$0xff] %vm311_vm1, %v9832_v3  ;;  %9014 = vmatprep.subr.msk.mxu0 %vm550_vm0, %v9892_v2  ;;  %s13944_s25 = smov (!%p9896_p3, %s7693_s25), 1  ;;  %9064 = vmatprep.subr.msk.mxu1 %vm550_vm0, %v7803_v4 }
   0xf   : > { %319 = vst.msk [vmem:[#allocation2 + $0x228] sm:$0xff] %vm311_vm1, %v9832_v3  ;;  %320 = vst.msk [vmem:[#allocation2 + $0x230] sm:$0xff] %vm311_vm1, %v9832_v3  ;;  %s8318_s12 = sshll.u32 %s13944_s25, 8 }
  0x10   : > { %3944 = vst.msk [vmem:[#allocation3] sm:$0xff] %vm311_vm1, %v9832_v3  ;;  %3945 = vst.msk [vmem:[#allocation3 + $0x8] sm:$0xff] %vm311_vm1, %v9832_v3  ;;  %s10080_s15 = scalar_lea.vmem %s13348_s0, %s8318_s12  ;;  %s13085_s16 = scalar_lea.vmem %s13355_s7, %s8318_s12 }
  0x11   : > { %3946 = vst.msk [vmem:[#allocation3 + $0x10] sm:$0xff] %vm311_vm1, %v9832_v3  ;;  %3949 = vst.msk [vmem:[#allocation3 + $0x220] sm:$0xff] %vm311_vm1, %v9832_v3  ;;  %v10083_v5 = vld [vmem:[%s10080_s15] sm:$0xff]  ;;  %v10086_v6 = vld [vmem:[%s10080_s15 + $0x8] sm:$0xff] }
  0x12   : > { %3950 = vst.msk [vmem:[#allocation3 + $0x228] sm:$0xff] %vm311_vm1, %v9832_v3  ;;  %3951 = vst.msk [vmem:[#allocation3 + $0x230] sm:$0xff] %vm311_vm1, %v9832_v3  ;;  %v10089_v7 = vld [vmem:[%s10080_s15 + $0x10] sm:$0xff]  ;;  %v10098_v8 = vld [vmem:[%s10080_s15 + $0x18] sm:$0xff] }
  0x13   : > { %323 = vst.msk [vmem:[#allocation2 + $0x27] sm:$0x1] %vm315_vm2, %v9832_v3  ;;  %316 = vst.msk [vmem:[#allocation2 + $0x18] sm:$0x1] %vm315_vm2, %v9832_v3  ;;  %v10101_v9 = vld [vmem:[%s10080_s15 + $0x20] sm:$0xff]  ;;  %v10104_v10 = vld [vmem:[%s10080_s15 + $0x28] sm:$0xff] }
  0x14   : > { %321 = vst.msk [vmem:[#allocation2 + $0x238] sm:$0x1] %vm315_vm2, %v9832_v3  ;;  %324 = vst.msk [vmem:[#allocation2 + $0x47] sm:$0x1] %vm315_vm2, %v9832_v3  ;;  %v420_v12 = vld [vmem:[#allocation2 + $0x8] sm:$0xff]  ;;  %v10120_v16 = vld [vmem:[%s10080_s15 + $0x30] sm:$0xff] }
  0x15   : > { %325 = vst.msk [vmem:[#allocation2 + $0x67] sm:$0x1] %vm315_vm2, %v9832_v3  ;;  %326 = vst.msk [vmem:[#allocation2 + $0x87] sm:$0x1] %vm315_vm2, %v9832_v3  ;;  %v387_v13 = vld [vmem:[#allocation2 + $0x7] sm:$0xff]  ;;  %v421_v14 = vld [vmem:[#allocation2 + $0x10] sm:$0xff]  ;;  %8916 = vmatprep.mubr.msk.f32.mxu0 %vm311_vm1, %v420_v12 }
  0x16   : > { %327 = vst.msk [vmem:[#allocation2 + $0xa7] sm:$0x1] %vm315_vm2, %v9832_v3  ;;  %328 = vst.msk [vmem:[#allocation2 + $0xc7] sm:$0x1] %vm315_vm2, %v9832_v3  ;;  %8966 = vmatprep.mubr.msk.f32.mxu1 %vm311_vm1, %v387_v13  ;;  %v388_v15 = vld [vmem:[#allocation2 + $0xf] sm:$0xff]  ;;  %v10123_v17 = vld [vmem:[%s10080_s15 + $0x38] sm:$0xff]  ;;  %8917 = vmatmul.mubr.msk.f32.vlgmr.msra.gmra.mxu0 %vm311_vm1, %v421_v14 }
  0x17   : > { %329 = vst.msk [vmem:[#allocation2 + $0xe7] sm:$0x1] %vm315_vm2, %v9832_v3  ;;  %330 = vst.msk [vmem:[#allocation2 + $0x107] sm:$0x1] %vm315_vm2, %v9832_v3  ;;  %8967 = vmatmul.mubr.msk.f32.vlgmr.msra.gmra.mxu1 %vm311_vm1, %v388_v15  ;;  %v10132_v18 = vld [vmem:[%s10080_s15 + $0x40] sm:$0xff]  ;;  %v10135_v19 = vld [vmem:[%s10080_s15 + $0x48] sm:$0xff]  ;;  %9015 = vmatpush3.msk.msra.mxu0 %vm550_vm0, %v9892_v2 }
  0x18   : > { %331 = vst.msk [vmem:[#allocation2 + $0x127] sm:$0x1] %vm315_vm2, %v9832_v3  ;;  %332 = vst.msk [vmem:[#allocation2 + $0x147] sm:$0x1] %vm315_vm2, %v9832_v3  ;;  %v10138_v20 = vld [vmem:[%s10080_s15 + $0x50] sm:$0xff]  ;;  %v10149_v21 = vld [vmem:[%s10080_s15 + $0x58] sm:$0xff]  ;;  %9065 = vmatpush3.msk.msra.mxu1 %vm550_vm0, %v7803_v4  ;;  %9114 = vmatprep.subr.msk.mxu0 %vm550_vm0, %v10109_v11 }
  0x19   : > { %333 = vst.msk [vmem:[#allocation2 + $0x167] sm:$0x1] %vm315_vm2, %v9832_v3  ;;  %334 = vst.msk [vmem:[#allocation2 + $0x187] sm:$0x1] %vm315_vm2, %v9832_v3  ;;  %v10152_v22 = vld [vmem:[%s10080_s15 + $0x60] sm:$0xff]  ;;  %v10155_v23 = vld [vmem:[%s10080_s15 + $0x68] sm:$0xff] }
  0x1a   : > { %335 = vst.msk [vmem:[#allocation2 + $0x1a7] sm:$0x1] %vm315_vm2, %v9832_v3  ;;  %336 = vst.msk [vmem:[#allocation2 + $0x1c7] sm:$0x1] %vm315_vm2, %v9832_v3  ;;  %v10165_v24 = vld [vmem:[%s10080_s15 + $0x70] sm:$0xff]  ;;  %v10168_v25 = vld [vmem:[%s10080_s15 + $0x78] sm:$0xff] }
  0x1b   : > { %337 = vst.msk [vmem:[#allocation2 + $0x1e7] sm:$0x1] %vm315_vm2, %v9832_v3  ;;  %338 = vst.msk [vmem:[#allocation2 + $0x207] sm:$0x1] %vm315_vm2, %v9832_v3  ;;  %v10171_v26 = vld [vmem:[%s10080_s15 + $0x80] sm:$0xff]  ;;  %v10182_v27 = vld [vmem:[%s10080_s15 + $0x88] sm:$0xff] }
  0x1c   : > { %339 = vst.msk [vmem:[#allocation2 + $0x38] sm:$0x1] %vm315_vm2, %v9832_v3  ;;  %340 = vst.msk [vmem:[#allocation2 + $0x58] sm:$0x1] %vm315_vm2, %v9832_v3  ;;  %v10185_v28 = vld [vmem:[%s10080_s15 + $0x90] sm:$0xff]  ;;  %v10188_v29 = vld [vmem:[%s10080_s15 + $0x98] sm:$0xff] }
  0x1d   : > { %341 = vst.msk [vmem:[#allocation2 + $0x78] sm:$0x1] %vm315_vm2, %v9832_v3  ;;  %342 = vst.msk [vmem:[#allocation2 + $0x98] sm:$0x1] %vm315_vm2, %v9832_v3  ;;  %v10265_v50 = vld [vmem:[%s10080_s15 + $0xa0] sm:$0xff]  ;;  %v10268_v51 = vld [vmem:[%s10080_s15 + $0xa8] sm:$0xff] }
  0x1e   : > { %343 = vst.msk [vmem:[#allocation2 + $0xb8] sm:$0x1] %vm315_vm2, %v9832_v3  ;;  %344 = vst.msk [vmem:[#allocation2 + $0xd8] sm:$0x1] %vm315_vm2, %v9832_v3  ;;  %v10281_v53 = vld [vmem:[%s10080_s15 + $0xb0] sm:$0xff]  ;;  %v10284_v54 = vld [vmem:[%s10080_s15 + $0xb8] sm:$0xff] }
  0x1f   : > { %345 = vst.msk [vmem:[#allocation2 + $0xf8] sm:$0x1] %vm315_vm2, %v9832_v3  ;;  %346 = vst.msk [vmem:[#allocation2 + $0x118] sm:$0x1] %vm315_vm2, %v9832_v3  ;;  %v10287_v55 = vld [vmem:[%s10080_s15 + $0xc0] sm:$0xff]  ;;  %v10300_v56 = vld [vmem:[%s10080_s15 + $0xc8] sm:$0xff] }
  0x20   : > { %347 = vst.msk [vmem:[#allocation2 + $0x138] sm:$0x1] %vm315_vm2, %v9832_v3  ;;  %348 = vst.msk [vmem:[#allocation2 + $0x158] sm:$0x1] %vm315_vm2, %v9832_v3  ;;  %v10303_v57 = vld [vmem:[%s10080_s15 + $0xd0] sm:$0xff]  ;;  %v10306_v58 = vld [vmem:[%s10080_s15 + $0xd8] sm:$0xff] }
  0x21   : > { %349 = vst.msk [vmem:[#allocation2 + $0x178] sm:$0x1] %vm315_vm2, %v9832_v3  ;;  %350 = vst.msk [vmem:[#allocation2 + $0x198] sm:$0x1] %vm315_vm2, %v9832_v3  ;;  %v10317_v60 = vld [vmem:[%s10080_s15 + $0xe0] sm:$0xff]  ;;  %v10320_v61 = vld [vmem:[%s10080_s15 + $0xe8] sm:$0xff] }
  0x22   : > { %351 = vst.msk [vmem:[#allocation2 + $0x1b8] sm:$0x1] %vm315_vm2, %v9832_v3  ;;  %352 = vst.msk [vmem:[#allocation2 + $0x1d8] sm:$0x1] %vm315_vm2, %v9832_v3 }
  0x23   : > { %353 = vst.msk [vmem:[#allocation2 + $0x1f8] sm:$0x1] %vm315_vm2, %v9832_v3  ;;  %354 = vst.msk [vmem:[#allocation2 + $0x218] sm:$0x1] %vm315_vm2, %v9832_v3 }
  0x24   : > { %3947 = vst.msk [vmem:[#allocation3 + $0x18] sm:$0x1] %vm315_vm2, %v9832_v3  ;;  %3952 = vst.msk [vmem:[#allocation3 + $0x238] sm:$0x1] %vm315_vm2, %v9832_v3 }
  0x25   : > { %3954 = vst.msk [vmem:[#allocation3 + $0x27] sm:$0x1] %vm315_vm2, %v9832_v3  ;;  %3955 = vst.msk [vmem:[#allocation3 + $0x47] sm:$0x1] %vm315_vm2, %v9832_v3 }
  0x26   : > { %3956 = vst.msk [vmem:[#allocation3 + $0x67] sm:$0x1] %vm315_vm2, %v9832_v3  ;;  %3957 = vst.msk [vmem:[#allocation3 + $0x87] sm:$0x1] %vm315_vm2, %v9832_v3 }
  0x27   : > { %3958 = vst.msk [vmem:[#allocation3 + $0xa7] sm:$0x1] %vm315_vm2, %v9832_v3  ;;  %3959 = vst.msk [vmem:[#allocation3 + $0xc7] sm:$0x1] %vm315_vm2, %v9832_v3 }
  0x28   : > { %3960 = vst.msk [vmem:[#allocation3 + $0xe7] sm:$0x1] %vm315_vm2, %v9832_v3  ;;  %3961 = vst.msk [vmem:[#allocation3 + $0x107] sm:$0x1] %vm315_vm2, %v9832_v3 }
  0x29   : > { %3962 = vst.msk [vmem:[#allocation3 + $0x127] sm:$0x1] %vm315_vm2, %v9832_v3  ;;  %3963 = vst.msk [vmem:[#allocation3 + $0x147] sm:$0x1] %vm315_vm2, %v9832_v3 }
  0x2a   : > { %3964 = vst.msk [vmem:[#allocation3 + $0x167] sm:$0x1] %vm315_vm2, %v9832_v3  ;;  %3965 = vst.msk [vmem:[#allocation3 + $0x187] sm:$0x1] %vm315_vm2, %v9832_v3 }
  0x2b   : > { %3966 = vst.msk [vmem:[#allocation3 + $0x1a7] sm:$0x1] %vm315_vm2, %v9832_v3  ;;  %3967 = vst.msk [vmem:[#allocation3 + $0x1c7] sm:$0x1] %vm315_vm2, %v9832_v3 }
  0x2c   : > { %3968 = vst.msk [vmem:[#allocation3 + $0x1e7] sm:$0x1] %vm315_vm2, %v9832_v3  ;;  %3969 = vst.msk [vmem:[#allocation3 + $0x207] sm:$0x1] %vm315_vm2, %v9832_v3 }
  0x2d   : > { %3970 = vst.msk [vmem:[#allocation3 + $0x38] sm:$0x1] %vm315_vm2, %v9832_v3  ;;  %3971 = vst.msk [vmem:[#allocation3 + $0x58] sm:$0x1] %vm315_vm2, %v9832_v3 }
  0x2e   : > { %3972 = vst.msk [vmem:[#allocation3 + $0x78] sm:$0x1] %vm315_vm2, %v9832_v3  ;;  %3973 = vst.msk [vmem:[#allocation3 + $0x98] sm:$0x1] %vm315_vm2, %v9832_v3 }
  0x2f   : > { %3974 = vst.msk [vmem:[#allocation3 + $0xb8] sm:$0x1] %vm315_vm2, %v9832_v3  ;;  %3975 = vst.msk [vmem:[#allocation3 + $0xd8] sm:$0x1] %vm315_vm2, %v9832_v3 }
  0x30   : > { %3976 = vst.msk [vmem:[#allocation3 + $0xf8] sm:$0x1] %vm315_vm2, %v9832_v3  ;;  %3977 = vst.msk [vmem:[#allocation3 + $0x118] sm:$0x1] %vm315_vm2, %v9832_v3 }
  0x31   : > { %3978 = vst.msk [vmem:[#allocation3 + $0x138] sm:$0x1] %vm315_vm2, %v9832_v3  ;;  %3979 = vst.msk [vmem:[#allocation3 + $0x158] sm:$0x1] %vm315_vm2, %v9832_v3 }
  0x32   : > { %3980 = vst.msk [vmem:[#allocation3 + $0x178] sm:$0x1] %vm315_vm2, %v9832_v3  ;;  %3981 = vst.msk [vmem:[#allocation3 + $0x198] sm:$0x1] %vm315_vm2, %v9832_v3 }
  0x33   : > { %3982 = vst.msk [vmem:[#allocation3 + $0x1b8] sm:$0x1] %vm315_vm2, %v9832_v3  ;;  %3983 = vst.msk [vmem:[#allocation3 + $0x1d8] sm:$0x1] %vm315_vm2, %v9832_v3 }
  0x34   : > { %3984 = vst.msk [vmem:[#allocation3 + $0x1f8] sm:$0x1] %vm315_vm2, %v9832_v3  ;;  %3985 = vst.msk [vmem:[#allocation3 + $0x218] sm:$0x1] %vm315_vm2, %v9832_v3 }
  0x35   : > { %13453 = vst [vmem:[#allocation4_spill] sm:$0xff] %v10083_v5  ;;  %13454 = vst [vmem:[#allocation5_spill] sm:$0xff] %v10086_v6 }
  0x36   : > { %13455 = vst [vmem:[#allocation6_spill] sm:$0xff] %v10089_v7  ;;  %355 = vst.msk [vmem:[#allocation2 + $0x28] sm:$0xff] %vm311_vm1, %v10083_v5  ;;  %v1103_v5 = vld [vmem:[#allocation2 + $0x9] sm:$0xff] }
  0x37   : > { %356 = vst.msk [vmem:[#allocation2 + $0x30] sm:$0xff] %vm311_vm1, %v10086_v6  ;;  %357 = vst.msk [vmem:[#allocation2 + $0x48] sm:$0xff] %vm311_vm1, %v10089_v7  ;;  %v1104_v6 = vld [vmem:[#allocation2 + $0x11] sm:$0xff] }
  0x38   : > { %13456 = vst [vmem:[#allocation7_spill] sm:$0xff] %v10098_v8  ;;  %13457 = vst [vmem:[#allocation8_spill] sm:$0xff] %v10101_v9 }
  0x39   : > { %13458 = vst [vmem:[#allocation9_spill] sm:$0xff] %v10104_v10  ;;  %358 = vst.msk [vmem:[#allocation2 + $0x50] sm:$0xff] %vm311_vm1, %v10098_v8 }
  0x3a   : > { %359 = vst.msk [vmem:[#allocation2 + $0x68] sm:$0xff] %vm311_vm1, %v10101_v9  ;;  %360 = vst.msk [vmem:[#allocation2 + $0x70] sm:$0xff] %vm311_vm1, %v10104_v10 }
  0x3b   : > { %13459 = vst [vmem:[#allocation10_spill] sm:$0xff] %v10120_v16  ;;  %13460 = vst [vmem:[#allocation11_spill] sm:$0xff] %v10123_v17 }
  0x3c   : > { %361 = vst.msk [vmem:[#allocation2 + $0x88] sm:$0xff] %vm311_vm1, %v10120_v16  ;;  %362 = vst.msk [vmem:[#allocation2 + $0x90] sm:$0xff] %vm311_vm1, %v10123_v17 }
  0x3d   : > { %13461 = vst [vmem:[#allocation12_spill] sm:$0xff] %v10132_v18  ;;  %13462 = vst [vmem:[#allocation13_spill] sm:$0xff] %v10135_v19  ;;  %v10190_v30 = vld [vmem:[#allocation2 + $0x28] sm:$0xff] }
  0x3e   : > { %13463 = vst [vmem:[#allocation14_spill] sm:$0xff] %v10138_v20  ;;  %363 = vst.msk [vmem:[#allocation2 + $0xa8] sm:$0xff] %vm311_vm1, %v10132_v18  ;;  %v10192_v31 = vld [vmem:[#allocation2 + $0x27] sm:$0xff]  ;;  %v10194_v32 = vld [vmem:[#allocation2 + $0x30] sm:$0xff]  ;;  %8919 = vmatprep.mubr.msk.f32.mxu0 %vm311_vm1, %v10190_v30 }
  0x3f   : > { %364 = vst.msk [vmem:[#allocation2 + $0xb0] sm:$0xff] %vm311_vm1, %v10135_v19  ;;  %365 = vst.msk [vmem:[#allocation2 + $0xc8] sm:$0xff] %vm311_vm1, %v10138_v20  ;;  %8969 = vmatprep.mubr.msk.f32.mxu1 %vm311_vm1, %v10192_v31  ;;  %v10206_v33 = vld [vmem:[#allocation2 + $0x2f] sm:$0xff]  ;;  %v10210_v35 = vld [vmem:[#allocation2 + $0x47] sm:$0xff]  ;;  %8920 = vmatmul.mubr.msk.f32.gmra.mxu0 %vm311_vm1, %v10194_v32 }
  0x40   : > { %13464 = vst [vmem:[#allocation15_spill] sm:$0xff] %v10149_v21  ;;  %13465 = vst [vmem:[#allocation16_spill] sm:$0xff] %v10152_v22  ;;  %v10208_v34 = vld [vmem:[#allocation2 + $0x48] sm:$0xff]  ;;  %8970 = vmatmul.mubr.msk.f32.gmra.mxu1 %vm311_vm1, %v10206_v33  ;;  %v10220_v36 = vld [vmem:[#allocation2 + $0x50] sm:$0xff] }
  0x41   : > { %13466 = vst [vmem:[#allocation17_spill] sm:$0xff] %v10155_v23  ;;  %366 = vst.msk [vmem:[#allocation2 + $0xd0] sm:$0xff] %vm311_vm1, %v10149_v21  ;;  %8922 = vmatprep.mubr.msk.f32.mxu0 %vm311_vm1, %v10208_v34  ;;  %8972 = vmatprep.mubr.msk.f32.mxu1 %vm311_vm1, %v10210_v35  ;;  %v10222_v37 = vld [vmem:[#allocation2 + $0x4f] sm:$0xff]  ;;  %v10226_v39 = vld [vmem:[#allocation2 + $0x67] sm:$0xff] }
  0x42   : > { %367 = vst.msk [vmem:[#allocation2 + $0xe8] sm:$0xff] %vm311_vm1, %v10152_v22  ;;  %368 = vst.msk [vmem:[#allocation2 + $0xf0] sm:$0xff] %vm311_vm1, %v10155_v23  ;;  %v10224_v38 = vld [vmem:[#allocation2 + $0x68] sm:$0xff]  ;;  %v10236_v40 = vld [vmem:[#allocation2 + $0x70] sm:$0xff] }
  0x43   : > { %13467 = vst [vmem:[#allocation18_spill] sm:$0xff] %v10165_v24  ;;  %13468 = vst [vmem:[#allocation19_spill] sm:$0xff] %v10168_v25  ;;  %8923 = vmatmul.mubr.msk.f32.gmra.mxu0 %vm311_vm1, %v10220_v36  ;;  %v10238_v41 = vld [vmem:[#allocation2 + $0x6f] sm:$0xff]  ;;  %v10242_v43 = vld [vmem:[#allocation2 + $0x87] sm:$0xff] }
  0x44   : > { %13469 = vst [vmem:[#allocation20_spill] sm:$0xff] %v10171_v26  ;;  %369 = vst.msk [vmem:[#allocation2 + $0x108] sm:$0xff] %vm311_vm1, %v10165_v24  ;;  %8973 = vmatmul.mubr.msk.f32.gmra.mxu1 %vm311_vm1, %v10222_v37  ;;  %8925 = vmatprep.mubr.msk.f32.mxu0 %vm311_vm1, %v10224_v38  ;;  %v10240_v42 = vld [vmem:[#allocation2 + $0x88] sm:$0xff]  ;;  %v10252_v44 = vld [vmem:[#allocation2 + $0x90] sm:$0xff] }
  0x45   : > { %370 = vst.msk [vmem:[#allocation2 + $0x110] sm:$0xff] %vm311_vm1, %v10168_v25  ;;  %371 = vst.msk [vmem:[#allocation2 + $0x128] sm:$0xff] %vm311_vm1, %v10171_v26  ;;  %8975 = vmatprep.mubr.msk.f32.mxu1 %vm311_vm1, %v10226_v39  ;;  %v10254_v45 = vld [vmem:[#allocation2 + $0x8f] sm:$0xff]  ;;  %v10258_v47 = vld [vmem:[#allocation2 + $0xa7] sm:$0xff] }
  0x46   : > { %13470 = vst [vmem:[#allocation21_spill] sm:$0xff] %v10182_v27  ;;  %13471 = vst [vmem:[#allocation22_spill] sm:$0xff] %v10185_v28  ;;  %v10256_v46 = vld [vmem:[#allocation2 + $0xa8] sm:$0xff]  ;;  %v10260_v48 = vld [vmem:[#allocation2 + $0xb0] sm:$0xff] }
  0x47   : > { %13472 = vst [vmem:[#allocation23_spill] sm:$0xff] %v10188_v29  ;;  %372 = vst.msk [vmem:[#allocation2 + $0x130] sm:$0xff] %vm311_vm1, %v10182_v27  ;;  %8926 = vmatmul.mubr.msk.f32.gmra.mxu0 %vm311_vm1, %v10236_v40  ;;  %v10262_v49 = vld [vmem:[#allocation2 + $0xaf] sm:$0xff]  ;;  %v10308_v59 = vld [vmem:[#allocation2 + $0xc7] sm:$0xff] }
  0x48   : > { %373 = vst.msk [vmem:[#allocation2 + $0x148] sm:$0xff] %vm311_vm1, %v10185_v28  ;;  %374 = vst.msk [vmem:[#allocation2 + $0x150] sm:$0xff] %vm311_vm1, %v10188_v29  ;;  %8976 = vmatmul.mubr.msk.f32.gmra.mxu1 %vm311_vm1, %v10238_v41  ;;  %8928 = vmatprep.mubr.msk.f32.mxu0 %vm311_vm1, %v10240_v42  ;;  %v10274_v52 = vld [vmem:[#allocation2 + $0xc8] sm:$0xff]  ;;  %v10334_v62 = vld [vmem:[#allocation2 + $0xd0] sm:$0xff] }
  0x49   : > { %13473 = vst [vmem:[#allocation24_spill] sm:$0xff] %v10210_v35  ;;  %13474 = vst [vmem:[#allocation25_spill] sm:$0xff] %v10222_v37  ;;  %8978 = vmatprep.mubr.msk.f32.mxu1 %vm311_vm1, %v10242_v43  ;;  %v10336_v63 = vld [vmem:[#allocation2 + $0xcf] sm:$0xff]  ;;  %v10340_v1 = vld [vmem:[#allocation2 + $0xe7] sm:$0xff] }
  0x4a   : > { %13475 = vst [vmem:[#allocation26_spill] sm:$0xff] %v10226_v39  ;;  %13476 = vst [vmem:[#allocation27_spill] sm:$0xff] %v10238_v41  ;;  %v10338_v0 = vld [vmem:[#allocation2 + $0xe8] sm:$0xff]  ;;  %v10350_v2 = vld [vmem:[#allocation2 + $0xf0] sm:$0xff] }
  0x4b   : > { %13477 = vst [vmem:[#allocation28_spill] sm:$0xff] %v10242_v43  ;;  %13478 = vst [vmem:[#allocation29_spill] sm:$0xff] %v10254_v45  ;;  %8929 = vmatmul.mubr.msk.f32.gmra.mxu0 %vm311_vm1, %v10252_v44  ;;  %v10352_v3 = vld [vmem:[#allocation2 + $0xef] sm:$0xff]  ;;  %v10356_v12 = vld [vmem:[#allocation2 + $0x107] sm:$0xff] }
  0x4c   : > { %13479 = vst [vmem:[#allocation30_spill] sm:$0xff] %v10258_v47  ;;  %13480 = vst [vmem:[#allocation31_spill] sm:$0xff] %v10262_v49  ;;  %8979 = vmatmul.mubr.msk.f32.gmra.mxu1 %vm311_vm1, %v10254_v45  ;;  %8931 = vmatprep.mubr.msk.f32.mxu0 %vm311_vm1, %v10256_v46  ;;  %v10354_v4 = vld [vmem:[#allocation2 + $0x108] sm:$0xff]  ;;  %v10366_v13 = vld [vmem:[#allocation2 + $0x110] sm:$0xff] }
  0x4d   : > { %13481 = vst [vmem:[#allocation32_spill] sm:$0xff] %v10265_v50  ;;  %13482 = vst [vmem:[#allocation33_spill] sm:$0xff] %v10268_v51  ;;  %8981 = vmatprep.mubr.msk.f32.mxu1 %vm311_vm1, %v10258_v47  ;;  %v10368_v14 = vld [vmem:[#allocation2 + $0x10f] sm:$0xff] }
  0x4e   : > { %375 = vst.msk [vmem:[#allocation2 + $0x168] sm:$0xff] %vm311_vm1, %v10265_v50  ;;  %376 = vst.msk [vmem:[#allocation2 + $0x170] sm:$0xff] %vm311_vm1, %v10268_v51  ;;  %v10370_v15 = vld [vmem:[#allocation2 + $0x128] sm:$0xff] }
  0x4f   : > { %13483 = vst [vmem:[#allocation34_spill] sm:$0xff] %v10281_v53  ;;  %13484 = vst [vmem:[#allocation35_spill] sm:$0xff] %v10284_v54  ;;  %8932 = vmatmul.mubr.msk.f32.gmra.mxu0 %vm311_vm1, %v10260_v48  ;;  %v10409_v50 = vld [vmem:[#allocation2 + $0x150] sm:$0xff] }
  0x50   : > { %13485 = vst [vmem:[#allocation36_spill] sm:$0xff] %v10287_v55  ;;  %377 = vst.msk [vmem:[#allocation2 + $0x188] sm:$0xff] %vm311_vm1, %v10281_v53  ;;  %8982 = vmatmul.mubr.msk.f32.gmra.mxu1 %vm311_vm1, %v10262_v49  ;;  %8934 = vmatprep.mubr.msk.f32.mxu0 %vm311_vm1, %v10274_v52  ;;  %v10400_v53 = vld [vmem:[%s13349_s1 + $0x14] sm:$0xf] }
  0x51   : > { %378 = vst.msk [vmem:[#allocation2 + $0x190] sm:$0xff] %vm311_vm1, %v10284_v54  ;;  %379 = vst.msk [vmem:[#allocation2 + $0x1a8] sm:$0xff] %vm311_vm1, %v10287_v55  ;;  %8984 = vmatprep.mubr.msk.f32.mxu1 %vm311_vm1, %v10308_v59  ;;  %v10388_v55 = vld [vmem:[#allocation2 + $0x147] sm:$0xff]  ;;  %v10403_v54 = vld [vmem:[%s10080_s15 + $0xf8] sm:$0xff]  ;;  %9164 = vmatprep.subr.msk.mxu1 %vm550_vm0, %v10400_v53 }
  0x52   : > { %13486 = vst [vmem:[#allocation37_spill] sm:$0xff] %v10300_v56  ;;  %13487 = vst [vmem:[#allocation38_spill] sm:$0xff] %v10303_v57  ;;  %v10411_v51 = vld [vmem:[#allocation2 + $0x14f] sm:$0xff] }
  0x53   : > { %13488 = vst [vmem:[#allocation39_spill] sm:$0xff] %v10306_v58  ;;  %13489 = vst [vmem:[#allocation40_spill] sm:$0xff] %v10308_v59  ;;  %8935 = vmatmul.mubr.msk.f32.gmra.mxu0 %vm311_vm1, %v10334_v62 }
  0x54   : > { %380 = vst.msk [vmem:[#allocation2 + $0x1b0] sm:$0xff] %vm311_vm1, %v10300_v56  ;;  %381 = vst.msk [vmem:[#allocation2 + $0x1c8] sm:$0xff] %vm311_vm1, %v10303_v57  ;;  %8985 = vmatmul.mubr.msk.f32.gmra.mxu1 %vm311_vm1, %v10336_v63  ;;  %8937 = vmatprep.mubr.msk.f32.mxu0 %vm311_vm1, %v10338_v0  ;;  %v10384_v57 = vld [vmem:[#allocation2 + $0x12f] sm:$0xff] }
  0x55   : > { %382 = vst.msk [vmem:[#allocation2 + $0x1d0] sm:$0xff] %vm311_vm1, %v10306_v58  ;;  %13490 = vst [vmem:[#allocation41_spill] sm:$0xff] %v10317_v60  ;;  %8987 = vmatprep.mubr.msk.f32.mxu1 %vm311_vm1, %v10340_v1  ;;  %v10386_v58 = vld [vmem:[#allocation2 + $0x148] sm:$0xff]  ;;  %v10395_v56 = vld [vmem:[%s10080_s15 + $0xf0] sm:$0xff] }
  0x56   : > { %13491 = vst [vmem:[#allocation42_spill] sm:$0xff] %v10320_v61  ;;  %383 = vst.msk [vmem:[#allocation2 + $0x1e8] sm:$0xff] %vm311_vm1, %v10317_v60  ;;  %v10372_v60 = vld [vmem:[#allocation2 + $0x127] sm:$0xff] }
  0x57   : > { %384 = vst.msk [vmem:[#allocation2 + $0x1f0] sm:$0xff] %vm311_vm1, %v10320_v61  ;;  %13492 = vst [vmem:[#allocation43_spill] sm:$0xff] %v10336_v63  ;;  %8938 = vmatmul.mubr.msk.f32.gmra.mxu0 %vm311_vm1, %v10350_v2  ;;  %v10382_v61 = vld [vmem:[#allocation2 + $0x130] sm:$0xff]  ;;  %v10417_v28 = vld [vmem:[#allocation2 + $0x168] sm:$0xff] }
  0x58   : > { %13493 = vst [vmem:[#allocation44_spill] sm:$0xff] %v10340_v1  ;;  %13494 = vst [vmem:[#allocation45_spill] sm:$0xff] %v10352_v3  ;;  %8988 = vmatmul.mubr.msk.f32.gmra.mxu1 %vm311_vm1, %v10352_v3  ;;  %8940 = vmatprep.mubr.msk.f32.mxu0 %vm311_vm1, %v10354_v4  ;;  %v10419_v29 = vld [vmem:[#allocation2 + $0x167] sm:$0xff]  ;;  %v10447_v24 = vld [vmem:[#allocation2 + $0x190] sm:$0xff] }
  0x59   : > { %13495 = vst [vmem:[#allocation46_spill] sm:$0xff] %v10356_v12  ;;  %8990 = vmatprep.mubr.msk.f32.mxu1 %vm311_vm1, %v10356_v12  ;;  %13496 = vst [vmem:[#allocation47_spill] sm:$0xff] %v10368_v14  ;;  %v10435_v26 = vld [vmem:[#allocation2 + $0x188] sm:$0xff] }
  0x5a   : > { %13497 = vst [vmem:[#allocation48_spill] sm:$0xff] %v10372_v60  ;;  %13498 = vst [vmem:[#allocation49_spill] sm:$0xff] %v10384_v57  ;;  %v10437_v27 = vld [vmem:[#allocation2 + $0x187] sm:$0xff]  ;;  %v10449_v25 = vld [vmem:[#allocation2 + $0x18f] sm:$0xff] }
  0x5b   : > { %8941 = vmatmul.mubr.msk.f32.gmra.mxu0 %vm311_vm1, %v10366_v13  ;;  %13499 = vst [vmem:[#allocation50_spill] sm:$0xff] %v10388_v55  ;;  %13500 = vst [vmem:[#allocation51_spill] sm:$0xff] %v10395_v56  ;;  %v10451_v22 = vld [vmem:[#allocation2 + $0x1a8] sm:$0xff]  ;;  %v10463_v20 = vld [vmem:[#allocation2 + $0x1b0] sm:$0xff] }
  0x5c   : > { %8991 = vmatmul.mubr.msk.f32.gmra.mxu1 %vm311_vm1, %v10368_v14  ;;  %8943 = vmatprep.mubr.msk.f32.mxu0 %vm311_vm1, %v10370_v15  ;;  %13501 = vst [vmem:[#allocation52_spill] sm:$0xff] %v10403_v54  ;;  %13502 = vst [vmem:[#allocation53_spill] sm:$0xff] %v10411_v51  ;;  %v10453_v23 = vld [vmem:[#allocation2 + $0x1a7] sm:$0xff]  ;;  %v10465_v21 = vld [vmem:[#allocation2 + $0x1af] sm:$0xff] }
  0x5d   : > { %8993 = vmatprep.mubr.msk.f32.mxu1 %vm311_vm1, %v10372_v60  ;;  %385 = vst.msk [vmem:[#allocation2 + $0x208] sm:$0xff] %vm311_vm1, %v10395_v56  ;;  %386 = vst.msk [vmem:[#allocation2 + $0x210] sm:$0xff] %vm311_vm1, %v10403_v54  ;;  %v10431_v56 = vld [vmem:[#allocation2 + $0x170] sm:$0xff]  ;;  %v10467_v18 = vld [vmem:[#allocation2 + $0x1c8] sm:$0xff] }
  0x5e   : > { %13503 = vst [vmem:[#allocation54_spill] sm:$0xff] %v10419_v29  ;;  %v10433_v54 = vld [vmem:[#allocation2 + $0x16f] sm:$0xff]  ;;  %13505 = vst [vmem:[#allocation56_spill] sm:$0xff] %v10437_v27  ;;  %v10469_v19 = vld [vmem:[#allocation2 + $0x1c7] sm:$0xff] }
  0x5f   : > { %8944 = vmatmul.mubr.msk.f32.gmra.mxu0 %vm311_vm1, %v10382_v61  ;;  %13504 = vst [vmem:[#allocation55_spill] sm:$0xff] %v10433_v54  ;;  %13506 = vst [vmem:[#allocation57_spill] sm:$0xff] %v10449_v25  ;;  %v10479_v16 = vld [vmem:[#allocation2 + $0x1d0] sm:$0xff]  ;;  %v10483_v9 = vld [vmem:[#allocation2 + $0x1e8] sm:$0xff] }
  0x60   : > { %8994 = vmatmul.mubr.msk.f32.gmra.mxu1 %vm311_vm1, %v10384_v57  ;;  %8946 = vmatprep.mubr.msk.f32.mxu0 %vm311_vm1, %v10386_v58  ;;  %13507 = vst [vmem:[#allocation58_spill] sm:$0xff] %v10453_v23  ;;  %13508 = vst [vmem:[#allocation59_spill] sm:$0xff] %v10465_v21  ;;  %v10481_v17 = vld [vmem:[#allocation2 + $0x1cf] sm:$0xff]  ;;  %v10485_v10 = vld [vmem:[#allocation2 + $0x1e7] sm:$0xff] }
  0x61   : > { %8996 = vmatprep.mubr.msk.f32.mxu1 %vm311_vm1, %v10388_v55  ;;  %13509 = vst [vmem:[#allocation60_spill] sm:$0xff] %v10469_v19  ;;  %13510 = vst [vmem:[#allocation61_spill] sm:$0xff] %v10481_v17  ;;  %v10495_v7 = vld [vmem:[#allocation2 + $0x1f0] sm:$0xff] }
  0x62   : > { %13511 = vst [vmem:[#allocation62_spill] sm:$0xff] %v10483_v9  ;;  %13512 = vst [vmem:[#allocation63_spill] sm:$0xff] %v10495_v7  ;;  %v10497_v8 = vld [vmem:[#allocation2 + $0x1ef] sm:$0xff] }
  0x63   : > { %8947 = vmatmul.mubr.msk.f32.gmra.mxu0 %vm311_vm1, %v10409_v50 }
  0x64   : > { %8997 = vmatmul.mubr.msk.f32.gmra.mxu1 %vm311_vm1, %v10411_v51  ;;  %8949 = vmatprep.mubr.msk.f32.mxu0 %vm311_vm1, %v10417_v28 }
  0x65   : > { %8999 = vmatprep.mubr.msk.f32.mxu1 %vm311_vm1, %v10419_v29 }
  0x67   : > { %8950 = vmatmul.mubr.msk.f32.gmra.mxu0 %vm311_vm1, %v10431_v56 }
  0x68   : > { %9000 = vmatmul.mubr.msk.f32.gmra.mxu1 %vm311_vm1, %v10433_v54  ;;  %8952 = vmatprep.mubr.msk.f32.mxu0 %vm311_vm1, %v10435_v26 }
  0x69   : > { %9002 = vmatprep.mubr.msk.f32.mxu1 %vm311_vm1, %v10437_v27 }
  0x6b   : > { %8953 = vmatmul.mubr.msk.f32.gmra.mxu0 %vm311_vm1, %v10447_v24 }
  0x6c   : > { %9003 = vmatmul.mubr.msk.f32.gmra.mxu1 %vm311_vm1, %v10449_v25  ;;  %8955 = vmatprep.mubr.msk.f32.mxu0 %vm311_vm1, %v10451_v22 }
  0x6d   : > { %9005 = vmatprep.mubr.msk.f32.mxu1 %vm311_vm1, %v10453_v23 }
  0x6f   : > { %8956 = vmatmul.mubr.msk.f32.gmra.mxu0 %vm311_vm1, %v10463_v20 }
  0x70   : > { %9006 = vmatmul.mubr.msk.f32.gmra.mxu1 %vm311_vm1, %v10465_v21  ;;  %8958 = vmatprep.mubr.msk.f32.mxu0 %vm311_vm1, %v10467_v18 }
  0x71   : > { %9008 = vmatprep.mubr.msk.f32.mxu1 %vm311_vm1, %v10469_v19 }
  0x73   : > { %8959 = vmatmul.mubr.msk.f32.gmra.mxu0 %vm311_vm1, %v10479_v16 }
  0x74   : > { %9009 = vmatmul.mubr.msk.f32.gmra.mxu1 %vm311_vm1, %v10481_v17  ;;  %8961 = vmatprep.mubr.msk.f32.mxu0 %vm311_vm1, %v10483_v9  ;;  %v10506_v9 = vld [vmem:[#allocation2 + $0x29] sm:$0xff] }
  0x75   : > { %9011 = vmatprep.mubr.msk.f32.mxu1 %vm311_vm1, %v10485_v10 }
  0x77   : > { %8962 = vmatmul.mubr.msk.f32.gmra.mxu0 %vm311_vm1, %v10495_v7  ;;  %v10514_v7 = vld [vmem:[%s13349_s1 + $0x18] sm:$0xf] }
  0x78   : > { %9012 = vmatmul.mubr.msk.f32.gmra.mxu1 %vm311_vm1, %v10497_v8  ;;  %9016 = vmatprep.mubr.msk.f32.mxu0 %vm311_vm1, %v1103_v5  ;;  %v10519_v5 = vld [vmem:[%s13349_s1 + $0x1c] sm:$0xf] }
  0x79   : > { %9066 = vmatprep.mubr.msk.f32.mxu1 %vm311_vm1, %v10192_v31  ;;  %v10529_v31 = vld [vmem:[#allocation2 + $0x49] sm:$0xff] }
  0x7b   : > { %9017 = vmatmul.mubr.msk.f32.vlgmr.msra.gmra.mxu0 %vm311_vm1, %v1104_v6  ;;  %v10525_v6 = vld [vmem:[#allocation2 + $0x31] sm:$0xff] }
  0x7c   : > { %9067 = vmatmul.mubr.msk.f32.vlgmr.msra.gmra.mxu1 %vm311_vm1, %v10206_v33  ;;  %9115 = vmatpush3.msk.msra.mxu0 %vm550_vm0, %v10109_v11  ;;  %v10543_v11 = vld [vmem:[#allocation2 + $0x51] sm:$0xff]  ;;  %v10547_v33 = vld [vmem:[#allocation2 + $0x69] sm:$0xff] }
  0x7d   : > { %9019 = vmatprep.mubr.msk.f32.mxu0 %vm311_vm1, %v10506_v9  ;;  %9069 = vmatprep.mubr.msk.f32.mxu1 %vm311_vm1, %v10210_v35  ;;  %v10693_v35 = vld [vmem:[#allocation2 + $0x207] sm:$0xff] }
  0x7e   : > { %9165 = vmatpush3.msk.msra.mxu1 %vm550_vm0, %v10400_v53  ;;  %9214 = vmatprep.subr.msk.mxu0 %vm550_vm0, %v10514_v7  ;;  %v10555_v53 = vld [vmem:[#allocation2 + $0x71] sm:$0xff]  ;;  %13513 = vst [vmem:[#allocation64_spill] sm:$0xff] %v10693_v35 }
  0x7f   : > { %9264 = vmatprep.subr.msk.mxu1 %vm550_vm0, %v10519_v5  ;;  %9020 = vmatmul.mubr.msk.f32.gmra.mxu0 %vm311_vm1, %v10525_v6 }
  0x80   : > { %9070 = vmatmul.mubr.msk.f32.gmra.mxu1 %vm311_vm1, %v10222_v37  ;;  %9022 = vmatprep.mubr.msk.f32.mxu0 %vm311_vm1, %v10529_v31  ;;  %v10559_v37 = vld [vmem:[#allocation2 + $0x89] sm:$0xff] }
  0x81   : > { %9072 = vmatprep.mubr.msk.f32.mxu1 %vm311_vm1, %v10226_v39  ;;  %v10571_v39 = vld [vmem:[#allocation2 + $0xa9] sm:$0xff] }
  0x83   : > { %9023 = vmatmul.mubr.msk.f32.gmra.mxu0 %vm311_vm1, %v10543_v11 }
  0x84   : > { %9073 = vmatmul.mubr.msk.f32.gmra.mxu1 %vm311_vm1, %v10238_v41  ;;  %9025 = vmatprep.mubr.msk.f32.mxu0 %vm311_vm1, %v10547_v33  ;;  %v10567_v41 = vld [vmem:[#allocation2 + $0x91] sm:$0xff] }
  0x85   : > { %9075 = vmatprep.mubr.msk.f32.mxu1 %vm311_vm1, %v10242_v43  ;;  %v10583_v43 = vld [vmem:[#allocation2 + $0xc9] sm:$0xff] }
  0x87   : > { %9026 = vmatmul.mubr.msk.f32.gmra.mxu0 %vm311_vm1, %v10555_v53 }
  0x88   : > { %9076 = vmatmul.mubr.msk.f32.gmra.mxu1 %vm311_vm1, %v10254_v45  ;;  %9028 = vmatprep.mubr.msk.f32.mxu0 %vm311_vm1, %v10559_v37  ;;  %v10579_v45 = vld [vmem:[#allocation2 + $0xb1] sm:$0xff] }
  0x89   : > { %9078 = vmatprep.mubr.msk.f32.mxu1 %vm311_vm1, %v10258_v47  ;;  %v10595_v47 = vld [vmem:[#allocation2 + $0xe9] sm:$0xff] }
  0x8b   : > { %9029 = vmatmul.mubr.msk.f32.gmra.mxu0 %vm311_vm1, %v10567_v41 }
  0x8c   : > { %9079 = vmatmul.mubr.msk.f32.gmra.mxu1 %vm311_vm1, %v10262_v49  ;;  %9031 = vmatprep.mubr.msk.f32.mxu0 %vm311_vm1, %v10571_v39  ;;  %v10591_v49 = vld [vmem:[#allocation2 + $0xd1] sm:$0xff] }
  0x8d   : > { %9081 = vmatprep.mubr.msk.f32.mxu1 %vm311_vm1, %v10308_v59  ;;  %v10607_v59 = vld [vmem:[#allocation2 + $0x109] sm:$0xff] }
  0x8f   : > { %9032 = vmatmul.mubr.msk.f32.gmra.mxu0 %vm311_vm1, %v10579_v45 }
  0x90   : > { %9082 = vmatmul.mubr.msk.f32.gmra.mxu1 %vm311_vm1, %v10336_v63  ;;  %9034 = vmatprep.mubr.msk.f32.mxu0 %vm311_vm1, %v10583_v43  ;;  %v10603_v63 = vld [vmem:[#allocation2 + $0xf1] sm:$0xff] }
  0x91   : > { %9084 = vmatprep.mubr.msk.f32.mxu1 %vm311_vm1, %v10340_v1  ;;  %v10619_v1 = vld [vmem:[#allocation2 + $0x129] sm:$0xff] }
  0x93   : > { %9035 = vmatmul.mubr.msk.f32.gmra.mxu0 %vm311_vm1, %v10591_v49 }
  0x94   : > { %9085 = vmatmul.mubr.msk.f32.gmra.mxu1 %vm311_vm1, %v10352_v3  ;;  %9037 = vmatprep.mubr.msk.f32.mxu0 %vm311_vm1, %v10595_v47  ;;  %v10615_v3 = vld [vmem:[#allocation2 + $0x111] sm:$0xff] }
  0x95   : > { %9087 = vmatprep.mubr.msk.f32.mxu1 %vm311_vm1, %v10356_v12  ;;  %v10631_v12 = vld [vmem:[#allocation2 + $0x149] sm:$0xff] }
  0x97   : > { %9038 = vmatmul.mubr.msk.f32.gmra.mxu0 %vm311_vm1, %v10603_v63 }
  0x98   : > { %9088 = vmatmul.mubr.msk.f32.gmra.mxu1 %vm311_vm1, %v10368_v14  ;;  %9040 = vmatprep.mubr.msk.f32.mxu0 %vm311_vm1, %v10607_v59  ;;  %v10627_v14 = vld [vmem:[#allocation2 + $0x131] sm:$0xff] }
  0x99   : > { %9090 = vmatprep.mubr.msk.f32.mxu1 %vm311_vm1, %v10372_v60  ;;  %v10643_v60 = vld [vmem:[#allocation2 + $0x169] sm:$0xff] }
  0x9b   : > { %9041 = vmatmul.mubr.msk.f32.gmra.mxu0 %vm311_vm1, %v10615_v3 }
  0x9c   : > { %9091 = vmatmul.mubr.msk.f32.gmra.mxu1 %vm311_vm1, %v10384_v57  ;;  %9043 = vmatprep.mubr.msk.f32.mxu0 %vm311_vm1, %v10619_v1  ;;  %v10639_v57 = vld [vmem:[#allocation2 + $0x151] sm:$0xff] }
  0x9d   : > { %9093 = vmatprep.mubr.msk.f32.mxu1 %vm311_vm1, %v10388_v55  ;;  %v10655_v55 = vld [vmem:[#allocation2 + $0x189] sm:$0xff] }
  0x9f   : > { %9044 = vmatmul.mubr.msk.f32.gmra.mxu0 %vm311_vm1, %v10627_v14 }
  0xa0   : > { %9094 = vmatmul.mubr.msk.f32.gmra.mxu1 %vm311_vm1, %v10411_v51  ;;  %9046 = vmatprep.mubr.msk.f32.mxu0 %vm311_vm1, %v10631_v12  ;;  %v10651_v51 = vld [vmem:[#allocation2 + $0x171] sm:$0xff] }
  0xa1   : > { %9096 = vmatprep.mubr.msk.f32.mxu1 %vm311_vm1, %v10419_v29  ;;  %v10667_v29 = vld [vmem:[#allocation2 + $0x1a9] sm:$0xff] }
  0xa3   : > { %9047 = vmatmul.mubr.msk.f32.gmra.mxu0 %vm311_vm1, %v10639_v57 }
  0xa4   : > { %9097 = vmatmul.mubr.msk.f32.gmra.mxu1 %vm311_vm1, %v10433_v54  ;;  %9049 = vmatprep.mubr.msk.f32.mxu0 %vm311_vm1, %v10643_v60  ;;  %v10663_v54 = vld [vmem:[#allocation2 + $0x191] sm:$0xff] }
  0xa5   : > { %9099 = vmatprep.mubr.msk.f32.mxu1 %vm311_vm1, %v10437_v27  ;;  %v10679_v27 = vld [vmem:[#allocation2 + $0x1c9] sm:$0xff] }
  0xa7   : > { %9050 = vmatmul.mubr.msk.f32.gmra.mxu0 %vm311_vm1, %v10651_v51 }
  0xa8   : > { %9100 = vmatmul.mubr.msk.f32.gmra.mxu1 %vm311_vm1, %v10449_v25  ;;  %9052 = vmatprep.mubr.msk.f32.mxu0 %vm311_vm1, %v10655_v55  ;;  %v10675_v25 = vld [vmem:[#allocation2 + $0x1b1] sm:$0xff] }
  0xa9   : > { %9102 = vmatprep.mubr.msk.f32.mxu1 %vm311_vm1, %v10453_v23  ;;  %v10691_v23 = vld [vmem:[#allocation2 + $0x1e9] sm:$0xff] }
  0xab   : > { %9053 = vmatmul.mubr.msk.f32.gmra.mxu0 %vm311_vm1, %v10663_v54 }
  0xac   : > { %9103 = vmatmul.mubr.msk.f32.gmra.mxu1 %vm311_vm1, %v10465_v21  ;;  %9055 = vmatprep.mubr.msk.f32.mxu0 %vm311_vm1, %v10667_v29  ;;  %v10687_v21 = vld [vmem:[#allocation2 + $0x1d1] sm:$0xff] }
  0xad   : > { %9105 = vmatprep.mubr.msk.f32.mxu1 %vm311_vm1, %v10469_v19  ;;  %v10705_v19 = vld [vmem:[#allocation2 + $0x20f] sm:$0xff] }
  0xaf   : > { %9056 = vmatmul.mubr.msk.f32.gmra.mxu0 %vm311_vm1, %v10675_v25 }
  0xb0   : > { %9106 = vmatmul.mubr.msk.f32.gmra.mxu1 %vm311_vm1, %v10481_v17  ;;  %9058 = vmatprep.mubr.msk.f32.mxu0 %vm311_vm1, %v10679_v27  ;;  %v10701_v17 = vld [vmem:[#allocation2 + $0x1f1] sm:$0xff] }
  0xb1   : > { %9108 = vmatprep.mubr.msk.f32.mxu1 %vm311_vm1, %v10485_v10 }
  0xb3   : > { %9059 = vmatmul.mubr.msk.f32.gmra.mxu0 %vm311_vm1, %v10687_v21 }
  0xb4   : > { %9109 = vmatmul.mubr.msk.f32.gmra.mxu1 %vm311_vm1, %v10497_v8  ;;  %9061 = vmatprep.mubr.msk.f32.mxu0 %vm311_vm1, %v10691_v23 }
  0xb5   : > { %9111 = vmatprep.mubr.msk.f32.mxu1 %vm311_vm1, %v10693_v35  ;;  %v10722_v35 = vld [vmem:[%s13349_s1 + $0x20] sm:$0xf] }
  0xb7   : > { %9062 = vmatmul.mubr.msk.f32.gmra.mxu0 %vm311_vm1, %v10701_v17 }
  0xb8   : > { %9112 = vmatmul.mubr.msk.f32.gmra.mxu1 %vm311_vm1, %v10705_v19  ;;  %9116 = vmatprep.mubr.msk.f32.mxu0 %vm311_vm1, %v10190_v30 }
  0xb9   : > { %9166 = vmatprep.mubr.msk.f32.mxu1 %vm311_vm1, %v10506_v9  ;;  %v10838_v9 = vld [vmem:[#allocation2 + $0x208] sm:$0xff] }
  0xbb   : > { %9117 = vmatmul.mubr.msk.f32.vlgmr.msra.gmra.mxu0 %vm311_vm1, %v10194_v32 }
  0xbc   : > { %9167 = vmatmul.mubr.msk.f32.vlgmr.msra.gmra.mxu1 %vm311_vm1, %v10525_v6  ;;  %9215 = vmatpush3.msk.msra.mxu0 %vm550_vm0, %v10514_v7  ;;  %v13514_v7 = vld [vmem:[#allocation62_spill] sm:$0xff]  ;;  %v13519_v6 = vld [vmem:[#allocation27_spill] sm:$0xff] }
  0xbd   : > { %9119 = vmatprep.mubr.msk.f32.mxu0 %vm311_vm1, %v10208_v34  ;;  %9169 = vmatprep.mubr.msk.f32.mxu1 %vm311_vm1, %v10529_v31 }
  0xbe   : > { %9265 = vmatpush3.msk.msra.mxu1 %vm550_vm0, %v10519_v5  ;;  %9314 = vmatprep.subr.msk.mxu0 %vm550_vm0, %v10722_v35 }
  0xbf   : > { %9120 = vmatmul.mubr.msk.f32.gmra.mxu0 %vm311_vm1, %v10220_v36 }
  0xc0   : > { %9170 = vmatmul.mubr.msk.f32.gmra.mxu1 %vm311_vm1, %v10543_v11  ;;  %9122 = vmatprep.mubr.msk.f32.mxu0 %vm311_vm1, %v10224_v38 }
  0xc1   : > { %9172 = vmatprep.mubr.msk.f32.mxu1 %vm311_vm1, %v10547_v33 }
  0xc3   : > { %9123 = vmatmul.mubr.msk.f32.gmra.mxu0 %vm311_vm1, %v10236_v40 }
  0xc4   : > { %9173 = vmatmul.mubr.msk.f32.gmra.mxu1 %vm311_vm1, %v10555_v53  ;;  %9125 = vmatprep.mubr.msk.f32.mxu0 %vm311_vm1, %v10240_v42 }
  0xc5   : > { %9175 = vmatprep.mubr.msk.f32.mxu1 %vm311_vm1, %v10559_v37 }
  0xc7   : > { %9126 = vmatmul.mubr.msk.f32.gmra.mxu0 %vm311_vm1, %v10252_v44 }
  0xc8   : > { %9176 = vmatmul.mubr.msk.f32.gmra.mxu1 %vm311_vm1, %v10567_v41  ;;  %9128 = vmatprep.mubr.msk.f32.mxu0 %vm311_vm1, %v10256_v46 }
  0xc9   : > { %9178 = vmatprep.mubr.msk.f32.mxu1 %vm311_vm1, %v10571_v39 }
  0xcb   : > { %9129 = vmatmul.mubr.msk.f32.gmra.mxu0 %vm311_vm1, %v10260_v48 }
  0xcc   : > { %9179 = vmatmul.mubr.msk.f32.gmra.mxu1 %vm311_vm1, %v10579_v45  ;;  %9131 = vmatprep.mubr.msk.f32.mxu0 %vm311_vm1, %v10274_v52 }
  0xcd   : > { %9181 = vmatprep.mubr.msk.f32.mxu1 %vm311_vm1, %v10583_v43 }
  0xcf   : > { %9132 = vmatmul.mubr.msk.f32.gmra.mxu0 %vm311_vm1, %v10334_v62 }
  0xd0   : > { %9182 = vmatmul.mubr.msk.f32.gmra.mxu1 %vm311_vm1, %v10591_v49  ;;  %9134 = vmatprep.mubr.msk.f32.mxu0 %vm311_vm1, %v10338_v0 }
  0xd1   : > { %9184 = vmatprep.mubr.msk.f32.mxu1 %vm311_vm1, %v10595_v47 }
  0xd3   : > { %9135 = vmatmul.mubr.msk.f32.gmra.mxu0 %vm311_vm1, %v10350_v2 }
  0xd4   : > { %9185 = vmatmul.mubr.msk.f32.gmra.mxu1 %vm311_vm1, %v10603_v63  ;;  %9137 = vmatprep.mubr.msk.f32.mxu0 %vm311_vm1, %v10354_v4 }
  0xd5   : > { %9187 = vmatprep.mubr.msk.f32.mxu1 %vm311_vm1, %v10607_v59 }
  0xd7   : > { %9138 = vmatmul.mubr.msk.f32.gmra.mxu0 %vm311_vm1, %v10366_v13  ;;  %v8968_v30 = vpop.f32.mrf.mxu1 }
  0xd8   : > { %9188 = vmatmul.mubr.msk.f32.gmra.mxu1 %vm311_vm1, %v10615_v3  ;;  %9140 = vmatprep.mubr.msk.f32.mxu0 %vm311_vm1, %v10370_v15 }
  0xd9   : > { %9190 = vmatprep.mubr.msk.f32.mxu1 %vm311_vm1, %v10619_v1 }
  0xdb   : > { %9141 = vmatmul.mubr.msk.f32.gmra.mxu0 %vm311_vm1, %v10382_v61 }
  0xdc   : > { %9191 = vmatmul.mubr.msk.f32.gmra.mxu1 %vm311_vm1, %v10627_v14  ;;  %9143 = vmatprep.mubr.msk.f32.mxu0 %vm311_vm1, %v10386_v58 }
  0xdd   : > { %9193 = vmatprep.mubr.msk.f32.mxu1 %vm311_vm1, %v10631_v12 }
  0xdf   : > { %9144 = vmatmul.mubr.msk.f32.gmra.mxu0 %vm311_vm1, %v10409_v50 }
  0xe0   : > { %9194 = vmatmul.mubr.msk.f32.gmra.mxu1 %vm311_vm1, %v10639_v57  ;;  %9146 = vmatprep.mubr.msk.f32.mxu0 %vm311_vm1, %v10417_v28 }
  0xe1   : > { %9196 = vmatprep.mubr.msk.f32.mxu1 %vm311_vm1, %v10643_v60  ;;  %v13518_v60 = vld [vmem:[#allocation26_spill] sm:$0xff] }
  0xe3   : > { %9147 = vmatmul.mubr.msk.f32.gmra.mxu0 %vm311_vm1, %v10431_v56 }
  0xe4   : > { %9197 = vmatmul.mubr.msk.f32.gmra.mxu1 %vm311_vm1, %v10651_v51  ;;  %9149 = vmatprep.mubr.msk.f32.mxu0 %vm311_vm1, %v10435_v26 }
  0xe5   : > { %9199 = vmatprep.mubr.msk.f32.mxu1 %vm311_vm1, %v10655_v55  ;;  %v13517_v55 = vld [vmem:[#allocation25_spill] sm:$0xff] }
  0xe7   : > { %9150 = vmatmul.mubr.msk.f32.gmra.mxu0 %vm311_vm1, %v10447_v24 }
  0xe8   : > { %9200 = vmatmul.mubr.msk.f32.gmra.mxu1 %vm311_vm1, %v10663_v54  ;;  %9152 = vmatprep.mubr.msk.f32.mxu0 %vm311_vm1, %v10451_v22  ;;  %v944_v54 = vpop.f32.mrf.mxu1 }
  0xe9   : > { %9202 = vmatprep.mubr.msk.f32.mxu1 %vm311_vm1, %v10667_v29  ;;  %v13515_v29 = vld [vmem:[#allocation63_spill] sm:$0xff] }
  0xeb   : > { %9153 = vmatmul.mubr.msk.f32.gmra.mxu0 %vm311_vm1, %v10463_v20 }
  0xec   : > { %9203 = vmatmul.mubr.msk.f32.gmra.mxu1 %vm311_vm1, %v10675_v25  ;;  %9155 = vmatprep.mubr.msk.f32.mxu0 %vm311_vm1, %v10467_v18  ;;  %v10840_v25 = vld [vmem:[#allocation2 + $0x209] sm:$0xff] }
  0xed   : > { %9205 = vmatprep.mubr.msk.f32.mxu1 %vm311_vm1, %v10679_v27  ;;  %v10852_v27 = vld [vmem:[#allocation2 + $0x211] sm:$0xff] }
  0xef   : > { %9156 = vmatmul.mubr.msk.f32.gmra.mxu0 %vm311_vm1, %v10479_v16 }
  0xf0   : > { %9206 = vmatmul.mubr.msk.f32.gmra.mxu1 %vm311_vm1, %v10687_v21  ;;  %9158 = vmatprep.mubr.msk.f32.mxu0 %vm311_vm1, %v13514_v7  ;;  %v10848_v21 = vld [vmem:[#allocation2 + $0x210] sm:$0xff] }
  0xf1   : > { %9208 = vmatprep.mubr.msk.f32.mxu1 %vm311_vm1, %v10691_v23  ;;  %v13516_v23 = vld [vmem:[#allocation24_spill] sm:$0xff] }
  0xf3   : > { %9159 = vmatmul.mubr.msk.f32.gmra.mxu0 %vm311_vm1, %v13515_v29 }
  0xf4   : > { %9209 = vmatmul.mubr.msk.f32.gmra.mxu1 %vm311_vm1, %v10701_v17  ;;  %9161 = vmatprep.mubr.msk.f32.mxu0 %vm311_vm1, %v10838_v9  ;;  %v8918_v17 = vpop.f32.mrf.mxu0 }
  0xf5   : > { %9211 = vmatprep.mubr.msk.f32.mxu1 %vm311_vm1, %v10840_v25  ;;  %v10862_v32 = vadd.f32 %v8968_v30, %v8918_v17 }
  0xf6   : > { %v620_v51 = vpop.f32.mrf.mxu0 }
  0xf7   : > { %9162 = vmatmul.mubr.msk.f32.gmra.mxu0 %vm311_vm1, %v10848_v21  ;;  %v10868_v57 = vadd.f32 %v944_v54, %v620_v51  ;;  %v13521_v54 = vld [vmem:[#allocation29_spill] sm:$0xff] }
  0xf8   : > { %9212 = vmatmul.mubr.msk.f32.gmra.mxu1 %vm311_vm1, %v10852_v27  ;;  %9216 = vmatprep.mubr.msk.f32.mxu0 %vm311_vm1, %v13516_v23  ;;  %v13520_v23 = vld [vmem:[#allocation28_spill] sm:$0xff] }
  0xf9   : > { %9266 = vmatprep.mubr.msk.f32.mxu1 %vm311_vm1, %v10208_v34 }
  0xfb   : > { %9217 = vmatmul.mubr.msk.f32.vlgmr.msra.gmra.mxu0 %vm311_vm1, %v13517_v55  ;;  %v13522_v55 = vld [vmem:[#allocation30_spill] sm:$0xff] }
  0xfc   : > { %9267 = vmatmul.mubr.msk.f32.vlgmr.msra.gmra.mxu1 %vm311_vm1, %v10220_v36  ;;  %9315 = vmatpush3.msk.msra.mxu0 %vm550_vm0, %v10722_v35 }
  0xfd   : > { %9219 = vmatprep.mubr.msk.f32.mxu0 %vm311_vm1, %v13518_v60  ;;  %9269 = vmatprep.mubr.msk.f32.mxu1 %vm311_vm1, %v10224_v38 }
  0xff   : > { %v8921_v34 = vpop.f32.mrf.mxu0  ;;  %9220 = vmatmul.mubr.msk.f32.gmra.mxu0 %vm311_vm1, %v13519_v6 }
 0x100   : > { %v8971_v5 = vpop.f32.mrf.mxu1  ;;  %9270 = vmatmul.mubr.msk.f32.gmra.mxu1 %vm311_vm1, %v10236_v40  ;;  %9222 = vmatprep.mubr.msk.f32.mxu0 %vm311_vm1, %v13520_v23  ;;  %v13523_v23 = vld [vmem:[#allocation31_spill] sm:$0xff] }
 0x101   : > { %v10880_v36 = vadd.f32 %v8971_v5, %v8921_v34  ;;  %9272 = vmatprep.mubr.msk.f32.mxu1 %vm311_vm1, %v10240_v42  ;;  %v630_v35 = vpop.f32.mrf.mxu0 }
 0x102   : > { %v954_v17 = vpop.f32.mrf.mxu1 }
 0x103   : > { %v10886_v30 = vadd.f32 %v954_v17, %v630_v35  ;;  %v8924_v38 = vpop.f32.mrf.mxu0  ;;  %9223 = vmatmul.mubr.msk.f32.gmra.mxu0 %vm311_vm1, %v13521_v54  ;;  %v13524_v35 = vld [vmem:[#allocation40_spill] sm:$0xff] }
 0x104   : > { %v8974_v51 = vpop.f32.mrf.mxu1  ;;  %9273 = vmatmul.mubr.msk.f32.gmra.mxu1 %vm311_vm1, %v10252_v44  ;;  %9225 = vmatprep.mubr.msk.f32.mxu0 %vm311_vm1, %v13522_v55  ;;  %v13525_v55 = vld [vmem:[#allocation43_spill] sm:$0xff] }
 0x105   : > { %v10892_v40 = vadd.f32 %v8974_v51, %v8924_v38  ;;  %9275 = vmatprep.mubr.msk.f32.mxu1 %vm311_vm1, %v10256_v46  ;;  %v640_v42 = vpop.f32.mrf.mxu0 }
 0x106   : > { %v964_v60 = vpop.f32.mrf.mxu1 }
 0x107   : > { %v10898_v34 = vadd.f32 %v964_v60, %v640_v42  ;;  %v8927_v5 = vpop.f32.mrf.mxu0  ;;  %9226 = vmatmul.mubr.msk.f32.gmra.mxu0 %vm311_vm1, %v13523_v23  ;;  %v13526_v42 = vld [vmem:[#allocation44_spill] sm:$0xff] }
 0x108   : > { %v8977_v6 = vpop.f32.mrf.mxu1  ;;  %9276 = vmatmul.mubr.msk.f32.gmra.mxu1 %vm311_vm1, %v10260_v48  ;;  %9228 = vmatprep.mubr.msk.f32.mxu0 %vm311_vm1, %v13524_v35  ;;  %v13527_v35 = vld [vmem:[#allocation45_spill] sm:$0xff] }
 0x109   : > { %v10904_v44 = vadd.f32 %v8977_v6, %v8927_v5  ;;  %9278 = vmatprep.mubr.msk.f32.mxu1 %vm311_vm1, %v10274_v52  ;;  %v650_v46 = vpop.f32.mrf.mxu0 }
 0x10a   : > { %v974_v17 = vpop.f32.mrf.mxu1 }
 0x10b   : > { %v10910_v38 = vadd.f32 %v974_v17, %v650_v46  ;;  %v8930_v51 = vpop.f32.mrf.mxu0  ;;  %9229 = vmatmul.mubr.msk.f32.gmra.mxu0 %vm311_vm1, %v13525_v55  ;;  %v13528_v46 = vld [vmem:[#allocation46_spill] sm:$0xff] }
 0x10c   : > { %v8980_v54 = vpop.f32.mrf.mxu1  ;;  %9279 = vmatmul.mubr.msk.f32.gmra.mxu1 %vm311_vm1, %v10334_v62  ;;  %9231 = vmatprep.mubr.msk.f32.mxu0 %vm311_vm1, %v13526_v42  ;;  %v13529_v42 = vld [vmem:[#allocation47_spill] sm:$0xff] }
 0x10d   : > { %v10916_v48 = vadd.f32 %v8980_v54, %v8930_v51  ;;  %9281 = vmatprep.mubr.msk.f32.mxu1 %vm311_vm1, %v10338_v0  ;;  %v660_v52 = vpop.f32.mrf.mxu0 }
 0x10e   : > { %v984_v60 = vpop.f32.mrf.mxu1 }
 0x10f   : > { %v10922_v5 = vadd.f32 %v984_v60, %v660_v52  ;;  %v8933_v6 = vpop.f32.mrf.mxu0  ;;  %9232 = vmatmul.mubr.msk.f32.gmra.mxu0 %vm311_vm1, %v13527_v35  ;;  %v13530_v52 = vld [vmem:[#allocation48_spill] sm:$0xff] }
 0x110   : > { %v8983_v23 = vpop.f32.mrf.mxu1  ;;  %9282 = vmatmul.mubr.msk.f32.gmra.mxu1 %vm311_vm1, %v10350_v2  ;;  %9234 = vmatprep.mubr.msk.f32.mxu0 %vm311_vm1, %v13528_v46  ;;  %v13531_v46 = vld [vmem:[#allocation49_spill] sm:$0xff] }
 0x111   : > { %v10928_v62 = vadd.f32 %v8983_v23, %v8933_v6  ;;  %9284 = vmatprep.mubr.msk.f32.mxu1 %vm311_vm1, %v10354_v4  ;;  %v670_v0 = vpop.f32.mrf.mxu0 }
 0x112   : > { %v994_v17 = vpop.f32.mrf.mxu1 }
 0x113   : > { %v10934_v51 = vadd.f32 %v994_v17, %v670_v0  ;;  %v8936_v54 = vpop.f32.mrf.mxu0  ;;  %9235 = vmatmul.mubr.msk.f32.gmra.mxu0 %vm311_vm1, %v13529_v42  ;;  %v13532_v0 = vld [vmem:[#allocation50_spill] sm:$0xff] }
 0x114   : > { %v8986_v55 = vpop.f32.mrf.mxu1  ;;  %9285 = vmatmul.mubr.msk.f32.gmra.mxu1 %vm311_vm1, %v10366_v13  ;;  %9237 = vmatprep.mubr.msk.f32.mxu0 %vm311_vm1, %v13530_v52  ;;  %v13533_v52 = vld [vmem:[#allocation53_spill] sm:$0xff] }
 0x115   : > { %v10940_v2 = vadd.f32 %v8986_v55, %v8936_v54  ;;  %9287 = vmatprep.mubr.msk.f32.mxu1 %vm311_vm1, %v10370_v15  ;;  %v680_v4 = vpop.f32.mrf.mxu0 }
 0x116   : > { %v1004_v60 = vpop.f32.mrf.mxu1 }
 0x117   : > { %v10946_v6 = vadd.f32 %v1004_v60, %v680_v4  ;;  %v8939_v23 = vpop.f32.mrf.mxu0  ;;  %9238 = vmatmul.mubr.msk.f32.gmra.mxu0 %vm311_vm1, %v13531_v46  ;;  %v13534_v4 = vld [vmem:[#allocation54_spill] sm:$0xff]  ;;  %v13535_v46 = vld [vmem:[#allocation55_spill] sm:$0xff] }
 0x118   : > { %v8989_v35 = vpop.f32.mrf.mxu1  ;;  %9288 = vmatmul.mubr.msk.f32.gmra.mxu1 %vm311_vm1, %v10382_v61  ;;  %9240 = vmatprep.mubr.msk.f32.mxu0 %vm311_vm1, %v13532_v0  ;;  %v13536_v0 = vld [vmem:[#allocation56_spill] sm:$0xff] }
 0x119   : > { %v10952_v13 = vadd.f32 %v8989_v35, %v8939_v23  ;;  %9290 = vmatprep.mubr.msk.f32.mxu1 %vm311_vm1, %v10386_v58  ;;  %v690_v15 = vpop.f32.mrf.mxu0 }
 0x11a   : > { %v1014_v17 = vpop.f32.mrf.mxu1 }
 0x11b   : > { %v10958_v54 = vadd.f32 %v1014_v17, %v690_v15  ;;  %v8942_v55 = vpop.f32.mrf.mxu0  ;;  %9241 = vmatmul.mubr.msk.f32.gmra.mxu0 %vm311_vm1, %v13533_v52  ;;  %v13538_v52 = vld [vmem:[#allocation58_spill] sm:$0xff] }
 0x11c   : > { %v8992_v42 = vpop.f32.mrf.mxu1  ;;  %9291 = vmatmul.mubr.msk.f32.gmra.mxu1 %vm311_vm1, %v10409_v50  ;;  %9243 = vmatprep.mubr.msk.f32.mxu0 %vm311_vm1, %v13534_v4 }
 0x11d   : > { %v10964_v61 = vadd.f32 %v8992_v42, %v8942_v55  ;;  %9293 = vmatprep.mubr.msk.f32.mxu1 %vm311_vm1, %v10417_v28  ;;  %v10970_v58 = vpop.f32.mrf.mxu0  ;;  %v13537_v42 = vld [vmem:[#allocation57_spill] sm:$0xff] }
 0x11e   : > { %v10972_v60 = vpop.f32.mrf.mxu1 }
 0x11f   : > { %v8945_v23 = vpop.f32.mrf.mxu0  ;;  %9244 = vmatmul.mubr.msk.f32.gmra.mxu0 %vm311_vm1, %v13535_v46  ;;  %v13539_v46 = vld [vmem:[#allocation59_spill] sm:$0xff] }
 0x120   : > { %v8995_v35 = vpop.f32.mrf.mxu1  ;;  %9294 = vmatmul.mubr.msk.f32.gmra.mxu1 %vm311_vm1, %v10431_v56  ;;  %9246 = vmatprep.mubr.msk.f32.mxu0 %vm311_vm1, %v13536_v0  ;;  %v13540_v0 = vld [vmem:[#allocation60_spill] sm:$0xff] }
 0x121   : > { %v10978_v50 = vadd.f32 %v8995_v35, %v8945_v23  ;;  %9296 = vmatprep.mubr.msk.f32.mxu1 %vm311_vm1, %v10435_v26  ;;  %v10984_v28 = vpop.f32.mrf.mxu0 }
 0x122   : > { %v10986_v15 = vpop.f32.mrf.mxu1 }
 0x123   : > { %v8948_v17 = vpop.f32.mrf.mxu0  ;;  %9247 = vmatmul.mubr.msk.f32.gmra.mxu0 %vm311_vm1, %v13537_v42 }
 0x124   : > { %v8998_v55 = vpop.f32.mrf.mxu1  ;;  %9297 = vmatmul.mubr.msk.f32.gmra.mxu1 %vm311_vm1, %v10447_v24  ;;  %9249 = vmatprep.mubr.msk.f32.mxu0 %vm311_vm1, %v13538_v52  ;;  %v13541_v52 = vld [vmem:[#allocation61_spill] sm:$0xff] }
 0x125   : > { %v10992_v56 = vadd.f32 %v8998_v55, %v8948_v17  ;;  %9299 = vmatprep.mubr.msk.f32.mxu1 %vm311_vm1, %v10451_v22  ;;  %v10998_v26 = vpop.f32.mrf.mxu0 }
 0x126   : > { %v11000_v4 = vpop.f32.mrf.mxu1 }
 0x127   : > { %v8951_v23 = vpop.f32.mrf.mxu0  ;;  %9250 = vmatmul.mubr.msk.f32.gmra.mxu0 %vm311_vm1, %v13539_v46 }
 0x128   : > { %v9001_v35 = vpop.f32.mrf.mxu1  ;;  %9300 = vmatmul.mubr.msk.f32.gmra.mxu1 %vm311_vm1, %v10463_v20  ;;  %9252 = vmatprep.mubr.msk.f32.mxu0 %vm311_vm1, %v13540_v0  ;;  %v13543_v0 = vld [vmem:[#allocation64_spill] sm:$0xff] }
 0x129   : > { %v11006_v24 = vadd.f32 %v9001_v35, %v8951_v23  ;;  %9302 = vmatprep.mubr.msk.f32.mxu1 %vm311_vm1, %v10467_v18  ;;  %v11012_v22 = vpop.f32.mrf.mxu0 }
 0x12a   : > { %v11014_v17 = vpop.f32.mrf.mxu1 }
 0x12b   : > { %v8954_v55 = vpop.f32.mrf.mxu0  ;;  %9253 = vmatmul.mubr.msk.f32.gmra.mxu0 %vm311_vm1, %v13541_v52 }
 0x12c   : > { %v9004_v42 = vpop.f32.mrf.mxu1  ;;  %9303 = vmatmul.mubr.msk.f32.gmra.mxu1 %vm311_vm1, %v10479_v16  ;;  %9255 = vmatprep.mubr.msk.f32.mxu0 %vm311_vm1, %v10485_v10 }
 0x12d   : > { %v11020_v20 = vadd.f32 %v9004_v42, %v8954_v55  ;;  %9305 = vmatprep.mubr.msk.f32.mxu1 %vm311_vm1, %v13514_v7  ;;  %v11026_v18 = vpop.f32.mrf.mxu0  ;;  %v2694_v55 = vld [vmem:[#allocation2 + $0x227] sm:$0xff] }
 0x12e   : > { %v11028_v23 = vpop.f32.mrf.mxu1  ;;  %v3084_v42 = vld [vmem:[#allocation2 + $0x228] sm:$0xff] }
 0x12f   : > { %13542 = vst [vmem:[#allocation62_spill] sm:$0xff] %v11028_v23  ;;  %v8957_v35 = vpop.f32.mrf.mxu0  ;;  %9256 = vmatmul.mubr.msk.f32.gmra.mxu0 %vm311_vm1, %v10497_v8 }
 0x130   : > { %v9007_v46 = vpop.f32.mrf.mxu1  ;;  %9306 = vmatmul.mubr.msk.f32.gmra.mxu1 %vm311_vm1, %v13515_v29  ;;  %9258 = vmatprep.mubr.msk.f32.mxu0 %vm311_vm1, %v13543_v0  ;;  %v2695_v29 = vld [vmem:[#allocation2 + $0x22f] sm:$0xff] }
 0x131   : > { %v11034_v16 = vadd.f32 %v9007_v46, %v8957_v35  ;;  %9308 = vmatprep.mubr.msk.f32.mxu1 %vm311_vm1, %v10838_v9  ;;  %v11040_v10 = vpop.f32.mrf.mxu0  ;;  %v3085_v9 = vld [vmem:[#allocation2 + $0x230] sm:$0xff] }
 0x132   : > { %v11042_v7 = vpop.f32.mrf.mxu1 }
 0x133   : > { %13544 = vst [vmem:[#allocation63_spill] sm:$0xff] %v11042_v7  ;;  %v8960_v52 = vpop.f32.mrf.mxu0  ;;  %9259 = vmatmul.mubr.msk.f32.gmra.mxu0 %vm311_vm1, %v10705_v19 }
 0x134   : > { %v9010_v23 = vpop.f32.mrf.mxu1  ;;  %9309 = vmatmul.mubr.msk.f32.gmra.mxu1 %vm311_vm1, %v10848_v21  ;;  %9261 = vmatprep.mubr.msk.f32.mxu0 %vm311_vm1, %v2694_v55 }
 0x135   : > { %v11048_v8 = vadd.f32 %v9010_v23, %v8960_v52  ;;  %9311 = vmatprep.mubr.msk.f32.mxu1 %vm311_vm1, %v3084_v42  ;;  %v11052_v35 = vpop.f32.mrf.mxu0 }
 0x136   : > { %v11054_v46 = vpop.f32.mrf.mxu1 }
 0x137   : > { %v8963_v0 = vpop.f32.mrf.mxu0  ;;  %9262 = vmatmul.mubr.msk.f32.gmra.mxu0 %vm311_vm1, %v2695_v29 }
 0x138   : > { %v9013_v7 = vpop.f32.mrf.mxu1  ;;  %9312 = vmatmul.mubr.msk.f32.gmra.mxu1 %vm311_vm1, %v3085_v9  ;;  %9316 = vmatprep.mubr.msk.f32.mxu0 %vm311_vm1, %v10529_v31 }
 0x139   : > { %v11058_v19 = vadd.f32 %v9013_v7, %v8963_v0  ;;  %v11062_v21 = vpop.f32.mrf.mxu0 }
 0x13a   : > { %v11064_v23 = vpop.f32.mrf.mxu1 }
 0x13b   : > { %13545 = vst [vmem:[#allocation24_spill] sm:$0xff] %v11064_v23  ;;  %v9018_v55 = vpop.f32.mrf.mxu0  ;;  %9317 = vmatmul.mubr.msk.f32.vlgmr.msra.gmra.mxu0 %vm311_vm1, %v10543_v11 }
 0x13c   : > { %v9068_v42 = vpop.f32.mrf.mxu1  ;;  %v1462_v52 = vadd.f32 %v9018_v55, %v10862_v32  ;;  %9319 = vmatprep.mubr.msk.f32.mxu0 %vm311_vm1, %v10547_v33 }
 0x13d   : > { %v1302_v29 = vpop.f32.mrf.mxu0 }
 0x13e   : > { %v11071_v7 = vpop.f32.mrf.mxu1  ;;  %v11074_v9 = vadd.f32 %v1302_v29, %v10868_v57  ;;  %v11076_v31 = vadd.f32 %v9068_v42, %v1462_v52 }
 0x13f   : > { %v9021_v0 = vpop.f32.mrf.mxu0  ;;  %9320 = vmatmul.mubr.msk.f32.gmra.mxu0 %vm311_vm1, %v10555_v53 }
 0x140   : > { %v9071_v23 = vpop.f32.mrf.mxu1  ;;  %v1464_v11 = vadd.f32 %v9021_v0, %v10880_v36  ;;  %9322 = vmatprep.mubr.msk.f32.mxu0 %vm311_vm1, %v10559_v37 }
 0x141   : > { %v1312_v32 = vpop.f32.mrf.mxu0 }
 0x142   : > { %v11083_v33 = vpop.f32.mrf.mxu1  ;;  %v11086_v55 = vadd.f32 %v1312_v32, %v10886_v30  ;;  %v11088_v57 = vadd.f32 %v9071_v23, %v1464_v11  ;;  %v8009_v32 = vld [vmem:[%s13350_s2 + $0x4] sm:$0xf] }
 0x143   : > { %v9024_v42 = vpop.f32.mrf.mxu0  ;;  %9323 = vmatmul.mubr.msk.f32.gmra.mxu0 %vm311_vm1, %v10567_v41  ;;  %9364 = vmatprep.subr.msk.mxu1 %vm550_vm0, %v8009_v32 }
 0x144   : > { %v9074_v52 = vpop.f32.mrf.mxu1  ;;  %v1466_v53 = vadd.f32 %v9024_v42, %v10892_v40  ;;  %9325 = vmatprep.mubr.msk.f32.mxu0 %vm311_vm1, %v10571_v39  ;;  %9365 = vmatpush3.msk.msra.mxu1 %vm550_vm0, %v8009_v32 }
 0x145   : > { %v1322_v36 = vpop.f32.mrf.mxu0 }
 0x146   : > { %v11095_v37 = vpop.f32.mrf.mxu1  ;;  %v11098_v29 = vadd.f32 %v1322_v36, %v10898_v34  ;;  %v11100_v30 = vadd.f32 %v9074_v52, %v1466_v53 }
 0x147   : > { %v9027_v23 = vpop.f32.mrf.mxu0  ;;  %9326 = vmatmul.mubr.msk.f32.gmra.mxu0 %vm311_vm1, %v10579_v45 }
 0x148   : > { %v9077_v0 = vpop.f32.mrf.mxu1  ;;  %v1468_v41 = vadd.f32 %v9027_v23, %v10904_v44  ;;  %9328 = vmatprep.mubr.msk.f32.mxu0 %vm311_vm1, %v10583_v43 }
 0x149   : > { %v1332_v40 = vpop.f32.mrf.mxu0 }
 0x14a   : > { %v11107_v39 = vpop.f32.mrf.mxu1  ;;  %v11110_v11 = vadd.f32 %v1332_v40, %v10910_v38  ;;  %v11112_v34 = vadd.f32 %v9077_v0, %v1468_v41 }
 0x14b   : > { %v9030_v42 = vpop.f32.mrf.mxu0  ;;  %9329 = vmatmul.mubr.msk.f32.gmra.mxu0 %vm311_vm1, %v10591_v49 }
 0x14c   : > { %v9080_v45 = vpop.f32.mrf.mxu1  ;;  %v1470_v43 = vadd.f32 %v9030_v42, %v10916_v48  ;;  %9331 = vmatprep.mubr.msk.f32.mxu0 %vm311_vm1, %v10595_v47 }
 0x14d   : > { %v1342_v44 = vpop.f32.mrf.mxu0 }
 0x14e   : > { %v11124_v38 = vpop.f32.mrf.mxu1  ;;  %v11127_v52 = vadd.f32 %v1342_v44, %v10922_v5  ;;  %v11129_v53 = vadd.f32 %v9080_v45, %v1470_v43  ;;  %v3462_v44 = vld [vmem:[#allocation2 + $0x169] sm:$0xff] }
 0x14f   : > { %v9033_v36 = vpop.f32.mrf.mxu0  ;;  %9332 = vmatmul.mubr.msk.f32.gmra.mxu0 %vm311_vm1, %v10603_v63 }
 0x150   : > { %v9083_v49 = vpop.f32.mrf.mxu1  ;;  %v1472_v48 = vadd.f32 %v9033_v36, %v10928_v62  ;;  %9334 = vmatprep.mubr.msk.f32.mxu0 %vm311_vm1, %v10607_v59 }
 0x151   : > { %v1352_v47 = vpop.f32.mrf.mxu0 }
 0x152   : > { %v11136_v23 = vpop.f32.mrf.mxu1  ;;  %v11139_v0 = vadd.f32 %v1352_v47, %v10934_v51  ;;  %v11141_v5 = vadd.f32 %v9083_v49, %v1472_v48 }
 0x153   : > { %v9036_v41 = vpop.f32.mrf.mxu0  ;;  %9335 = vmatmul.mubr.msk.f32.gmra.mxu0 %vm311_vm1, %v10615_v3 }
 0x154   : > { %v9086_v40 = vpop.f32.mrf.mxu1  ;;  %v1474_v63 = vadd.f32 %v9036_v41, %v10940_v2  ;;  %9337 = vmatprep.mubr.msk.f32.mxu0 %vm311_vm1, %v10619_v1  ;;  %v3461_v2 = vld [vmem:[#allocation2 + $0x151] sm:$0xff] }
 0x155   : > { %v1362_v62 = vpop.f32.mrf.mxu0 }
 0x156   : > { %v11148_v59 = vpop.f32.mrf.mxu1  ;;  %v11151_v32 = vadd.f32 %v1362_v62, %v10946_v6  ;;  %v11153_v51 = vadd.f32 %v9086_v40, %v1474_v63  ;;  %v3464_v40 = vld [vmem:[#allocation2 + $0x189] sm:$0xff] }
 0x157   : > { %v9039_v42 = vpop.f32.mrf.mxu0  ;;  %9338 = vmatmul.mubr.msk.f32.gmra.mxu0 %vm311_vm1, %v10627_v14 }
 0x158   : > { %v9089_v45 = vpop.f32.mrf.mxu1  ;;  %v1476_v3 = vadd.f32 %v9039_v42, %v10952_v13  ;;  %9340 = vmatprep.mubr.msk.f32.mxu0 %vm311_vm1, %v10631_v12  ;;  %v1025_v13 = vadd.f32 %v10972_v60, %v10970_v58  ;;  %v3463_v12 = vld [vmem:[#allocation2 + $0x171] sm:$0xff] }
 0x159   : > { %v1372_v1 = vpop.f32.mrf.mxu0 }
 0x15a   : > { %v11160_v43 = vpop.f32.mrf.mxu1  ;;  %v11163_v6 = vadd.f32 %v1372_v1, %v10958_v54  ;;  %v11165_v36 = vadd.f32 %v9089_v45, %v1476_v3  ;;  %v3466_v3 = vld [vmem:[#allocation2 + $0x1a9] sm:$0xff] }
 0x15b   : > { %v9042_v49 = vpop.f32.mrf.mxu0  ;;  %9341 = vmatmul.mubr.msk.f32.gmra.mxu0 %vm311_vm1, %v3461_v2 }
 0x15c   : > { %v9092_v14 = vpop.f32.mrf.mxu1  ;;  %v1478_v48 = vadd.f32 %v9042_v49, %v10964_v61  ;;  %9343 = vmatprep.mubr.msk.f32.mxu0 %vm311_vm1, %v3462_v44  ;;  %v3465_v61 = vld [vmem:[#allocation2 + $0x191] sm:$0xff] }
 0x15d   : > { %v1382_v47 = vpop.f32.mrf.mxu0 }
 0x15e   : > { %v11172_v41 = vpop.f32.mrf.mxu1  ;;  %v11174_v54 = vadd.f32 %v1382_v47, %v1025_v13  ;;  %v11176_v63 = vadd.f32 %v9092_v14, %v1478_v48  ;;  %v3467_v14 = vld [vmem:[#allocation2 + $0x1b1] sm:$0xff]  ;;  %v3468_v48 = vld [vmem:[#allocation2 + $0x1c9] sm:$0xff] }
 0x15f   : > { %13546 = vst [vmem:[#allocation25_spill] sm:$0xff] %v11172_v41  ;;  %v9045_v62 = vpop.f32.mrf.mxu0  ;;  %9344 = vmatmul.mubr.msk.f32.gmra.mxu0 %vm311_vm1, %v3463_v12  ;;  %v4018_v41 = vld [vmem:[#allocation3 + $0x7] sm:$0xff] }
 0x160   : > { %13547 = vst [vmem:[#allocation26_spill] sm:$0xff] %v11174_v54  ;;  %v9095_v42 = vpop.f32.mrf.mxu1  ;;  %v1480_v45 = vadd.f32 %v9045_v62, %v10978_v50  ;;  %9346 = vmatprep.mubr.msk.f32.mxu0 %vm311_vm1, %v3464_v40 }
 0x161   : > { %v11181_v58 = vpop.f32.mrf.mxu0 }
 0x162   : > { %v11183_v60 = vpop.f32.mrf.mxu1  ;;  %v11185_v2 = vadd.f32 %v9095_v42, %v1480_v45  ;;  %v3469_v42 = vld [vmem:[#allocation2 + $0x1d1] sm:$0xff] }
 0x163   : > { %13548 = vst [vmem:[#allocation27_spill] sm:$0xff] %v11183_v60  ;;  %v9048_v1 = vpop.f32.mrf.mxu0  ;;  %9347 = vmatmul.mubr.msk.f32.gmra.mxu0 %vm311_vm1, %v3465_v61  ;;  %v3470_v61 = vld [vmem:[#allocation2 + $0x1e9] sm:$0xff] }
 0x164   : > { %v9098_v44 = vpop.f32.mrf.mxu1  ;;  %v1482_v49 = vadd.f32 %v9048_v1, %v10992_v56  ;;  %9349 = vmatprep.mubr.msk.f32.mxu0 %vm311_vm1, %v3466_v3  ;;  %v4051_v60 = vld [vmem:[#allocation3 + $0x8] sm:$0xff] }
 0x165   : > { %v11190_v50 = vpop.f32.mrf.mxu0  ;;  %9366 = vmatprep.mubr.msk.f32.mxu1 %vm311_vm1, %v4051_v60 }
 0x166   : > { %v11192_v13 = vpop.f32.mrf.mxu1  ;;  %v11194_v12 = vadd.f32 %v9098_v44, %v1482_v49 }
 0x167   : > { %13549 = vst [vmem:[#allocation28_spill] sm:$0xff] %v11192_v13  ;;  %v9051_v47 = vpop.f32.mrf.mxu0  ;;  %9350 = vmatmul.mubr.msk.f32.gmra.mxu0 %vm311_vm1, %v3467_v14  ;;  %v3471_v14 = vld [vmem:[#allocation2 + $0x1f1] sm:$0xff] }
 0x168   : > { %v9101_v40 = vpop.f32.mrf.mxu1  ;;  %v1484_v62 = vadd.f32 %v9051_v47, %v11006_v24  ;;  %9352 = vmatprep.mubr.msk.f32.mxu0 %vm311_vm1, %v3468_v48 }
 0x169   : > { %v11199_v56 = vpop.f32.mrf.mxu0 }
 0x16a   : > { %v11201_v45 = vpop.f32.mrf.mxu1  ;;  %v11203_v3 = vadd.f32 %v9101_v40, %v1484_v62 }
 0x16b   : > { %13550 = vst [vmem:[#allocation29_spill] sm:$0xff] %v11201_v45  ;;  %v9054_v1 = vpop.f32.mrf.mxu0  ;;  %9353 = vmatmul.mubr.msk.f32.gmra.mxu0 %vm311_vm1, %v3469_v42 }
 0x16c   : > { %v9104_v44 = vpop.f32.mrf.mxu1  ;;  %v1486_v49 = vadd.f32 %v9054_v1, %v11020_v20  ;;  %9355 = vmatprep.mubr.msk.f32.mxu0 %vm311_vm1, %v3470_v61  ;;  %v3474_v61 = vld [vmem:[#allocation2 + $0x229] sm:$0xff] }
 0x16d   : > { %v11208_v24 = vpop.f32.mrf.mxu0 }
 0x16e   : > { %v11210_v48 = vpop.f32.mrf.mxu1  ;;  %v11212_v47 = vadd.f32 %v9104_v44, %v1486_v49 }
 0x16f   : > { %13551 = vst [vmem:[#allocation30_spill] sm:$0xff] %v11210_v48  ;;  %v9057_v13 = vpop.f32.mrf.mxu0  ;;  %9356 = vmatmul.mubr.msk.f32.gmra.mxu0 %vm311_vm1, %v3471_v14 }
 0x170   : > { %v9107_v40 = vpop.f32.mrf.mxu1  ;;  %v1488_v62 = vadd.f32 %v9057_v13, %v11034_v16  ;;  %9358 = vmatprep.mubr.msk.f32.mxu0 %vm311_vm1, %v10840_v25  ;;  %v3475_v16 = vld [vmem:[#allocation2 + $0x231] sm:$0xff] }
 0x171   : > { %v11218_v42 = vpop.f32.mrf.mxu0 }
 0x172   : > { %13552 = vst [vmem:[#allocation31_spill] sm:$0xff] %v11218_v42  ;;  %v11220_v20 = vpop.f32.mrf.mxu1  ;;  %v11222_v1 = vadd.f32 %v9107_v40, %v1488_v62  ;;  %v4050_v42 = vld [vmem:[%s13350_s2] sm:$0xf] }
 0x173   : > { %13553 = vst [vmem:[#allocation40_spill] sm:$0xff] %v11220_v20  ;;  %v9060_v45 = vpop.f32.mrf.mxu0  ;;  %9359 = vmatmul.mubr.msk.f32.gmra.mxu0 %vm311_vm1, %v10852_v27  ;;  %9414 = vmatprep.subr.msk.mxu0 %vm550_vm0, %v4050_v42 }
 0x174   : > { %v9110_v44 = vpop.f32.mrf.mxu1  ;;  %v1490_v49 = vadd.f32 %v9060_v45, %v11048_v8  ;;  %9361 = vmatprep.mubr.msk.f32.mxu0 %vm311_vm1, %v3474_v61  ;;  %9415 = vmatpush3.msk.msra.mxu0 %vm550_vm0, %v4050_v42 }
 0x175   : > { %v11228_v13 = vpop.f32.mrf.mxu0 }
 0x176   : > { %13554 = vst [vmem:[#allocation43_spill] sm:$0xff] %v11228_v13  ;;  %v11230_v25 = vpop.f32.mrf.mxu1  ;;  %v11232_v14 = vadd.f32 %v9110_v44, %v1490_v49 }
 0x177   : > { %13555 = vst [vmem:[#allocation44_spill] sm:$0xff] %v11230_v25  ;;  %v9063_v20 = vpop.f32.mrf.mxu0  ;;  %9362 = vmatmul.mubr.msk.f32.gmra.mxu0 %vm311_vm1, %v3475_v16 }
 0x178   : > { %v9113_v40 = vpop.f32.mrf.mxu1  ;;  %v1492_v62 = vadd.f32 %v9063_v20, %v11058_v19  ;;  %9416 = vmatprep.mubr.msk.f32.mxu0 %vm311_vm1, %v4018_v41 }
 0x179   : > { %v11236_v48 = vpop.f32.mrf.mxu0 }
 0x17a   : > { %13556 = vst [vmem:[#allocation45_spill] sm:$0xff] %v11236_v48  ;;  %v11238_v27 = vpop.f32.mrf.mxu1  ;;  %v11240_v8 = vadd.f32 %v9113_v40, %v1492_v62 }
 0x17b   : > { %13557 = vst [vmem:[#allocation46_spill] sm:$0xff] %v11238_v27  ;;  %v9118_v45 = vpop.f32.mrf.mxu0 }
 0x17c   : > { %v11242_v61 = vpop.f32.mrf.mxu1  ;;  %v11245_v13 = vadd.f32 %v9118_v45, %v11076_v31 }
 0x17d   : > { %v11247_v44 = vpop.f32.mrf.mxu0 }
 0x17e   : > { %v11249_v49 = vpop.f32.mrf.mxu1 }
 0x17f   : > { %v9121_v16 = vpop.f32.mrf.mxu0 }
 0x180   : > { %v11251_v25 = vpop.f32.mrf.mxu1  ;;  %v11254_v19 = vadd.f32 %v9121_v16, %v11088_v57 }
 0x181   : > { %v11256_v20 = vpop.f32.mrf.mxu0 }
 0x182   : > { %v11258_v40 = vpop.f32.mrf.mxu1 }
 0x183   : > { %v9124_v62 = vpop.f32.mrf.mxu0 }
 0x184   : > { %v11260_v27 = vpop.f32.mrf.mxu1  ;;  %v11263_v31 = vadd.f32 %v9124_v62, %v11100_v30  ;;  %v4052_v30 = vld [vmem:[#allocation3 + $0x10] sm:$0xff] }
 0x185   : > { %13558 = vst [vmem:[#allocation47_spill] sm:$0xff] %v11260_v27  ;;  %v11265_v45 = vpop.f32.mrf.mxu0  ;;  %v4019_v62 = vld [vmem:[#allocation3 + $0xf] sm:$0xff]  ;;  %9367 = vmatmul.mubr.msk.f32.vlgmr.msra.gmra.mxu1 %vm311_vm1, %v4052_v30 }
 0x186   : > { %13559 = vst [vmem:[#allocation48_spill] sm:$0xff] %v11263_v31  ;;  %v11267_v48 = vpop.f32.mrf.mxu1  ;;  %9417 = vmatmul.mubr.msk.f32.vlgmr.msra.gmra.mxu0 %vm311_vm1, %v4019_v62  ;;  %v8076_v62 = vld [vmem:[%s13350_s2 + $0x8] sm:$0xf] }
 0x187   : > { %13560 = vst [vmem:[#allocation49_spill] sm:$0xff] %v11267_v48  ;;  %v9127_v57 = vpop.f32.mrf.mxu0  ;;  %9464 = vmatprep.subr.msk.mxu1 %vm550_vm0, %v8076_v62 }
 0x188   : > { %v11272_v16 = vpop.f32.mrf.mxu1  ;;  %v11276_v27 = vadd.f32 %v9127_v57, %v11112_v34  ;;  %9465 = vmatpush3.msk.msra.mxu1 %vm550_vm0, %v8076_v62 }
 0x189   : > { %13561 = vst [vmem:[#allocation50_spill] sm:$0xff] %v11272_v16  ;;  %v11280_v48 = vpop.f32.mrf.mxu0 }
 0x18a   : > { %13562 = vst [vmem:[#allocation53_spill] sm:$0xff] %v11276_v27  ;;  %v11282_v31 = vpop.f32.mrf.mxu1 }
 0x18b   : > { %13563 = vst [vmem:[#allocation54_spill] sm:$0xff] %v11282_v31  ;;  %v9130_v16 = vpop.f32.mrf.mxu0 }
 0x18c   : > { %v11287_v54 = vpop.f32.mrf.mxu1  ;;  %v11290_v34 = vadd.f32 %v9130_v16, %v11129_v53 }
 0x18d   : > { %13564 = vst [vmem:[#allocation55_spill] sm:$0xff] %v11287_v54  ;;  %v11292_v60 = vpop.f32.mrf.mxu0 }
 0x18e   : > { %13565 = vst [vmem:[#allocation56_spill] sm:$0xff] %v11290_v34  ;;  %v11294_v42 = vpop.f32.mrf.mxu1 }
 0x18f   : > { %13566 = vst [vmem:[#allocation57_spill] sm:$0xff] %v11294_v42  ;;  %v9133_v57 = vpop.f32.mrf.mxu0 }
 0x190   : > { %v11296_v27 = vpop.f32.mrf.mxu1  ;;  %v11299_v31 = vadd.f32 %v9133_v57, %v11141_v5 }
 0x191   : > { %13567 = vst [vmem:[#allocation58_spill] sm:$0xff] %v11296_v27  ;;  %v11301_v41 = vpop.f32.mrf.mxu0 }
 0x192   : > { %13568 = vst [vmem:[#allocation59_spill] sm:$0xff] %v11299_v31  ;;  %13569 = vst [vmem:[#allocation60_spill] sm:$0xff] %v11301_v41  ;;  %v11303_v30 = vpop.f32.mrf.mxu1 }
 0x193   : > { %13570 = vst [vmem:[#allocation61_spill] sm:$0xff] %v11303_v30  ;;  %v9136_v53 = vpop.f32.mrf.mxu0 }
 0x194   : > { %v11308_v16 = vpop.f32.mrf.mxu1  ;;  %v11312_v42 = vadd.f32 %v9136_v53, %v11153_v51 }
 0x195   : > { %13571 = vst [vmem:[#allocation64_spill] sm:$0xff] %v11308_v16  ;;  %v11315_v5 = vpop.f32.mrf.mxu0 }
 0x196   : > { %13572 = vst [vmem:[#allocation65_spill] sm:$0xff] %v11312_v42  ;;  %13573 = vst [vmem:[#allocation66_spill] sm:$0xff] %v11315_v5  ;;  %v11317_v57 = vpop.f32.mrf.mxu1 }
 0x197   : > { %13574 = vst [vmem:[#allocation67_spill] sm:$0xff] %v11317_v57  ;;  %v9139_v27 = vpop.f32.mrf.mxu0 }
 0x198   : > { %v11319_v30 = vpop.f32.mrf.mxu1  ;;  %v11322_v31 = vadd.f32 %v9139_v27, %v11165_v36 }
 0x199   : > { %13575 = vst [vmem:[#allocation68_spill] sm:$0xff] %v11319_v30  ;;  %v11324_v41 = vpop.f32.mrf.mxu0 }
 0x19a   : > { %13576 = vst [vmem:[#allocation69_spill] sm:$0xff] %v11322_v31  ;;  %13577 = vst [vmem:[#allocation70_spill] sm:$0xff] %v11324_v41  ;;  %v11326_v16 = vpop.f32.mrf.mxu1 }
 0x19b   : > { %13578 = vst [vmem:[#allocation71_spill] sm:$0xff] %v11326_v16  ;;  %v9142_v54 = vpop.f32.mrf.mxu0 }
 0x19c   : > { %v11328_v34 = vpop.f32.mrf.mxu1  ;;  %v11331_v51 = vadd.f32 %v9142_v54, %v11176_v63 }
 0x19d   : > { %13579 = vst [vmem:[#allocation72_spill] sm:$0xff] %v11328_v34  ;;  %v11333_v62 = vpop.f32.mrf.mxu0 }
 0x19e   : > { %13580 = vst [vmem:[#allocation73_spill] sm:$0xff] %v11331_v51  ;;  %13581 = vst [vmem:[#allocation74_spill] sm:$0xff] %v11333_v62  ;;  %v11335_v53 = vpop.f32.mrf.mxu1 }
 0x19f   : > { %13582 = vst [vmem:[#allocation75_spill] sm:$0xff] %v11335_v53  ;;  %v9145_v57 = vpop.f32.mrf.mxu0 }
 0x1a0   : > { %v11337_v42 = vpop.f32.mrf.mxu1  ;;  %v11340_v36 = vadd.f32 %v9145_v57, %v11185_v2 }
 0x1a1   : > { %13583 = vst [vmem:[#allocation76_spill] sm:$0xff] %v11337_v42  ;;  %v11342_v27 = vpop.f32.mrf.mxu0 }
 0x1a2   : > { %13584 = vst [vmem:[#allocation77_spill] sm:$0xff] %v11340_v36  ;;  %13585 = vst [vmem:[#allocation78_spill] sm:$0xff] %v11342_v27  ;;  %v11344_v30 = vpop.f32.mrf.mxu1 }
 0x1a3   : > { %13586 = vst [vmem:[#allocation79_spill] sm:$0xff] %v11344_v30  ;;  %v9148_v16 = vpop.f32.mrf.mxu0 }
 0x1a4   : > { %v11346_v31 = vpop.f32.mrf.mxu1  ;;  %v11349_v54 = vadd.f32 %v9148_v16, %v11194_v12 }
 0x1a5   : > { %13587 = vst [vmem:[#allocation80_spill] sm:$0xff] %v11346_v31  ;;  %v11351_v63 = vpop.f32.mrf.mxu0 }
 0x1a6   : > { %13588 = vst [vmem:[#allocation81_spill] sm:$0xff] %v11349_v54  ;;  %13589 = vst [vmem:[#allocation82_spill] sm:$0xff] %v11351_v63  ;;  %v11353_v34 = vpop.f32.mrf.mxu1 }
 0x1a7   : > { %13590 = vst [vmem:[#allocation83_spill] sm:$0xff] %v11353_v34  ;;  %v9151_v53 = vpop.f32.mrf.mxu0 }
 0x1a8   : > { %v11355_v51 = vpop.f32.mrf.mxu1  ;;  %v11358_v2 = vadd.f32 %v9151_v53, %v11203_v3 }
 0x1a9   : > { %13591 = vst [vmem:[#allocation84_spill] sm:$0xff] %v11355_v51  ;;  %v11360_v57 = vpop.f32.mrf.mxu0 }
 0x1aa   : > { %13592 = vst [vmem:[#allocation85_spill] sm:$0xff] %v11358_v2  ;;  %13593 = vst [vmem:[#allocation86_spill] sm:$0xff] %v11360_v57  ;;  %v11362_v42 = vpop.f32.mrf.mxu1 }
 0x1ab   : > { %13594 = vst [vmem:[#allocation87_spill] sm:$0xff] %v11362_v42  ;;  %v9154_v30 = vpop.f32.mrf.mxu0 }
 0x1ac   : > { %v11364_v36 = vpop.f32.mrf.mxu1  ;;  %v11367_v12 = vadd.f32 %v9154_v30, %v11212_v47 }
 0x1ad   : > { %13595 = vst [vmem:[#allocation88_spill] sm:$0xff] %v11364_v36  ;;  %v11369_v16 = vpop.f32.mrf.mxu0 }
 0x1ae   : > { %13596 = vst [vmem:[#allocation89_spill] sm:$0xff] %v11367_v12  ;;  %13597 = vst [vmem:[#allocation90_spill] sm:$0xff] %v11369_v16  ;;  %v11371_v31 = vpop.f32.mrf.mxu1 }
 0x1af   : > { %13598 = vst [vmem:[#allocation91_spill] sm:$0xff] %v11371_v31  ;;  %v9157_v34 = vpop.f32.mrf.mxu0 }
 0x1b0   : > { %v11373_v54 = vpop.f32.mrf.mxu1  ;;  %v11376_v3 = vadd.f32 %v9157_v34, %v11222_v1 }
 0x1b1   : > { %13599 = vst [vmem:[#allocation92_spill] sm:$0xff] %v11373_v54  ;;  %v11378_v53 = vpop.f32.mrf.mxu0 }
 0x1b2   : > { %13600 = vst [vmem:[#allocation93_spill] sm:$0xff] %v11376_v3  ;;  %13601 = vst [vmem:[#allocation94_spill] sm:$0xff] %v11378_v53  ;;  %v11380_v51 = vpop.f32.mrf.mxu1  ;;  %v8144_v3 = vld [vmem:[%s13350_s2 + $0x10] sm:$0xf] }
 0x1b3   : > { %13602 = vst [vmem:[#allocation95_spill] sm:$0xff] %v11380_v51  ;;  %v9160_v42 = vpop.f32.mrf.mxu0  ;;  %9564 = vmatprep.subr.msk.mxu1 %vm550_vm0, %v8144_v3 }
 0x1b4   : > { %v11382_v2 = vpop.f32.mrf.mxu1  ;;  %v11385_v47 = vadd.f32 %v9160_v42, %v11232_v14 }
 0x1b5   : > { %13603 = vst [vmem:[#allocation96_spill] sm:$0xff] %v11382_v2  ;;  %v11387_v30 = vpop.f32.mrf.mxu0 }
 0x1b6   : > { %13604 = vst [vmem:[#allocation97_spill] sm:$0xff] %v11385_v47  ;;  %13605 = vst [vmem:[#allocation98_spill] sm:$0xff] %v11387_v30  ;;  %v11389_v36 = vpop.f32.mrf.mxu1 }
 0x1b7   : > { %13606 = vst [vmem:[#allocation99_spill] sm:$0xff] %v11389_v36  ;;  %v9163_v31 = vpop.f32.mrf.mxu0 }
 0x1b8   : > { %v11391_v12 = vpop.f32.mrf.mxu1  ;;  %v11394_v1 = vadd.f32 %v9163_v31, %v11240_v8 }
 0x1b9   : > { %13607 = vst [vmem:[#allocation100_spill] sm:$0xff] %v11391_v12  ;;  %v11396_v34 = vpop.f32.mrf.mxu0 }
 0x1ba   : > { %13608 = vst [vmem:[#allocation101_spill] sm:$0xff] %v11394_v1  ;;  %13609 = vst [vmem:[#allocation102_spill] sm:$0xff] %v11396_v34  ;;  %v11398_v54 = vpop.f32.mrf.mxu1  ;;  %v8110_v34 = vld [vmem:[%s13350_s2 + $0xc] sm:$0xf] }
 0x1bb   : > { %13610 = vst [vmem:[#allocation103_spill] sm:$0xff] %v11398_v54  ;;  %v11400_v51 = vpop.f32.mrf.mxu0  ;;  %9514 = vmatprep.subr.msk.mxu0 %vm550_vm0, %v8110_v34 }
 0x1bc   : > { %v11402_v2 = vpop.f32.mrf.mxu1  ;;  %9515 = vmatpush3.msk.msra.mxu0 %vm550_vm0, %v8110_v34 }
 0x1bd   : > { %v11404_v14 = vpop.f32.mrf.mxu0 }
 0x1be   : > { %v11406_v42 = vpop.f32.mrf.mxu1 }
 0x1bf   : > { %v11408_v47 = vpop.f32.mrf.mxu0 }
 0x1c0   : > { %v11410_v36 = vpop.f32.mrf.mxu1 }
 0x1c1   : > { %v11412_v12 = vpop.f32.mrf.mxu0 }
 0x1c2   : > { %v11416_v31 = vpop.f32.mrf.mxu1 }
 0x1c3   : > { %v11414_v8 = vpop.f32.mrf.mxu0 }
 0x1c4   : > { %v11425_v30 = vpop.f32.mrf.mxu1 }
 0x1c5   : > { %v11418_v1 = vpop.f32.mrf.mxu0 }
 0x1c6   : > { %v11437_v57 = vpop.f32.mrf.mxu1 }
 0x1c7   : > { %v11420_v54 = vpop.f32.mrf.mxu0  ;;  %13614 = vst [vmem:[#allocation107_spill] sm:$0xff] %v11437_v57 }
 0x1c8   : > { %13611 = vst [vmem:[#allocation104_spill] sm:$0xff] %v11420_v54  ;;  %v11443_v62 = vpop.f32.mrf.mxu1 }
 0x1c9   : > { %v11431_v53 = vpop.f32.mrf.mxu0  ;;  %13617 = vst [vmem:[#allocation110_spill] sm:$0xff] %v11443_v62 }
 0x1ca   : > { %13612 = vst [vmem:[#allocation105_spill] sm:$0xff] %v11431_v53  ;;  %v11449_v54 = vpop.f32.mrf.mxu1 }
 0x1cb   : > { %v11435_v16 = vpop.f32.mrf.mxu0  ;;  %13620 = vst [vmem:[#allocation113_spill] sm:$0xff] %v11449_v54 }
 0x1cc   : > { %13613 = vst [vmem:[#allocation106_spill] sm:$0xff] %v11435_v16  ;;  %v11455_v3 = vpop.f32.mrf.mxu1 }
 0x1cd   : > { %v11439_v63 = vpop.f32.mrf.mxu0  ;;  %13623 = vst [vmem:[#allocation116_spill] sm:$0xff] %v11455_v3 }
 0x1ce   : > { %13615 = vst [vmem:[#allocation108_spill] sm:$0xff] %v11439_v63  ;;  %v11461_v63 = vpop.f32.mrf.mxu1 }
 0x1cf   : > { %v11441_v27 = vpop.f32.mrf.mxu0  ;;  %13626 = vst [vmem:[#allocation119_spill] sm:$0xff] %v11461_v63 }
 0x1d0   : > { %13616 = vst [vmem:[#allocation109_spill] sm:$0xff] %v11441_v27 }
 0x1d1   : > { %v11445_v41 = vpop.f32.mrf.mxu0 }
 0x1d2   : > { %13618 = vst [vmem:[#allocation111_spill] sm:$0xff] %v11445_v41  ;;  %v11467_v41 = vpop.f32.mrf.mxu1 }
 0x1d3   : > { %v11447_v5 = vpop.f32.mrf.mxu0  ;;  %13629 = vst [vmem:[#allocation122_spill] sm:$0xff] %v11467_v41 }
 0x1d4   : > { %13619 = vst [vmem:[#allocation112_spill] sm:$0xff] %v11447_v5 }
 0x1d5   : > { %v11451_v53 = vpop.f32.mrf.mxu0 }
 0x1d6   : > { %13621 = vst [vmem:[#allocation114_spill] sm:$0xff] %v11451_v53  ;;  %v11473_v53 = vpop.f32.mrf.mxu1 }
 0x1d7   : > { %v11453_v34 = vpop.f32.mrf.mxu0 }
 0x1d8   : > { %13622 = vst [vmem:[#allocation115_spill] sm:$0xff] %v11453_v34 }
 0x1d9   : > { %v11457_v16 = vpop.f32.mrf.mxu0 }
 0x1da   : > { %13624 = vst [vmem:[#allocation117_spill] sm:$0xff] %v11457_v16  ;;  %v11479_v16 = vpop.f32.mrf.mxu1 }
 0x1db   : > { %v11459_v57 = vpop.f32.mrf.mxu0  ;;  %13634 = vst [vmem:[#allocation127_spill] sm:$0xff] %v11479_v16 }
 0x1dc   : > { %13625 = vst [vmem:[#allocation118_spill] sm:$0xff] %v11459_v57 }
 0x1dd   : > { %v11463_v27 = vpop.f32.mrf.mxu0 }
 0x1de   : > { %13627 = vst [vmem:[#allocation120_spill] sm:$0xff] %v11463_v27  ;;  %v11485_v27 = vpop.f32.mrf.mxu1 }
 0x1df   : > { %v11465_v62 = vpop.f32.mrf.mxu0 }
 0x1e0   : > { %13628 = vst [vmem:[#allocation121_spill] sm:$0xff] %v11465_v62 }
 0x1e1   : > { %v11469_v5 = vpop.f32.mrf.mxu0 }
 0x1e2   : > { %13630 = vst [vmem:[#allocation123_spill] sm:$0xff] %v11469_v5  ;;  %v11493_v5 = vpop.f32.mrf.mxu1 }
 0x1e3   : > { %v11471_v54 = vpop.f32.mrf.mxu0 }
 0x1e4   : > { %13631 = vst [vmem:[#allocation124_spill] sm:$0xff] %v11471_v54  ;;  %v1851_v54 = vadd.f32 %v11071_v7, %v11074_v9  ;;  %v2632_v7 = vadd.f32 %v11242_v61, %v11245_v13  ;;  %v11508_v9 = vpop.f32.mrf.mxu1 }
 0x1e5   : > { %v11475_v34 = vpop.f32.mrf.mxu0 }
 0x1e6   : > { %13632 = vst [vmem:[#allocation125_spill] sm:$0xff] %v11475_v34 }
 0x1e7   : > { %v11477_v3 = vpop.f32.mrf.mxu0 }
 0x1e8   : > { %13633 = vst [vmem:[#allocation126_spill] sm:$0xff] %v11477_v3  ;;  %v2241_v3 = vadd.f32 %v11247_v44, %v1851_v54  ;;  %v13640_v44 = vld [vmem:[#allocation62_spill] sm:$0xff] }
 0x1e9   : > { %v11481_v57 = vpop.f32.mrf.mxu0  ;;  %v1065_v54 = vadd.f32 %v13640_v44, %v11026_v18  ;;  %v1857_v18 = vadd.f32 %v11107_v39, %v11110_v11  ;;  %v11548_v39 = vadd.f32 %v11148_v59, %v11151_v32  ;;  %v11552_v11 = vadd.f32 %v11160_v43, %v11163_v6  ;;  %v13643_v59 = vld [vmem:[#allocation26_spill] sm:$0xff]  ;;  %v13644_v32 = vld [vmem:[#allocation25_spill] sm:$0xff]  ;;  %v13645_v43 = vld [vmem:[#allocation27_spill] sm:$0xff] }
 0x1ea   : > { %13635 = vst [vmem:[#allocation128_spill] sm:$0xff] %v11481_v57  ;;  %v1045_v57 = vadd.f32 %v11000_v4, %v10998_v26  ;;  %v13642_v4 = vld [vmem:[#allocation24_spill] sm:$0xff] }
 0x1eb   : > { %v11483_v63 = vpop.f32.mrf.mxu0 }
 0x1ec   : > { %13636 = vst [vmem:[#allocation129_spill] sm:$0xff] %v11483_v63  ;;  %v1035_v63 = vadd.f32 %v10986_v15, %v10984_v28  ;;  %v1085_v15 = vadd.f32 %v11054_v46, %v11052_v35  ;;  %v1481_v61 = vadd.f32 %v11190_v50, %v1045_v57 }
 0x1ed   : > { %v11487_v62 = vpop.f32.mrf.mxu0 }
 0x1ee   : > { %v1479_v35 = vadd.f32 %v11181_v58, %v1035_v63 }
 0x1ef   : > { %v11489_v41 = vpop.f32.mrf.mxu0 }
 0x1f0   : > { %13637 = vst [vmem:[#allocation130_spill] sm:$0xff] %v11489_v41  ;;  %v1853_v41 = vadd.f32 %v11083_v33, %v11086_v55  ;;  %v11522_v33 = vadd.f32 %v13642_v4, %v11062_v21  ;;  %v2631_v55 = vadd.f32 %v11249_v49, %v2241_v3  ;;  %v11538_v21 = vadd.f32 %v11136_v23, %v11139_v0  ;;  %v11593_v4 = vld [vmem:[%s13352_s4] ss:$0 sm:$0xff] }
 0x1f1   : > { %v11495_v34 = vpop.f32.mrf.mxu0  ;;  %v2634_v49 = vadd.f32 %v11251_v25, %v11254_v19  ;;  %v1485_v0 = vadd.f32 %v11208_v24, %v1065_v54  ;;  %v11564_v19 = vadd.f32 %v13644_v32, %v13643_v59  ;;  %v11567_v6 = vadd.f32 %v13645_v43, %v1479_v35  ;;  %v11575_v24 = vld [vmem:[%s13351_s3] ss:$0 sm:$0xff]  ;;  %v13657_v59 = vld [vmem:[#allocation54_spill] sm:$0xff] }
 0x1f2   : > { %13638 = vst [vmem:[#allocation131_spill] sm:$0xff] %v11495_v34  ;;  %v1055_v34 = vadd.f32 %v11014_v17, %v11012_v22  ;;  %v2243_v13 = vadd.f32 %v11256_v20, %v1853_v41  ;;  %v3023_v22 = vadd.f32 %v11400_v51, %v2632_v7  ;;  %v1855_v17 = vadd.f32 %v11095_v37, %v11098_v29  ;;  %v11544_v29 = vpop.f32.mrf.mxu1  ;;  %v13648_v41 = vld [vmem:[#allocation47_spill] sm:$0xff]  ;;  %v13651_v7 = vld [vmem:[#allocation49_spill] sm:$0xff]  ;;  %v13653_v35 = vld [vmem:[#allocation40_spill] sm:$0xff] }
 0x1f3   : > { %v11498_v16 = vpop.f32.mrf.mxu0  ;;  %v3022_v37 = vadd.f32 %v11404_v14, %v2631_v55  ;;  %v3025_v25 = vadd.f32 %v11408_v47, %v2634_v49  ;;  %v2247_v54 = vadd.f32 %v11280_v48, %v1857_v18  ;;  %v13652_v55 = vld [vmem:[#allocation30_spill] sm:$0xff]  ;;  %v13654_v48 = vld [vmem:[#allocation43_spill] sm:$0xff] }
 0x1f4   : > { %13639 = vst [vmem:[#allocation132_spill] sm:$0xff] %v11498_v16  ;;  %v13641_v16 = vld [vmem:[#allocation63_spill] sm:$0xff]  ;;  %v2633_v58 = vadd.f32 %v11258_v40, %v2243_v13  ;;  %v3413_v50 = vadd.f32 %v11402_v2, %v3023_v22  ;;  %v13649_v40 = vld [vmem:[#allocation28_spill] sm:$0xff]  ;;  %v11582_v47 = vpop.f32.mrf.mxu1  ;;  %v1489_v18 = vadd.f32 %v13654_v48, %v1085_v15  ;;  %v13656_v49 = vld [vmem:[#allocation50_spill] sm:$0xff] }
 0x1f5   : > { %v1075_v28 = vadd.f32 %v13641_v16, %v11040_v10  ;;  %v11518_v26 = vpop.f32.mrf.mxu0  ;;  %v1859_v10 = vadd.f32 %v11124_v38, %v11127_v52  ;;  %v1483_v38 = vadd.f32 %v11199_v56, %v1055_v34  ;;  %v2245_v52 = vadd.f32 %v11265_v45, %v1855_v17  ;;  %v13646_v56 = vld [vmem:[#allocation31_spill] sm:$0xff]  ;;  %v13647_v45 = vld [vmem:[#allocation48_spill] sm:$0xff]  ;;  %v13650_v34 = vld [vmem:[#allocation29_spill] sm:$0xff] }
 0x1f6   : > { %v2636_v51 = vadd.f32 %v13648_v41, %v13647_v45  ;;  %v11578_v2 = vadd.f32 %v13649_v40, %v1481_v61  ;;  %v3412_v57 = vadd.f32 %v11406_v42, %v3022_v37  ;;  %v3024_v16 = vadd.f32 %v11412_v12, %v2633_v58  ;;  %v13666_v48 = vld [vmem:[#allocation110_spill] sm:$0xff] }
 0x1f7   : > { %v11534_v46 = vpop.f32.mrf.mxu0  ;;  %v1487_v20 = vadd.f32 %v13646_v56, %v1075_v28  ;;  %v11585_v3 = vadd.f32 %v13650_v34, %v1483_v38  ;;  %v2635_v44 = vadd.f32 %v13651_v7, %v2245_v52  ;;  %v11596_v12 = vadd.f32 %v13652_v55, %v1485_v0  ;;  %v11608_v0 = vpop.f32.mrf.mxu1  ;;  %v13658_v56 = vld [vmem:[#allocation104_spill] sm:$0xff]  ;;  %v13662_v34 = vld [vmem:[#allocation107_spill] sm:$0xff] }
 0x1f8   : > { %v3027_v28 = vadd.f32 %v11414_v8, %v2636_v51  ;;  %v3415_v13 = vadd.f32 %v11410_v36, %v3025_v25  ;;  %v13655_v8 = vld [vmem:[#allocation53_spill] sm:$0xff]  ;;  %v3414_v58 = vadd.f32 %v11416_v31, %v3024_v16  ;;  %v2637_v32 = vadd.f32 %v13657_v59, %v2247_v54  ;;  %v13661_v16 = vld [vmem:[#allocation55_spill] sm:$0xff] }
 0x1f9   : > { %v11556_v23 = vpop.f32.mrf.mxu0  ;;  %v11601_v61 = vadd.f32 %v13653_v35, %v1487_v20  ;;  %v2638_v37 = vadd.f32 %v13656_v49, %v13655_v8  ;;  %v3026_v38 = vadd.f32 %v11418_v1, %v2635_v44  ;;  %v2249_v43 = vadd.f32 %v11292_v60, %v1859_v10  ;;  %v13663_v60 = vld [vmem:[#allocation105_spill] sm:$0xff]  ;;  %v11625_v44 = vpop.f32.mrf.mxu1  ;;  %v13667_v8 = vld [vmem:[#allocation106_spill] sm:$0xff]  ;;  %v13669_v59 = vld [vmem:[#allocation59_spill] sm:$0xff] }
 0x1fa   : > { %v3417_v15 = vadd.f32 %v11425_v30, %v3027_v28  ;;  %v3028_v10 = vadd.f32 %v13663_v60, %v2637_v32  ;;  %v13670_v32 = vld [vmem:[#allocation58_spill] sm:$0xff] }
 0x1fb   : > { %v9318_v63 = vpop.f32.mrf.mxu0  ;;  %v3029_v20 = vadd.f32 %v13658_v56, %v2638_v37  ;;  %v3416_v7 = vadd.f32 %v13662_v34, %v3026_v38  ;;  %v13672_v56 = vld [vmem:[#allocation108_spill] sm:$0xff] }
 0x1fc   : > { %v3803_v14 = vadd.f32 %v9318_v63, %v3413_v50  ;;  %v13659_v63 = vld [vmem:[#allocation44_spill] sm:$0xff] }
 0x1fd   : > { %v3643_v42 = vpop.f32.mrf.mxu0  ;;  %v11619_v40 = vadd.f32 %v13659_v63, %v1489_v18  ;;  %v3419_v18 = vadd.f32 %v13666_v48, %v3029_v20 }
 0x1fe   : > { %v3842_v22 = vmul.f32 %v11575_v24, %v3803_v14  ;;  %v3802_v17 = vadd.f32 %v3643_v42, %v3412_v57  ;;  %v13660_v57 = vld [vmem:[#allocation56_spill] sm:$0xff] }
 0x1ff   : > { %v9321_v52 = vpop.f32.mrf.mxu0  ;;  %v2640_v14 = vadd.f32 %v13661_v16, %v13660_v57  ;;  %v13673_v57 = vld [vmem:[#allocation61_spill] sm:$0xff] }
 0x200   : > { %v3881_v36 = vadd.f32 %v11593_v4, %v3842_v22  ;;  %v3841_v50 = vmul.f32 %v11575_v24, %v3802_v17  ;;  %v3805_v25 = vadd.f32 %v9321_v52, %v3415_v13  ;;  %v13664_v13 = vld [vmem:[#allocation57_spill] sm:$0xff]  ;;  %v13665_v17 = vld [vmem:[#allocation60_spill] sm:$0xff] }
 0x201   : > { %v3653_v45 = vpop.f32.mrf.mxu0  ;;  %v2639_v22 = vadd.f32 %v13664_v13, %v2249_v43  ;;  %v2251_v35 = vadd.f32 %v13665_v17, %v11538_v21  ;;  %v3031_v49 = vadd.f32 %v13667_v8, %v2640_v14  ;;  %v2642_v43 = vadd.f32 %v13670_v32, %v13669_v59  ;;  %v13671_v21 = vld [vmem:[#allocation113_spill] sm:$0xff]  ;;  %v13674_v14 = vld [vmem:[#allocation66_spill] sm:$0xff] }
 0x202   : > { %v3913_v1 = vmax.f32 %v3881_v36, 0.0  ;;  %v3880_v41 = vadd.f32 %v11593_v4, %v3841_v50  ;;  %v3844_v31 = vmul.f32 %v11575_v24, %v3805_v25  ;;  %v3804_v51 = vadd.f32 %v3653_v45, %v3414_v58  ;;  %v13668_v50 = vld [vmem:[#allocation45_spill] sm:$0xff] }
 0x203   : > { %v9324_v30 = vpop.f32.mrf.mxu0  ;;  %v1491_v25 = vadd.f32 %v13668_v50, %v11522_v33  ;;  %v3030_v20 = vadd.f32 %v13672_v56, %v2639_v22  ;;  %v11652_v33 = vld [vmem:[%s13350_s2 + $0x14] sm:$0xf]  ;;  %v2641_v16 = vadd.f32 %v13673_v57, %v2251_v35  ;;  %v2253_v34 = vadd.f32 %v13674_v14, %v11548_v39  ;;  %v13678_v39 = vld [vmem:[#allocation65_spill] sm:$0xff]  ;;  %v13679_v35 = vld [vmem:[#allocation64_spill] sm:$0xff] }
 0x204   : > { %3987 = vst.msk [vmem:[#allocation3 + $0x30] sm:$0xff] %vm311_vm1, %v3913_v1  ;;  %v3912_v54 = vmax.f32 %v3880_v41, 0.0  ;;  %v3883_v28 = vadd.f32 %v11593_v4, %v3844_v31  ;;  %v3843_v42 = vmul.f32 %v11575_v24, %v3804_v51  ;;  %v3807_v55 = vadd.f32 %v9324_v30, %v3417_v15  ;;  %v11644_v1 = vpop.f32.mrf.mxu1  ;;  %9614 = vmatprep.subr.msk.mxu0 %vm550_vm0, %v11652_v33  ;;  %v13677_v22 = vld [vmem:[#allocation46_spill] sm:$0xff] }
 0x205   : > { %v3663_v37 = vpop.f32.mrf.mxu0  ;;  %v3418_v15 = vadd.f32 %v13671_v21, %v3028_v10  ;;  %v13676_v10 = vld [vmem:[#allocation109_spill] sm:$0xff]  ;;  %v11665_v17 = vadd.f32 %v13677_v22, %v1491_v25  ;;  %v2644_v48 = vadd.f32 %v13679_v35, %v13678_v39  ;;  %v13682_v25 = vld [vmem:[#allocation67_spill] sm:$0xff] }
 0x206   : > { %3986 = vst.msk [vmem:[#allocation3 + $0x28] sm:$0xff] %vm311_vm1, %v3912_v54  ;;  %v3915_v38 = vmax.f32 %v3883_v28, 0.0  ;;  %v3882_v52 = vadd.f32 %v11593_v4, %v3843_v42  ;;  %v3846_v58 = vmul.f32 %v11575_v24, %v3807_v55  ;;  %v3806_v36 = vadd.f32 %v3663_v37, %v3416_v7  ;;  %v13675_v7 = vld [vmem:[#allocation116_spill] sm:$0xff] }
 0x207   : > { %v9327_v45 = vpop.f32.mrf.mxu0  ;;  %v3421_v60 = vadd.f32 %v13675_v7, %v3031_v49  ;;  %v3033_v30 = vadd.f32 %v13676_v10, %v2642_v43  ;;  %v13681_v49 = vld [vmem:[#allocation111_spill] sm:$0xff]  ;;  %v2643_v32 = vadd.f32 %v13682_v25, %v2253_v34  ;;  %v13683_v43 = vld [vmem:[#allocation70_spill] sm:$0xff]  ;;  %v13686_v7 = vld [vmem:[#allocation69_spill] sm:$0xff] }
 0x208   : > { %3989 = vst.msk [vmem:[#allocation3 + $0x50] sm:$0xff] %vm311_vm1, %v3915_v38  ;;  %v3914_v41 = vmax.f32 %v3882_v52, 0.0  ;;  %v3885_v31 = vadd.f32 %v11593_v4, %v3846_v58  ;;  %v3845_v51 = vmul.f32 %v11575_v24, %v3806_v36  ;;  %v3809_v63 = vadd.f32 %v9327_v45, %v3419_v18  ;;  %v13680_v18 = vld [vmem:[#allocation119_spill] sm:$0xff]  ;;  %v11671_v52 = vpop.f32.mrf.mxu1 }
 0x209   : > { %v3673_v54 = vpop.f32.mrf.mxu0  ;;  %v3420_v8 = vadd.f32 %v13680_v18, %v3030_v20  ;;  %v3032_v37 = vadd.f32 %v13681_v49, %v2641_v16  ;;  %v2255_v21 = vadd.f32 %v13683_v43, %v11552_v11  ;;  %v13685_v20 = vld [vmem:[#allocation112_spill] sm:$0xff]  ;;  %v13690_v18 = vld [vmem:[#allocation74_spill] sm:$0xff]  ;;  %v13691_v49 = vld [vmem:[#allocation127_spill] sm:$0xff] }
 0x20a   : > { %3988 = vst.msk [vmem:[#allocation3 + $0x48] sm:$0xff] %vm311_vm1, %v3914_v41  ;;  %v3917_v28 = vmax.f32 %v3885_v31, 0.0  ;;  %v3884_v42 = vadd.f32 %v11593_v4, %v3845_v51  ;;  %v3848_v55 = vmul.f32 %v11575_v24, %v3809_v63  ;;  %v3808_v13 = vadd.f32 %v3673_v54, %v3418_v15  ;;  %v13684_v15 = vld [vmem:[#allocation122_spill] sm:$0xff] }
 0x20b   : > { %v9330_v38 = vpop.f32.mrf.mxu0  ;;  %v3423_v56 = vadd.f32 %v13684_v15, %v3033_v30  ;;  %v3035_v45 = vadd.f32 %v13685_v20, %v2644_v48  ;;  %v11694_v11 = vld [vmem:[#allocation3 + $0x30] sm:$0xff]  ;;  %v3422_v30 = vadd.f32 %v11473_v53, %v3032_v37  ;;  %v13689_v53 = vld [vmem:[#allocation71_spill] sm:$0xff]  ;;  %v13694_v20 = vld [vmem:[#allocation72_spill] sm:$0xff] }
 0x20c   : > { %3991 = vst.msk [vmem:[#allocation3 + $0x70] sm:$0xff] %vm311_vm1, %v3917_v28  ;;  %v3916_v58 = vmax.f32 %v3884_v42, 0.0  ;;  %v3887_v36 = vadd.f32 %v11593_v4, %v3848_v55  ;;  %v3847_v50 = vmul.f32 %v11575_v24, %v3808_v13  ;;  %v3811_v59 = vadd.f32 %v9330_v38, %v3421_v60  ;;  %v13687_v60 = vld [vmem:[#allocation68_spill] sm:$0xff]  ;;  %v13688_v54 = vld [vmem:[#allocation114_spill] sm:$0xff]  ;;  %v11704_v55 = vpop.f32.mrf.mxu1  ;;  %v13692_v38 = vld [vmem:[#allocation115_spill] sm:$0xff] }
 0x20d   : > { %v3683_v41 = vpop.f32.mrf.mxu0  ;;  %v11681_v31 = vld [vmem:[#allocation3 + $0x28] sm:$0xff]  ;;  %v2646_v10 = vadd.f32 %v13687_v60, %v13686_v7  ;;  %v3034_v28 = vadd.f32 %v13688_v54, %v2643_v32  ;;  %v2645_v48 = vadd.f32 %v13689_v53, %v2255_v21  ;;  %v3425_v37 = vadd.f32 %v13691_v49, %v3035_v45 }
 0x20e   : > { %v11683_v51 = vld [vmem:[#allocation3 + $0x27] sm:$0xff]  ;;  %v11685_v63 = vld [vmem:[#allocation3 + $0x2f] sm:$0xff]  ;;  %3990 = vst.msk [vmem:[#allocation3 + $0x68] sm:$0xff] %vm311_vm1, %v3916_v58  ;;  %v3919_v57 = vmax.f32 %v3887_v36, 0.0  ;;  %v3886_v16 = vadd.f32 %v11593_v4, %v3847_v50  ;;  %v3850_v14 = vmul.f32 %v11575_v24, %v3811_v59  ;;  %v3810_v34 = vadd.f32 %v3683_v41, %v3420_v8  ;;  %9369 = vmatprep.mubr.msk.f32.mxu1 %vm311_vm1, %v11681_v31 }
 0x20f   : > { %9419 = vmatprep.mubr.msk.f32.mxu0 %vm311_vm1, %v11683_v51  ;;  %v9333_v42 = vpop.f32.mrf.mxu0  ;;  %9370 = vmatmul.mubr.msk.f32.gmra.mxu1 %vm311_vm1, %v11694_v11  ;;  %v2257_v8 = vadd.f32 %v13690_v18, %v11564_v19  ;;  %v3037_v58 = vadd.f32 %v13692_v38, %v2646_v10  ;;  %v11727_v19 = vld [vmem:[#allocation3 + $0x50] sm:$0xff]  ;;  %v3424_v41 = vadd.f32 %v11485_v27, %v3034_v28  ;;  %v13696_v27 = vld [vmem:[#allocation75_spill] sm:$0xff] }
 0x210   : > { %9420 = vmatmul.mubr.msk.f32.gmra.mxu0 %vm311_vm1, %v11685_v63  ;;  %3993 = vst.msk [vmem:[#allocation3 + $0x90] sm:$0xff] %vm311_vm1, %v3919_v57  ;;  %v3918_v13 = vmax.f32 %v3886_v16, 0.0  ;;  %v3889_v22 = vadd.f32 %v11593_v4, %v3850_v14  ;;  %v3849_v39 = vmul.f32 %v11575_v24, %v3810_v34  ;;  %v3813_v35 = vadd.f32 %v9333_v42, %v3423_v56  ;;  %v13693_v56 = vld [vmem:[#allocation73_spill] sm:$0xff]  ;;  %v11737_v34 = vpop.f32.mrf.mxu1  ;;  %v13697_v28 = vld [vmem:[#allocation78_spill] sm:$0xff] }
 0x211   : > { %v3693_v36 = vpop.f32.mrf.mxu0  ;;  %v11714_v50 = vld [vmem:[#allocation3 + $0x48] sm:$0xff]  ;;  %v2648_v45 = vadd.f32 %v13694_v20, %v13693_v56  ;;  %v2647_v54 = vadd.f32 %v13696_v27, %v2257_v8  ;;  %v2259_v42 = vadd.f32 %v13697_v28, %v11567_v6 }
 0x212   : > { %v11716_v59 = vld [vmem:[#allocation3 + $0x47] sm:$0xff]  ;;  %v11718_v25 = vld [vmem:[#allocation3 + $0x4f] sm:$0xff]  ;;  %3992 = vst.msk [vmem:[#allocation3 + $0x88] sm:$0xff] %vm311_vm1, %v3918_v13  ;;  %v3921_v32 = vmax.f32 %v3889_v22, 0.0  ;;  %v3888_v43 = vadd.f32 %v11593_v4, %v3849_v39  ;;  %v3852_v21 = vmul.f32 %v11575_v24, %v3813_v35  ;;  %v3812_v15 = vadd.f32 %v3693_v36, %v3422_v30  ;;  %9372 = vmatprep.mubr.msk.f32.mxu1 %vm311_vm1, %v11714_v50  ;;  %v11770_v56 = vpop.f32.mrf.mxu1 }
 0x213   : > { %9422 = vmatprep.mubr.msk.f32.mxu0 %vm311_vm1, %v11716_v59  ;;  %v13695_v57 = vld [vmem:[#allocation117_spill] sm:$0xff]  ;;  %v9336_v14 = vpop.f32.mrf.mxu0  ;;  %9373 = vmatmul.mubr.msk.f32.gmra.mxu1 %vm311_vm1, %v11727_v19  ;;  %v3427_v13 = vadd.f32 %v11493_v5, %v3037_v58  ;;  %v13698_v22 = vld [vmem:[#allocation118_spill] sm:$0xff]  ;;  %v13701_v58 = vld [vmem:[#allocation76_spill] sm:$0xff] }
 0x214   : > { %v3036_v16 = vadd.f32 %v13695_v57, %v2645_v48  ;;  %9423 = vmatmul.mubr.msk.f32.gmra.mxu0 %vm311_vm1, %v11718_v25  ;;  %3995 = vst.msk [vmem:[#allocation3 + $0xb0] sm:$0xff] %vm311_vm1, %v3921_v32  ;;  %v3920_v7 = vmax.f32 %v3888_v43, 0.0  ;;  %v3891_v60 = vadd.f32 %v11593_v4, %v3852_v21  ;;  %v3851_v10 = vmul.f32 %v11575_v24, %v3812_v15  ;;  %v11760_v5 = vld [vmem:[#allocation3 + $0x70] sm:$0xff]  ;;  %v13700_v6 = vld [vmem:[#allocation77_spill] sm:$0xff]  ;;  %v13702_v43 = vld [vmem:[#allocation120_spill] sm:$0xff] }
 0x215   : > { %v3815_v30 = vadd.f32 %v9336_v14, %v3425_v37  ;;  %v3039_v39 = vadd.f32 %v13698_v22, %v2648_v45  ;;  %v3703_v35 = vpop.f32.mrf.mxu0  ;;  %v11747_v53 = vld [vmem:[#allocation3 + $0x68] sm:$0xff]  ;;  %v2650_v36 = vadd.f32 %v13701_v58, %v13700_v6  ;;  %v3038_v21 = vadd.f32 %v13702_v43, %v2647_v54  ;;  %v13704_v14 = vld [vmem:[#allocation82_spill] sm:$0xff] }
 0x216   : > { %v11749_v48 = vld [vmem:[#allocation3 + $0x67] sm:$0xff]  ;;  %v11751_v18 = vld [vmem:[#allocation3 + $0x6f] sm:$0xff]  ;;  %3994 = vst.msk [vmem:[#allocation3 + $0xa8] sm:$0xff] %vm311_vm1, %v3920_v7  ;;  %v3923_v49 = vmax.f32 %v3891_v60, 0.0  ;;  %v3890_v37 = vadd.f32 %v11593_v4, %v3851_v10  ;;  %v3814_v38 = vadd.f32 %v3703_v35, %v3424_v41  ;;  %9375 = vmatprep.mubr.msk.f32.mxu1 %vm311_vm1, %v11747_v53  ;;  %v3426_v32 = vadd.f32 %v11508_v9, %v3036_v16  ;;  %v13703_v9 = vld [vmem:[#allocation79_spill] sm:$0xff] }
 0x217   : > { %13699 = vst [vmem:[#allocation62_spill] sm:$0xff] %v11751_v18  ;;  %v3854_v8 = vmul.f32 %v11575_v24, %v3815_v30  ;;  %9425 = vmatprep.mubr.msk.f32.mxu0 %vm311_vm1, %v11749_v48  ;;  %v9339_v15 = vpop.f32.mrf.mxu0  ;;  %9376 = vmatmul.mubr.msk.f32.gmra.mxu1 %vm311_vm1, %v11760_v5  ;;  %v2649_v16 = vadd.f32 %v13703_v9, %v2259_v42  ;;  %v13705_v10 = vld [vmem:[#allocation121_spill] sm:$0xff]  ;;  %v13713_v9 = vld [vmem:[#allocation124_spill] sm:$0xff] }
 0x218   : > { %9426 = vmatmul.mubr.msk.f32.gmra.mxu0 %vm311_vm1, %v11751_v18  ;;  %3997 = vst.msk [vmem:[#allocation3 + $0xd0] sm:$0xff] %vm311_vm1, %v3923_v49  ;;  %v3922_v20 = vmax.f32 %v3890_v37, 0.0  ;;  %v3853_v41 = vmul.f32 %v11575_v24, %v3814_v38  ;;  %v3817_v57 = vadd.f32 %v9339_v15, %v3427_v13  ;;  %v2261_v7 = vadd.f32 %v13704_v14, %v11578_v2  ;;  %v13708_v2 = vld [vmem:[#allocation81_spill] sm:$0xff]  ;;  %v13710_v38 = vld [vmem:[#allocation123_spill] sm:$0xff] }
 0x219   : > { %v3893_v45 = vadd.f32 %v11593_v4, %v3854_v8  ;;  %v3429_v60 = vadd.f32 %v11544_v29, %v3039_v39  ;;  %v3041_v30 = vadd.f32 %v13705_v10, %v2650_v36  ;;  %v3713_v27 = vpop.f32.mrf.mxu0  ;;  %v11780_v54 = vld [vmem:[#allocation3 + $0x88] sm:$0xff]  ;;  %v11793_v29 = vld [vmem:[#allocation3 + $0x90] sm:$0xff]  ;;  %v13709_v39 = vld [vmem:[#allocation80_spill] sm:$0xff]  ;;  %v3428_v8 = vadd.f32 %v11582_v47, %v3038_v21  ;;  %v11803_v36 = vpop.f32.mrf.mxu1 }
 0x21a   : > { %v11782_v28 = vld [vmem:[#allocation3 + $0x87] sm:$0xff]  ;;  %v11784_v22 = vld [vmem:[#allocation3 + $0x8f] sm:$0xff]  ;;  %3996 = vst.msk [vmem:[#allocation3 + $0xc8] sm:$0xff] %vm311_vm1, %v3922_v20  ;;  %v3892_v13 = vadd.f32 %v11593_v4, %v3853_v41  ;;  %v3856_v42 = vmul.f32 %v11575_v24, %v3817_v57  ;;  %v3816_v49 = vadd.f32 %v3713_v27, %v3426_v32  ;;  %9378 = vmatprep.mubr.msk.f32.mxu1 %vm311_vm1, %v11780_v54  ;;  %v13711_v47 = vld [vmem:[#allocation83_spill] sm:$0xff] }
 0x21b   : > { %13706 = vst [vmem:[#allocation63_spill] sm:$0xff] %v11782_v28  ;;  %13707 = vst [vmem:[#allocation24_spill] sm:$0xff] %v11784_v22  ;;  %v3925_v35 = vmax.f32 %v3893_v45, 0.0  ;;  %9428 = vmatprep.mubr.msk.f32.mxu0 %vm311_vm1, %v11782_v28  ;;  %v2652_v37 = vadd.f32 %v13709_v39, %v13708_v2  ;;  %v3040_v6 = vadd.f32 %v13710_v38, %v2649_v16  ;;  %v9342_v58 = vpop.f32.mrf.mxu0  ;;  %9379 = vmatmul.mubr.msk.f32.gmra.mxu1 %vm311_vm1, %v11793_v29  ;;  %v13712_v45 = vld [vmem:[#allocation86_spill] sm:$0xff]  ;;  %v13718_v39 = vld [vmem:[#allocation125_spill] sm:$0xff] }
 0x21c   : > { %9429 = vmatmul.mubr.msk.f32.gmra.mxu0 %vm311_vm1, %v11784_v22  ;;  %v3924_v32 = vmax.f32 %v3892_v13, 0.0  ;;  %v3895_v43 = vadd.f32 %v11593_v4, %v3856_v42  ;;  %v3855_v15 = vmul.f32 %v11575_v24, %v3816_v49  ;;  %v3819_v20 = vadd.f32 %v9342_v58, %v3429_v60 }
 0x21d   : > { %3999 = vst.msk [vmem:[#allocation3 + $0xf0] sm:$0xff] %vm311_vm1, %v3925_v35  ;;  %v2651_v21 = vadd.f32 %v13711_v47, %v2261_v7  ;;  %v2263_v41 = vadd.f32 %v13712_v45, %v11585_v3  ;;  %v3431_v57 = vadd.f32 %v11608_v0, %v3041_v30  ;;  %v3043_v16 = vadd.f32 %v13713_v9, %v2652_v37  ;;  %v3723_v14 = vpop.f32.mrf.mxu0  ;;  %v11813_v10 = vld [vmem:[#allocation3 + $0xa8] sm:$0xff]  ;;  %v11826_v3 = vld [vmem:[#allocation3 + $0xb0] sm:$0xff]  ;;  %v13717_v30 = vld [vmem:[#allocation84_spill] sm:$0xff] }
 0x21e   : > { %v11815_v27 = vld [vmem:[#allocation3 + $0xa7] sm:$0xff]  ;;  %v11817_v35 = vld [vmem:[#allocation3 + $0xaf] sm:$0xff]  ;;  %3998 = vst.msk [vmem:[#allocation3 + $0xe8] sm:$0xff] %vm311_vm1, %v3924_v32  ;;  %v3927_v13 = vmax.f32 %v3895_v43, 0.0  ;;  %v3894_v60 = vadd.f32 %v11593_v4, %v3855_v15  ;;  %v3858_v7 = vmul.f32 %v11575_v24, %v3819_v20  ;;  %v3818_v42 = vadd.f32 %v3723_v14, %v3428_v8  ;;  %9381 = vmatprep.mubr.msk.f32.mxu1 %vm311_vm1, %v11813_v10  ;;  %v11836_v8 = vpop.f32.mrf.mxu1 }
 0x21f   : > { %13714 = vst [vmem:[#allocation26_spill] sm:$0xff] %v11815_v27  ;;  %13715 = vst [vmem:[#allocation25_spill] sm:$0xff] %v11817_v35  ;;  %9431 = vmatprep.mubr.msk.f32.mxu0 %vm311_vm1, %v11815_v27  ;;  %v13716_v0 = vld [vmem:[#allocation85_spill] sm:$0xff]  ;;  %v3430_v2 = vadd.f32 %v11625_v44, %v3040_v6  ;;  %v3042_v37 = vadd.f32 %v13718_v39, %v2651_v21  ;;  %v9345_v38 = vpop.f32.mrf.mxu0  ;;  %9382 = vmatmul.mubr.msk.f32.gmra.mxu1 %vm311_vm1, %v11826_v3  ;;  %v13719_v44 = vld [vmem:[#allocation87_spill] sm:$0xff] }
 0x220   : > { %v2654_v49 = vadd.f32 %v13717_v30, %v13716_v0  ;;  %9432 = vmatmul.mubr.msk.f32.gmra.mxu0 %vm311_vm1, %v11817_v35  ;;  %4001 = vst.msk [vmem:[#allocation3 + $0x110] sm:$0xff] %vm311_vm1, %v3927_v13  ;;  %v3926_v58 = vmax.f32 %v3894_v60, 0.0  ;;  %v3897_v32 = vadd.f32 %v11593_v4, %v3858_v7  ;;  %v3857_v43 = vmul.f32 %v11575_v24, %v3818_v42  ;;  %v13720_v20 = vld [vmem:[#allocation90_spill] sm:$0xff]  ;;  %v13727_v39 = vld [vmem:[#allocation128_spill] sm:$0xff] }
 0x221   : > { %v3821_v15 = vadd.f32 %v9345_v38, %v3431_v57  ;;  %v2653_v6 = vadd.f32 %v13719_v44, %v2263_v41  ;;  %v2265_v47 = vadd.f32 %v13720_v20, %v11596_v12  ;;  %v3433_v21 = vadd.f32 %v11644_v1, %v3043_v16  ;;  %v13721_v45 = vld [vmem:[#allocation126_spill] sm:$0xff]  ;;  %v3733_v14 = vpop.f32.mrf.mxu0  ;;  %v11846_v0 = vld [vmem:[#allocation3 + $0xc8] sm:$0xff]  ;;  %v13726_v16 = vld [vmem:[#allocation88_spill] sm:$0xff] }
 0x222   : > { %v3045_v9 = vadd.f32 %v13721_v45, %v2654_v49  ;;  %v11848_v30 = vld [vmem:[#allocation3 + $0xc7] sm:$0xff]  ;;  %v11850_v13 = vld [vmem:[#allocation3 + $0xcf] sm:$0xff]  ;;  %4000 = vst.msk [vmem:[#allocation3 + $0x108] sm:$0xff] %vm311_vm1, %v3926_v58  ;;  %v3929_v60 = vmax.f32 %v3897_v32, 0.0  ;;  %v3896_v57 = vadd.f32 %v11593_v4, %v3857_v43  ;;  %v3820_v7 = vadd.f32 %v3733_v14, %v3430_v2  ;;  %9384 = vmatprep.mubr.msk.f32.mxu1 %vm311_vm1, %v11846_v0  ;;  %v11869_v2 = vpop.f32.mrf.mxu1 }
 0x223   : > { %13722 = vst [vmem:[#allocation27_spill] sm:$0xff] %v11848_v30  ;;  %13723 = vst [vmem:[#allocation31_spill] sm:$0xff] %v11850_v13  ;;  %v3860_v41 = vmul.f32 %v11575_v24, %v3821_v15  ;;  %9434 = vmatprep.mubr.msk.f32.mxu0 %vm311_vm1, %v11848_v30  ;;  %v11859_v12 = vld [vmem:[#allocation3 + $0xd0] sm:$0xff]  ;;  %v13725_v1 = vld [vmem:[#allocation89_spill] sm:$0xff]  ;;  %v3432_v49 = vadd.f32 %v11671_v52, %v3042_v37  ;;  %v3044_v38 = vadd.f32 %v13727_v39, %v2653_v6  ;;  %v9348_v58 = vpop.f32.mrf.mxu0 }
 0x224   : > { %13724 = vst [vmem:[#allocation48_spill] sm:$0xff] %v11859_v12  ;;  %v2656_v42 = vadd.f32 %v13726_v16, %v13725_v1  ;;  %9385 = vmatmul.mubr.msk.f32.gmra.mxu1 %vm311_vm1, %v11859_v12  ;;  %9435 = vmatmul.mubr.msk.f32.gmra.mxu0 %vm311_vm1, %v11850_v13  ;;  %4003 = vst.msk [vmem:[#allocation3 + $0x130] sm:$0xff] %vm311_vm1, %v3929_v60  ;;  %v3928_v32 = vmax.f32 %v3896_v57, 0.0  ;;  %v3859_v15 = vmul.f32 %v11575_v24, %v3820_v7  ;;  %v13728_v52 = vld [vmem:[#allocation91_spill] sm:$0xff]  ;;  %v13729_v6 = vld [vmem:[#allocation94_spill] sm:$0xff] }
 0x225   : > { %v3899_v43 = vadd.f32 %v11593_v4, %v3860_v41  ;;  %v3823_v44 = vadd.f32 %v9348_v58, %v3433_v21  ;;  %v2655_v37 = vadd.f32 %v13728_v52, %v2265_v47  ;;  %v2267_v20 = vadd.f32 %v13729_v6, %v11601_v61  ;;  %v13730_v14 = vld [vmem:[#allocation129_spill] sm:$0xff]  ;;  %v3743_v16 = vpop.f32.mrf.mxu0  ;;  %v11892_v61 = vld [vmem:[#allocation3 + $0xf0] sm:$0xff] }
 0x226   : > { %v3435_v45 = vadd.f32 %v11704_v55, %v3045_v9  ;;  %v3047_v1 = vadd.f32 %v13730_v14, %v2656_v42  ;;  %v11879_v39 = vld [vmem:[#allocation3 + $0xe8] sm:$0xff]  ;;  %4002 = vst.msk [vmem:[#allocation3 + $0x128] sm:$0xff] %vm311_vm1, %v3928_v32  ;;  %v3898_v21 = vadd.f32 %v11593_v4, %v3859_v15  ;;  %v3822_v41 = vadd.f32 %v3743_v16, %v3432_v49  ;;  %v13735_v9 = vld [vmem:[#allocation92_spill] sm:$0xff]  ;;  %v11902_v49 = vpop.f32.mrf.mxu1  ;;  %v13738_v14 = vld [vmem:[#allocation130_spill] sm:$0xff] }
 0x227   : > { %v11881_v12 = vld [vmem:[#allocation3 + $0xe7] sm:$0xff]  ;;  %v11883_v60 = vld [vmem:[#allocation3 + $0xef] sm:$0xff]  ;;  %v3931_v57 = vmax.f32 %v3899_v43, 0.0  ;;  %v3862_v47 = vmul.f32 %v11575_v24, %v3823_v44  ;;  %9387 = vmatprep.mubr.msk.f32.mxu1 %vm311_vm1, %v11879_v39  ;;  %13733 = vst [vmem:[#allocation29_spill] sm:$0xff] %v11892_v61  ;;  %v3434_v42 = vadd.f32 %v11737_v34, %v3044_v38  ;;  %v3046_v58 = vadd.f32 %v11487_v62, %v2655_v37  ;;  %v9351_v32 = vpop.f32.mrf.mxu0  ;;  %v13736_v34 = vld [vmem:[#allocation95_spill] sm:$0xff] }
 0x228   : > { %13731 = vst [vmem:[#allocation47_spill] sm:$0xff] %v11881_v12  ;;  %13732 = vst [vmem:[#allocation28_spill] sm:$0xff] %v11883_v60  ;;  %9437 = vmatprep.mubr.msk.f32.mxu0 %vm311_vm1, %v11881_v12  ;;  %v13734_v55 = vld [vmem:[#allocation93_spill] sm:$0xff]  ;;  %9388 = vmatmul.mubr.msk.f32.gmra.mxu1 %vm311_vm1, %v11892_v61  ;;  %v3930_v43 = vmax.f32 %v3898_v21, 0.0  ;;  %v3861_v44 = vmul.f32 %v11575_v24, %v3822_v41  ;;  %v3825_v52 = vadd.f32 %v9351_v32, %v3435_v45  ;;  %v13737_v62 = vld [vmem:[#allocation98_spill] sm:$0xff] }
 0x229   : > { %v2658_v7 = vadd.f32 %v13735_v9, %v13734_v55  ;;  %9438 = vmatmul.mubr.msk.f32.gmra.mxu0 %vm311_vm1, %v11883_v60  ;;  %4005 = vst.msk [vmem:[#allocation3 + $0x150] sm:$0xff] %vm311_vm1, %v3931_v57  ;;  %v3901_v15 = vadd.f32 %v11593_v4, %v3862_v47  ;;  %v2657_v38 = vadd.f32 %v13736_v34, %v2267_v20  ;;  %v3753_v55 = vpop.f32.mrf.mxu0  ;;  %v11912_v9 = vld [vmem:[#allocation3 + $0x108] sm:$0xff]  ;;  %v13745_v32 = vld [vmem:[#allocation131_spill] sm:$0xff] }
 0x22a   : > { %v2269_v37 = vadd.f32 %v13737_v62, %v11619_v40  ;;  %v3437_v6 = vadd.f32 %v11770_v56, %v3047_v1  ;;  %13739 = vst [vmem:[#allocation49_spill] sm:$0xff] %v11912_v9  ;;  %v11914_v61 = vld [vmem:[#allocation3 + $0x107] sm:$0xff]  ;;  %v11916_v57 = vld [vmem:[#allocation3 + $0x10f] sm:$0xff]  ;;  %4004 = vst.msk [vmem:[#allocation3 + $0x148] sm:$0xff] %vm311_vm1, %v3930_v43  ;;  %v3900_v45 = vadd.f32 %v11593_v4, %v3861_v44  ;;  %9390 = vmatprep.mubr.msk.f32.mxu1 %vm311_vm1, %v11912_v9 }
 0x22b   : > { %v3049_v16 = vadd.f32 %v13738_v14, %v2658_v7  ;;  %13740 = vst [vmem:[#allocation30_spill] sm:$0xff] %v11914_v61  ;;  %13741 = vst [vmem:[#allocation40_spill] sm:$0xff] %v11916_v57  ;;  %v3933_v21 = vmax.f32 %v3901_v15, 0.0  ;;  %v3864_v20 = vmul.f32 %v11575_v24, %v3825_v52  ;;  %v3824_v47 = vadd.f32 %v3753_v55, %v3434_v42  ;;  %v11925_v40 = vld [vmem:[#allocation3 + $0x110] sm:$0xff]  ;;  %v13743_v56 = vld [vmem:[#allocation97_spill] sm:$0xff]  ;;  %v9354_v15 = vpop.f32.mrf.mxu0  ;;  %v3393_v42 = vpop.f32.mrf.mxu1 }
 0x22c   : > { %9440 = vmatprep.mubr.msk.f32.mxu0 %vm311_vm1, %v11914_v61  ;;  %13742 = vst [vmem:[#allocation43_spill] sm:$0xff] %v11925_v40  ;;  %v13744_v1 = vld [vmem:[#allocation96_spill] sm:$0xff]  ;;  %v3436_v7 = vadd.f32 %v11803_v36, %v3046_v58  ;;  %v3048_v43 = vadd.f32 %v13745_v32, %v2657_v38  ;;  %9391 = vmatmul.mubr.msk.f32.gmra.mxu1 %vm311_vm1, %v11925_v40  ;;  %v3932_v44 = vmax.f32 %v3900_v45, 0.0  ;;  %v13746_v14 = vld [vmem:[#allocation99_spill] sm:$0xff]  ;;  %v13747_v58 = vld [vmem:[#allocation102_spill] sm:$0xff] }
 0x22d   : > { %v2660_v41 = vadd.f32 %v13744_v1, %v13743_v56  ;;  %9441 = vmatmul.mubr.msk.f32.gmra.mxu0 %vm311_vm1, %v11916_v57  ;;  %4007 = vst.msk [vmem:[#allocation3 + $0x170] sm:$0xff] %vm311_vm1, %v3933_v21  ;;  %v3903_v52 = vadd.f32 %v11593_v4, %v3864_v20  ;;  %v3863_v34 = vmul.f32 %v11575_v24, %v3824_v47  ;;  %v13748_v56 = vld [vmem:[#allocation132_spill] sm:$0xff]  ;;  %v3763_v32 = vpop.f32.mrf.mxu0  ;;  %v11943_v40 = vld [vmem:[#allocation3 + $0x128] sm:$0xff] }
 0x22e   : > { %v3827_v62 = vadd.f32 %v9354_v15, %v3437_v6  ;;  %v2659_v36 = vadd.f32 %v13746_v14, %v2269_v37  ;;  %v2271_v38 = vadd.f32 %v13747_v58, %v11665_v17  ;;  %v3439_v55 = vadd.f32 %v11836_v8, %v3049_v16  ;;  %v11945_v9 = vld [vmem:[#allocation3 + $0x127] sm:$0xff]  ;;  %v11947_v21 = vld [vmem:[#allocation3 + $0x12f] sm:$0xff]  ;;  %4006 = vst.msk [vmem:[#allocation3 + $0x168] sm:$0xff] %vm311_vm1, %v3932_v44  ;;  %v13753_v58 = vld [vmem:[#allocation103_spill] sm:$0xff] }
 0x22f   : > { %v3051_v1 = vadd.f32 %v13748_v56, %v2660_v41  ;;  %13749 = vst [vmem:[#allocation53_spill] sm:$0xff] %v11945_v9  ;;  %13750 = vst [vmem:[#allocation50_spill] sm:$0xff] %v11947_v21  ;;  %v3935_v45 = vmax.f32 %v3903_v52, 0.0  ;;  %v3902_v6 = vadd.f32 %v11593_v4, %v3863_v34  ;;  %v3826_v20 = vadd.f32 %v3763_v32, %v3436_v7  ;;  %v11956_v17 = vld [vmem:[#allocation3 + $0x130] sm:$0xff]  ;;  %v13751_v8 = vld [vmem:[#allocation101_spill] sm:$0xff]  ;;  %v9357_v44 = vpop.f32.mrf.mxu0  ;;  %v9313_v7 = vpop.f32.mrf.mxu1 }
 0x230   : > { %v3866_v37 = vmul.f32 %v11575_v24, %v3827_v62  ;;  %9393 = vmatprep.mubr.msk.f32.mxu1 %vm311_vm1, %v11943_v40  ;;  %9443 = vmatprep.mubr.msk.f32.mxu0 %vm311_vm1, %v11945_v9  ;;  %v13752_v16 = vld [vmem:[#allocation100_spill] sm:$0xff]  ;;  %v3438_v41 = vadd.f32 %v11869_v2, %v3048_v43  ;;  %v3050_v15 = vadd.f32 %v11518_v26, %v2659_v36 }
 0x231   : > { %v2662_v47 = vadd.f32 %v13752_v16, %v13751_v8  ;;  %9394 = vmatmul.mubr.msk.f32.gmra.mxu1 %vm311_vm1, %v11956_v17  ;;  %9444 = vmatmul.mubr.msk.f32.gmra.mxu0 %vm311_vm1, %v11947_v21  ;;  %4009 = vst.msk [vmem:[#allocation3 + $0x190] sm:$0xff] %vm311_vm1, %v3935_v45  ;;  %v3934_v52 = vmax.f32 %v3902_v6, 0.0  ;;  %v3865_v62 = vmul.f32 %v11575_v24, %v3826_v20  ;;  %v3773_v36 = vpop.f32.mrf.mxu0  ;;  %v11972_v56 = vld [vmem:[#allocation3 + $0x148] sm:$0xff]  ;;  %v3403_v20 = vpop.f32.mrf.mxu1 }
 0x232   : > { %v3905_v34 = vadd.f32 %v11593_v4, %v3866_v37  ;;  %v3829_v14 = vadd.f32 %v9357_v44, %v3439_v55  ;;  %v2661_v2 = vadd.f32 %v13753_v58, %v2271_v38  ;;  %v3441_v26 = vadd.f32 %v11902_v49, %v3051_v1  ;;  %v11974_v32 = vld [vmem:[#allocation3 + $0x147] sm:$0xff]  ;;  %v11976_v8 = vld [vmem:[#allocation3 + $0x14f] sm:$0xff]  ;;  %9396 = vmatprep.mubr.msk.f32.mxu1 %vm311_vm1, %v11972_v56 }
 0x233   : > { %v3053_v43 = vadd.f32 %v11534_v46, %v2662_v47  ;;  %13754 = vst [vmem:[#allocation54_spill] sm:$0xff] %v11974_v32  ;;  %13755 = vst [vmem:[#allocation104_spill] sm:$0xff] %v11976_v8  ;;  %v3904_v6 = vadd.f32 %v11593_v4, %v3865_v62  ;;  %v3828_v37 = vadd.f32 %v3773_v36, %v3438_v41  ;;  %9446 = vmatprep.mubr.msk.f32.mxu0 %vm311_vm1, %v11974_v32  ;;  %v11985_v46 = vld [vmem:[#allocation3 + $0x150] sm:$0xff]  ;;  %v9360_v1 = vpop.f32.mrf.mxu0 }
 0x234   : > { %4008 = vst.msk [vmem:[#allocation3 + $0x188] sm:$0xff] %vm311_vm1, %v3934_v52  ;;  %v3937_v45 = vmax.f32 %v3905_v34, 0.0  ;;  %v3868_v55 = vmul.f32 %v11575_v24, %v3829_v14  ;;  %v3440_v49 = vadd.f32 %v3393_v42, %v3050_v15  ;;  %v3052_v38 = vadd.f32 %v11556_v23, %v2661_v2 }
 0x235   : > { %9397 = vmatmul.mubr.msk.f32.gmra.mxu1 %vm311_vm1, %v11985_v46  ;;  %9447 = vmatmul.mubr.msk.f32.gmra.mxu0 %vm311_vm1, %v11976_v8  ;;  %v3936_v16 = vmax.f32 %v3904_v6, 0.0  ;;  %v3867_v41 = vmul.f32 %v11575_v24, %v3828_v37  ;;  %v3831_v44 = vadd.f32 %v9360_v1, %v3441_v26  ;;  %v3443_v52 = vadd.f32 %v9313_v7, %v3053_v43  ;;  %v3783_v42 = vpop.f32.mrf.mxu0  ;;  %v11995_v15 = vld [vmem:[#allocation3 + $0x168] sm:$0xff]  ;;  %v12008_v7 = vld [vmem:[#allocation3 + $0x170] sm:$0xff] }
 0x236   : > { %4011 = vst.msk [vmem:[#allocation3 + $0x1b0] sm:$0xff] %vm311_vm1, %v3937_v45  ;;  %v3907_v47 = vadd.f32 %v11593_v4, %v3868_v55  ;;  %v11997_v23 = vld [vmem:[#allocation3 + $0x167] sm:$0xff]  ;;  %v11999_v34 = vld [vmem:[#allocation3 + $0x16f] sm:$0xff]  ;;  %v3830_v2 = vadd.f32 %v3783_v42, %v3440_v49  ;;  %9399 = vmatprep.mubr.msk.f32.mxu1 %vm311_vm1, %v11995_v15  ;;  %v3442_v26 = vadd.f32 %v3403_v20, %v3052_v38 }
 0x237   : > { %13756 = vst [vmem:[#allocation44_spill] sm:$0xff] %v11997_v23  ;;  %13757 = vst [vmem:[#allocation56_spill] sm:$0xff] %v11999_v34  ;;  %v3906_v14 = vadd.f32 %v11593_v4, %v3867_v41  ;;  %v3870_v58 = vmul.f32 %v11575_v24, %v3831_v44  ;;  %9449 = vmatprep.mubr.msk.f32.mxu0 %vm311_vm1, %v11997_v23  ;;  %v9363_v43 = vpop.f32.mrf.mxu0 }
 0x238   : > { %4010 = vst.msk [vmem:[#allocation3 + $0x1a8] sm:$0xff] %vm311_vm1, %v3936_v16  ;;  %v3939_v62 = vmax.f32 %v3907_v47, 0.0  ;;  %v3869_v6 = vmul.f32 %v11575_v24, %v3830_v2  ;;  %v3833_v55 = vadd.f32 %v9363_v43, %v3443_v52  ;;  %v12030_v44 = vld [vmem:[#allocation3 + $0x190] sm:$0xff] }
 0x239   : > { %9400 = vmatmul.mubr.msk.f32.gmra.mxu1 %vm311_vm1, %v12008_v7  ;;  %9450 = vmatmul.mubr.msk.f32.gmra.mxu0 %vm311_vm1, %v11999_v34  ;;  %v3938_v36 = vmax.f32 %v3906_v14, 0.0  ;;  %v3909_v45 = vadd.f32 %v11593_v4, %v3870_v58  ;;  %v3793_v37 = vpop.f32.mrf.mxu0 }
 0x23a   : > { %4013 = vst.msk [vmem:[#allocation3 + $0x1d0] sm:$0xff] %vm311_vm1, %v3939_v62  ;;  %v3908_v16 = vadd.f32 %v11593_v4, %v3869_v6  ;;  %v3872_v47 = vmul.f32 %v11575_v24, %v3833_v55  ;;  %v3832_v41 = vadd.f32 %v3793_v37, %v3442_v26  ;;  %v4733_v37 = vld [vmem:[#allocation3 + $0x9] sm:$0xff] }
 0x23b   : > { %v12017_v49 = vld [vmem:[#allocation3 + $0x188] sm:$0xff]  ;;  %4012 = vst.msk [vmem:[#allocation3 + $0x1c8] sm:$0xff] %vm311_vm1, %v3938_v36  ;;  %v3941_v20 = vmax.f32 %v3909_v45, 0.0 }
 0x23c   : > { %v12019_v1 = vld [vmem:[#allocation3 + $0x187] sm:$0xff]  ;;  %v12021_v38 = vld [vmem:[#allocation3 + $0x18f] sm:$0xff]  ;;  %9402 = vmatprep.mubr.msk.f32.mxu1 %vm311_vm1, %v12017_v49  ;;  %v3940_v52 = vmax.f32 %v3908_v16, 0.0  ;;  %v3911_v42 = vadd.f32 %v11593_v4, %v3872_v47  ;;  %v3871_v62 = vmul.f32 %v11575_v24, %v3832_v41 }
 0x23d   : > { %13758 = vst [vmem:[#allocation55_spill] sm:$0xff] %v12019_v1  ;;  %13759 = vst [vmem:[#allocation107_spill] sm:$0xff] %v12021_v38  ;;  %9452 = vmatprep.mubr.msk.f32.mxu0 %vm311_vm1, %v12019_v1  ;;  %9403 = vmatmul.mubr.msk.f32.gmra.mxu1 %vm311_vm1, %v12030_v44  ;;  %v12051_v36 = vld [vmem:[#allocation3 + $0x1b0] sm:$0xff] }
 0x23e   : > { %9453 = vmatmul.mubr.msk.f32.gmra.mxu0 %vm311_vm1, %v12021_v38  ;;  %4015 = vst.msk [vmem:[#allocation3 + $0x1f0] sm:$0xff] %vm311_vm1, %v3941_v20  ;;  %4014 = vst.msk [vmem:[#allocation3 + $0x1e8] sm:$0xff] %vm311_vm1, %v3940_v52  ;;  %v3943_v26 = vmax.f32 %v3911_v42, 0.0  ;;  %v3910_v43 = vadd.f32 %v11593_v4, %v3871_v62  ;;  %v4734_v52 = vld [vmem:[#allocation3 + $0x11] sm:$0xff] }
 0x23f   : > { %v12039_v14 = vld [vmem:[#allocation3 + $0x1a8] sm:$0xff] }
 0x240   : > { %v12041_v58 = vld [vmem:[#allocation3 + $0x1a7] sm:$0xff]  ;;  %v12043_v2 = vld [vmem:[#allocation3 + $0x1af] sm:$0xff]  ;;  %9405 = vmatprep.mubr.msk.f32.mxu1 %vm311_vm1, %v12039_v14  ;;  %4017 = vst.msk [vmem:[#allocation3 + $0x210] sm:$0xff] %vm311_vm1, %v3943_v26  ;;  %v3942_v24 = vmax.f32 %v3910_v43, 0.0  ;;  %v12102_v43 = vld [vmem:[%s13350_s2 + $0x18] sm:$0xf] }
 0x241   : > { %13760 = vst [vmem:[#allocation105_spill] sm:$0xff] %v12041_v58  ;;  %13761 = vst [vmem:[#allocation57_spill] sm:$0xff] %v12043_v2  ;;  %9455 = vmatprep.mubr.msk.f32.mxu0 %vm311_vm1, %v12041_v58  ;;  %9406 = vmatmul.mubr.msk.f32.gmra.mxu1 %vm311_vm1, %v12051_v36  ;;  %v12069_v55 = vld [vmem:[#allocation3 + $0x1d0] sm:$0xff] }
 0x242   : > { %9456 = vmatmul.mubr.msk.f32.gmra.mxu0 %vm311_vm1, %v12043_v2  ;;  %v12058_v45 = vld [vmem:[#allocation3 + $0x1c8] sm:$0xff]  ;;  %4016 = vst.msk [vmem:[#allocation3 + $0x208] sm:$0xff] %vm311_vm1, %v3942_v24 }
 0x243   : > { %v12060_v4 = vld [vmem:[#allocation3 + $0x1c7] sm:$0xff]  ;;  %v12062_v6 = vld [vmem:[#allocation3 + $0x1cf] sm:$0xff]  ;;  %9408 = vmatprep.mubr.msk.f32.mxu1 %vm311_vm1, %v12058_v45 }
 0x244   : > { %13762 = vst [vmem:[#allocation60_spill] sm:$0xff] %v12060_v4  ;;  %13763 = vst [vmem:[#allocation110_spill] sm:$0xff] %v12062_v6  ;;  %9458 = vmatprep.mubr.msk.f32.mxu0 %vm311_vm1, %v12060_v4  ;;  %v12097_v26 = vld [vmem:[#allocation3 + $0x29] sm:$0xff] }
 0x245   : > { %9409 = vmatmul.mubr.msk.f32.gmra.mxu1 %vm311_vm1, %v12069_v55  ;;  %v12075_v20 = vld [vmem:[#allocation3 + $0x1e8] sm:$0xff]  ;;  %v12085_v41 = vld [vmem:[#allocation3 + $0x1f0] sm:$0xff]  ;;  %v9368_v42 = vpop.f32.mrf.mxu1 }
 0x246   : > { %9459 = vmatmul.mubr.msk.f32.gmra.mxu0 %vm311_vm1, %v12062_v6  ;;  %v12077_v16 = vld [vmem:[#allocation3 + $0x1e7] sm:$0xff]  ;;  %v12079_v47 = vld [vmem:[#allocation3 + $0x1ef] sm:$0xff]  ;;  %9411 = vmatprep.mubr.msk.f32.mxu1 %vm311_vm1, %v12075_v20  ;;  %v9418_v62 = vpop.f32.mrf.mxu0 }
 0x247   : > { %13764 = vst [vmem:[#allocation106_spill] sm:$0xff] %v12077_v16  ;;  %9461 = vmatprep.mubr.msk.f32.mxu0 %vm311_vm1, %v12077_v16  ;;  %v12109_v24 = vadd.f32 %v9418_v62, %v9368_v42  ;;  %v12143_v42 = vld [vmem:[#allocation3 + $0x69] sm:$0xff]  ;;  %v12149_v62 = vld [vmem:[#allocation3 + $0x71] sm:$0xff] }
 0x249   : > { %9412 = vmatmul.mubr.msk.f32.gmra.mxu1 %vm311_vm1, %v12085_v41  ;;  %13765 = vst [vmem:[#allocation45_spill] sm:$0xff] %v12109_v24  ;;  %v12161_v24 = vld [vmem:[#allocation3 + $0x91] sm:$0xff] }
 0x24a   : > { %9462 = vmatmul.mubr.msk.f32.gmra.mxu0 %vm311_vm1, %v12079_v47  ;;  %9466 = vmatprep.mubr.msk.f32.mxu1 %vm311_vm1, %v4733_v37  ;;  %v9823_v37 = vld [vmem:[%s13350_s2 + $0x10] sm:$0xf] }
 0x24b   : > { %9516 = vmatprep.mubr.msk.f32.mxu0 %vm311_vm1, %v11683_v51  ;;  %v12107_v51 = vld [vmem:[%s13350_s2 + $0x1c] sm:$0xf] }
 0x24d   : > { %9467 = vmatmul.mubr.msk.f32.vlgmr.msra.gmra.mxu1 %vm311_vm1, %v4734_v52  ;;  %v12131_v52 = vld [vmem:[#allocation3 + $0x49] sm:$0xff] }
 0x24e   : > { %9517 = vmatmul.mubr.msk.f32.vlgmr.msra.gmra.mxu0 %vm311_vm1, %v11685_v63  ;;  %9565 = vmatpush3.msk.msra.mxu1 %vm550_vm0, %v9823_v37  ;;  %v12121_v63 = vld [vmem:[#allocation3 + $0x31] sm:$0xff]  ;;  %v12155_v37 = vld [vmem:[#allocation3 + $0x89] sm:$0xff] }
 0x24f   : > { %9469 = vmatprep.mubr.msk.f32.mxu1 %vm311_vm1, %v12097_v26  ;;  %9519 = vmatprep.mubr.msk.f32.mxu0 %vm311_vm1, %v11716_v59 }
 0x250   : > { %9615 = vmatpush3.msk.msra.mxu0 %vm550_vm0, %v11652_v33  ;;  %9664 = vmatprep.subr.msk.mxu1 %vm550_vm0, %v12102_v43  ;;  %v12137_v33 = vld [vmem:[#allocation3 + $0x51] sm:$0xff] }
 0x251   : > { %9714 = vmatprep.subr.msk.mxu0 %vm550_vm0, %v12107_v51  ;;  %9470 = vmatmul.mubr.msk.f32.gmra.mxu1 %vm311_vm1, %v12121_v63 }
 0x252   : > { %9520 = vmatmul.mubr.msk.f32.gmra.mxu0 %vm311_vm1, %v11718_v25  ;;  %9472 = vmatprep.mubr.msk.f32.mxu1 %vm311_vm1, %v12131_v52 }
 0x253   : > { %9522 = vmatprep.mubr.msk.f32.mxu0 %vm311_vm1, %v11749_v48 }
 0x255   : > { %9473 = vmatmul.mubr.msk.f32.gmra.mxu1 %vm311_vm1, %v12137_v33 }
 0x256   : > { %9523 = vmatmul.mubr.msk.f32.gmra.mxu0 %vm311_vm1, %v11751_v18  ;;  %9475 = vmatprep.mubr.msk.f32.mxu1 %vm311_vm1, %v12143_v42  ;;  %v12289_v18 = vld [vmem:[#allocation3 + $0x207] sm:$0xff] }
 0x257   : > { %9525 = vmatprep.mubr.msk.f32.mxu0 %vm311_vm1, %v11782_v28  ;;  %v12167_v28 = vld [vmem:[#allocation3 + $0xa9] sm:$0xff]  ;;  %13766 = vst [vmem:[#allocation59_spill] sm:$0xff] %v12289_v18 }
 0x259   : > { %9476 = vmatmul.mubr.msk.f32.gmra.mxu1 %vm311_vm1, %v12149_v62 }
 0x25a   : > { %9526 = vmatmul.mubr.msk.f32.gmra.mxu0 %vm311_vm1, %v11784_v22  ;;  %9478 = vmatprep.mubr.msk.f32.mxu1 %vm311_vm1, %v12155_v37  ;;  %v12173_v22 = vld [vmem:[#allocation3 + $0xb1] sm:$0xff] }
 0x25b   : > { %9528 = vmatprep.mubr.msk.f32.mxu0 %vm311_vm1, %v11815_v27  ;;  %v12179_v27 = vld [vmem:[#allocation3 + $0xc9] sm:$0xff] }
 0x25d   : > { %9479 = vmatmul.mubr.msk.f32.gmra.mxu1 %vm311_vm1, %v12161_v24 }
 0x25e   : > { %9529 = vmatmul.mubr.msk.f32.gmra.mxu0 %vm311_vm1, %v11817_v35  ;;  %9481 = vmatprep.mubr.msk.f32.mxu1 %vm311_vm1, %v12167_v28  ;;  %v12185_v35 = vld [vmem:[#allocation3 + $0xd1] sm:$0xff] }
 0x25f   : > { %9531 = vmatprep.mubr.msk.f32.mxu0 %vm311_vm1, %v11848_v30  ;;  %v12191_v30 = vld [vmem:[#allocation3 + $0xe9] sm:$0xff] }
 0x261   : > { %9482 = vmatmul.mubr.msk.f32.gmra.mxu1 %vm311_vm1, %v12173_v22 }
 0x262   : > { %9532 = vmatmul.mubr.msk.f32.gmra.mxu0 %vm311_vm1, %v11850_v13  ;;  %9484 = vmatprep.mubr.msk.f32.mxu1 %vm311_vm1, %v12179_v27  ;;  %v12197_v13 = vld [vmem:[#allocation3 + $0xf1] sm:$0xff] }
 0x263   : > { %9534 = vmatprep.mubr.msk.f32.mxu0 %vm311_vm1, %v11881_v12  ;;  %v12203_v12 = vld [vmem:[#allocation3 + $0x109] sm:$0xff] }
 0x265   : > { %9485 = vmatmul.mubr.msk.f32.gmra.mxu1 %vm311_vm1, %v12185_v35 }
 0x266   : > { %9535 = vmatmul.mubr.msk.f32.gmra.mxu0 %vm311_vm1, %v11883_v60  ;;  %9487 = vmatprep.mubr.msk.f32.mxu1 %vm311_vm1, %v12191_v30  ;;  %v12209_v60 = vld [vmem:[#allocation3 + $0x111] sm:$0xff] }
 0x267   : > { %9537 = vmatprep.mubr.msk.f32.mxu0 %vm311_vm1, %v11914_v61  ;;  %v12215_v61 = vld [vmem:[#allocation3 + $0x129] sm:$0xff] }
 0x269   : > { %9488 = vmatmul.mubr.msk.f32.gmra.mxu1 %vm311_vm1, %v12197_v13 }
 0x26a   : > { %9538 = vmatmul.mubr.msk.f32.gmra.mxu0 %vm311_vm1, %v11916_v57  ;;  %9490 = vmatprep.mubr.msk.f32.mxu1 %vm311_vm1, %v12203_v12  ;;  %v12221_v57 = vld [vmem:[#allocation3 + $0x131] sm:$0xff] }
 0x26b   : > { %9540 = vmatprep.mubr.msk.f32.mxu0 %vm311_vm1, %v11945_v9  ;;  %v12227_v9 = vld [vmem:[#allocation3 + $0x149] sm:$0xff] }
 0x26d   : > { %9491 = vmatmul.mubr.msk.f32.gmra.mxu1 %vm311_vm1, %v12209_v60 }
 0x26e   : > { %9541 = vmatmul.mubr.msk.f32.gmra.mxu0 %vm311_vm1, %v11947_v21  ;;  %9493 = vmatprep.mubr.msk.f32.mxu1 %vm311_vm1, %v12215_v61  ;;  %v12233_v21 = vld [vmem:[#allocation3 + $0x151] sm:$0xff] }
 0x26f   : > { %9543 = vmatprep.mubr.msk.f32.mxu0 %vm311_vm1, %v11974_v32  ;;  %v12239_v32 = vld [vmem:[#allocation3 + $0x169] sm:$0xff] }
 0x271   : > { %9494 = vmatmul.mubr.msk.f32.gmra.mxu1 %vm311_vm1, %v12221_v57 }
 0x272   : > { %9544 = vmatmul.mubr.msk.f32.gmra.mxu0 %vm311_vm1, %v11976_v8  ;;  %9496 = vmatprep.mubr.msk.f32.mxu1 %vm311_vm1, %v12227_v9  ;;  %v12245_v8 = vld [vmem:[#allocation3 + $0x171] sm:$0xff] }
 0x273   : > { %9546 = vmatprep.mubr.msk.f32.mxu0 %vm311_vm1, %v11997_v23  ;;  %v12251_v23 = vld [vmem:[#allocation3 + $0x189] sm:$0xff] }
 0x275   : > { %9497 = vmatmul.mubr.msk.f32.gmra.mxu1 %vm311_vm1, %v12233_v21 }
 0x276   : > { %9547 = vmatmul.mubr.msk.f32.gmra.mxu0 %vm311_vm1, %v11999_v34  ;;  %9499 = vmatprep.mubr.msk.f32.mxu1 %vm311_vm1, %v12239_v32  ;;  %v12257_v34 = vld [vmem:[#allocation3 + $0x191] sm:$0xff] }
 0x277   : > { %9549 = vmatprep.mubr.msk.f32.mxu0 %vm311_vm1, %v12019_v1  ;;  %v12263_v1 = vld [vmem:[#allocation3 + $0x1a9] sm:$0xff] }
 0x279   : > { %9500 = vmatmul.mubr.msk.f32.gmra.mxu1 %vm311_vm1, %v12245_v8 }
 0x27a   : > { %9550 = vmatmul.mubr.msk.f32.gmra.mxu0 %vm311_vm1, %v12021_v38  ;;  %9502 = vmatprep.mubr.msk.f32.mxu1 %vm311_vm1, %v12251_v23  ;;  %v12269_v38 = vld [vmem:[#allocation3 + $0x1b1] sm:$0xff] }
 0x27b   : > { %9552 = vmatprep.mubr.msk.f32.mxu0 %vm311_vm1, %v12041_v58  ;;  %v12275_v58 = vld [vmem:[#allocation3 + $0x1c9] sm:$0xff] }
 0x27d   : > { %9503 = vmatmul.mubr.msk.f32.gmra.mxu1 %vm311_vm1, %v12257_v34 }
 0x27e   : > { %9553 = vmatmul.mubr.msk.f32.gmra.mxu0 %vm311_vm1, %v12043_v2  ;;  %9505 = vmatprep.mubr.msk.f32.mxu1 %vm311_vm1, %v12263_v1  ;;  %v12281_v2 = vld [vmem:[#allocation3 + $0x1d1] sm:$0xff] }
 0x27f   : > { %9555 = vmatprep.mubr.msk.f32.mxu0 %vm311_vm1, %v12060_v4  ;;  %v12287_v4 = vld [vmem:[#allocation3 + $0x1e9] sm:$0xff] }
 0x281   : > { %9506 = vmatmul.mubr.msk.f32.gmra.mxu1 %vm311_vm1, %v12269_v38 }
 0x282   : > { %9556 = vmatmul.mubr.msk.f32.gmra.mxu0 %vm311_vm1, %v12062_v6  ;;  %9508 = vmatprep.mubr.msk.f32.mxu1 %vm311_vm1, %v12275_v58  ;;  %v12295_v6 = vld [vmem:[#allocation3 + $0x1f1] sm:$0xff] }
 0x283   : > { %9558 = vmatprep.mubr.msk.f32.mxu0 %vm311_vm1, %v12077_v16  ;;  %v12297_v16 = vld [vmem:[#allocation3 + $0x20f] sm:$0xff] }
 0x285   : > { %9509 = vmatmul.mubr.msk.f32.gmra.mxu1 %vm311_vm1, %v12281_v2 }
 0x286   : > { %9559 = vmatmul.mubr.msk.f32.gmra.mxu0 %vm311_vm1, %v12079_v47  ;;  %9511 = vmatprep.mubr.msk.f32.mxu1 %vm311_vm1, %v12287_v4 }
 0x287   : > { %9561 = vmatprep.mubr.msk.f32.mxu0 %vm311_vm1, %v12289_v18  ;;  %v12314_v18 = vld [vmem:[%s13350_s2 + $0x20] sm:$0xf] }
 0x289   : > { %9512 = vmatmul.mubr.msk.f32.gmra.mxu1 %vm311_vm1, %v12295_v6 }
 0x28a   : > { %9562 = vmatmul.mubr.msk.f32.gmra.mxu0 %vm311_vm1, %v12297_v16  ;;  %9566 = vmatprep.mubr.msk.f32.mxu1 %vm311_vm1, %v11681_v31  ;;  %v13767_v31 = vld [vmem:[#allocation48_spill] sm:$0xff] }
 0x28b   : > { %9616 = vmatprep.mubr.msk.f32.mxu0 %vm311_vm1, %v12097_v26  ;;  %v13769_v26 = vld [vmem:[#allocation49_spill] sm:$0xff] }
 0x28d   : > { %9567 = vmatmul.mubr.msk.f32.vlgmr.msra.gmra.mxu1 %vm311_vm1, %v11694_v11  ;;  %v13768_v11 = vld [vmem:[#allocation29_spill] sm:$0xff] }
 0x28e   : > { %9617 = vmatmul.mubr.msk.f32.vlgmr.msra.gmra.mxu0 %vm311_vm1, %v12121_v63  ;;  %9665 = vmatpush3.msk.msra.mxu1 %vm550_vm0, %v12102_v43  ;;  %v13770_v43 = vld [vmem:[#allocation43_spill] sm:$0xff]  ;;  %v13773_v63 = vld [vmem:[#allocation24_spill] sm:$0xff] }
 0x28f   : > { %9569 = vmatprep.mubr.msk.f32.mxu1 %vm311_vm1, %v11714_v50  ;;  %9619 = vmatprep.mubr.msk.f32.mxu0 %vm311_vm1, %v12131_v52 }
 0x290   : > { %9715 = vmatpush3.msk.msra.mxu0 %vm550_vm0, %v12107_v51  ;;  %9764 = vmatprep.subr.msk.mxu1 %vm550_vm0, %v12314_v18 }
 0x291   : > { %9570 = vmatmul.mubr.msk.f32.gmra.mxu1 %vm311_vm1, %v11727_v19 }
 0x292   : > { %9620 = vmatmul.mubr.msk.f32.gmra.mxu0 %vm311_vm1, %v12137_v33  ;;  %9572 = vmatprep.mubr.msk.f32.mxu1 %vm311_vm1, %v11747_v53 }
 0x293   : > { %9622 = vmatprep.mubr.msk.f32.mxu0 %vm311_vm1, %v12143_v42 }
 0x295   : > { %9573 = vmatmul.mubr.msk.f32.gmra.mxu1 %vm311_vm1, %v11760_v5 }
 0x296   : > { %9623 = vmatmul.mubr.msk.f32.gmra.mxu0 %vm311_vm1, %v12149_v62  ;;  %9575 = vmatprep.mubr.msk.f32.mxu1 %vm311_vm1, %v11780_v54 }
 0x297   : > { %9625 = vmatprep.mubr.msk.f32.mxu0 %vm311_vm1, %v12155_v37 }
 0x299   : > { %9576 = vmatmul.mubr.msk.f32.gmra.mxu1 %vm311_vm1, %v11793_v29 }
 0x29a   : > { %9626 = vmatmul.mubr.msk.f32.gmra.mxu0 %vm311_vm1, %v12161_v24  ;;  %9578 = vmatprep.mubr.msk.f32.mxu1 %vm311_vm1, %v11813_v10 }
 0x29b   : > { %9628 = vmatprep.mubr.msk.f32.mxu0 %vm311_vm1, %v12167_v28 }
 0x29d   : > { %9579 = vmatmul.mubr.msk.f32.gmra.mxu1 %vm311_vm1, %v11826_v3 }
 0x29e   : > { %9629 = vmatmul.mubr.msk.f32.gmra.mxu0 %vm311_vm1, %v12173_v22  ;;  %9581 = vmatprep.mubr.msk.f32.mxu1 %vm311_vm1, %v11846_v0 }
 0x29f   : > { %9631 = vmatprep.mubr.msk.f32.mxu0 %vm311_vm1, %v12179_v27 }
 0x2a1   : > { %9582 = vmatmul.mubr.msk.f32.gmra.mxu1 %vm311_vm1, %v13767_v31 }
 0x2a2   : > { %9632 = vmatmul.mubr.msk.f32.gmra.mxu0 %vm311_vm1, %v12185_v35  ;;  %9584 = vmatprep.mubr.msk.f32.mxu1 %vm311_vm1, %v11879_v39 }
 0x2a3   : > { %9634 = vmatprep.mubr.msk.f32.mxu0 %vm311_vm1, %v12191_v30 }
 0x2a5   : > { %9585 = vmatmul.mubr.msk.f32.gmra.mxu1 %vm311_vm1, %v13768_v11 }
 0x2a6   : > { %9635 = vmatmul.mubr.msk.f32.gmra.mxu0 %vm311_vm1, %v12197_v13  ;;  %9587 = vmatprep.mubr.msk.f32.mxu1 %vm311_vm1, %v13769_v26 }
 0x2a7   : > { %9637 = vmatprep.mubr.msk.f32.mxu0 %vm311_vm1, %v12203_v12 }
 0x2a9   : > { %9588 = vmatmul.mubr.msk.f32.gmra.mxu1 %vm311_vm1, %v13770_v43 }
 0x2aa   : > { %9638 = vmatmul.mubr.msk.f32.gmra.mxu0 %vm311_vm1, %v12209_v60  ;;  %9590 = vmatprep.mubr.msk.f32.mxu1 %vm311_vm1, %v11943_v40 }
 0x2ab   : > { %9640 = vmatprep.mubr.msk.f32.mxu0 %vm311_vm1, %v12215_v61 }
 0x2ad   : > { %9591 = vmatmul.mubr.msk.f32.gmra.mxu1 %vm311_vm1, %v11956_v17 }
 0x2ae   : > { %9641 = vmatmul.mubr.msk.f32.gmra.mxu0 %vm311_vm1, %v12221_v57  ;;  %9593 = vmatprep.mubr.msk.f32.mxu1 %vm311_vm1, %v11972_v56 }
 0x2af   : > { %9643 = vmatprep.mubr.msk.f32.mxu0 %vm311_vm1, %v12227_v9 }
 0x2b1   : > { %9594 = vmatmul.mubr.msk.f32.gmra.mxu1 %vm311_vm1, %v11985_v46 }
 0x2b2   : > { %9644 = vmatmul.mubr.msk.f32.gmra.mxu0 %vm311_vm1, %v12233_v21  ;;  %9596 = vmatprep.mubr.msk.f32.mxu1 %vm311_vm1, %v11995_v15 }
 0x2b3   : > { %9646 = vmatprep.mubr.msk.f32.mxu0 %vm311_vm1, %v12239_v32 }
 0x2b5   : > { %9597 = vmatmul.mubr.msk.f32.gmra.mxu1 %vm311_vm1, %v12008_v7 }
 0x2b6   : > { %9647 = vmatmul.mubr.msk.f32.gmra.mxu0 %vm311_vm1, %v12245_v8  ;;  %9599 = vmatprep.mubr.msk.f32.mxu1 %vm311_vm1, %v12017_v49  ;;  %v12434_v8 = vld [vmem:[#allocation3 + $0x208] sm:$0xff] }
 0x2b7   : > { %9649 = vmatprep.mubr.msk.f32.mxu0 %vm311_vm1, %v12251_v23 }
 0x2b9   : > { %9600 = vmatmul.mubr.msk.f32.gmra.mxu1 %vm311_vm1, %v12030_v44 }
 0x2ba   : > { %9650 = vmatmul.mubr.msk.f32.gmra.mxu0 %vm311_vm1, %v12257_v34  ;;  %9602 = vmatprep.mubr.msk.f32.mxu1 %vm311_vm1, %v12039_v14  ;;  %v12436_v34 = vld [vmem:[#allocation3 + $0x209] sm:$0xff] }
 0x2bb   : > { %9652 = vmatprep.mubr.msk.f32.mxu0 %vm311_vm1, %v12263_v1  ;;  %v12442_v1 = vld [vmem:[#allocation3 + $0x210] sm:$0xff] }
 0x2bd   : > { %9603 = vmatmul.mubr.msk.f32.gmra.mxu1 %vm311_vm1, %v12051_v36 }
 0x2be   : > { %9653 = vmatmul.mubr.msk.f32.gmra.mxu0 %vm311_vm1, %v12269_v38  ;;  %9605 = vmatprep.mubr.msk.f32.mxu1 %vm311_vm1, %v12058_v45  ;;  %v12444_v38 = vld [vmem:[#allocation3 + $0x211] sm:$0xff] }
 0x2bf   : > { %9655 = vmatprep.mubr.msk.f32.mxu0 %vm311_vm1, %v12275_v58  ;;  %v12462_v58 = vpop.f32.mrf.mxu1 }
 0x2c1   : > { %9606 = vmatmul.mubr.msk.f32.gmra.mxu1 %vm311_vm1, %v12069_v55 }
 0x2c2   : > { %9656 = vmatmul.mubr.msk.f32.gmra.mxu0 %vm311_vm1, %v12281_v2  ;;  %9608 = vmatprep.mubr.msk.f32.mxu1 %vm311_vm1, %v12075_v20  ;;  %v12464_v2 = vpop.f32.mrf.mxu0 }
 0x2c3   : > { %9658 = vmatprep.mubr.msk.f32.mxu0 %vm311_vm1, %v12287_v4  ;;  %v13771_v4 = vld [vmem:[#allocation62_spill] sm:$0xff] }
 0x2c5   : > { %9609 = vmatmul.mubr.msk.f32.gmra.mxu1 %vm311_vm1, %v12085_v41 }
 0x2c6   : > { %9659 = vmatmul.mubr.msk.f32.gmra.mxu0 %vm311_vm1, %v12295_v6  ;;  %9611 = vmatprep.mubr.msk.f32.mxu1 %vm311_vm1, %v12434_v8 }
 0x2c7   : > { %9661 = vmatprep.mubr.msk.f32.mxu0 %vm311_vm1, %v12436_v34 }
 0x2c9   : > { %9612 = vmatmul.mubr.msk.f32.gmra.mxu1 %vm311_vm1, %v12442_v1 }
 0x2ca   : > { %9662 = vmatmul.mubr.msk.f32.gmra.mxu0 %vm311_vm1, %v12444_v38  ;;  %9666 = vmatprep.mubr.msk.f32.mxu1 %vm311_vm1, %v11716_v59 }
 0x2cb   : > { %9716 = vmatprep.mubr.msk.f32.mxu0 %vm311_vm1, %v11714_v50 }
 0x2cd   : > { %9667 = vmatmul.mubr.msk.f32.vlgmr.msra.gmra.mxu1 %vm311_vm1, %v11718_v25 }
 0x2ce   : > { %9717 = vmatmul.mubr.msk.f32.vlgmr.msra.gmra.mxu0 %vm311_vm1, %v11727_v19  ;;  %9765 = vmatpush3.msk.msra.mxu1 %vm550_vm0, %v12314_v18  ;;  %v13772_v19 = vld [vmem:[#allocation63_spill] sm:$0xff] }
 0x2cf   : > { %9669 = vmatprep.mubr.msk.f32.mxu1 %vm311_vm1, %v11749_v48  ;;  %9719 = vmatprep.mubr.msk.f32.mxu0 %vm311_vm1, %v11747_v53  ;;  %v9371_v50 = vpop.f32.mrf.mxu1 }
 0x2d0   : > { %v9421_v59 = vpop.f32.mrf.mxu0 }
 0x2d1   : > { %9670 = vmatmul.mubr.msk.f32.gmra.mxu1 %vm311_vm1, %v13771_v4  ;;  %v12472_v25 = vadd.f32 %v9421_v59, %v9371_v50  ;;  %v4260_v48 = vpop.f32.mrf.mxu1  ;;  %v13774_v50 = vld [vmem:[#allocation26_spill] sm:$0xff] }
 0x2d2   : > { %9720 = vmatmul.mubr.msk.f32.gmra.mxu0 %vm311_vm1, %v11760_v5  ;;  %9672 = vmatprep.mubr.msk.f32.mxu1 %vm311_vm1, %v13772_v19  ;;  %v4584_v18 = vpop.f32.mrf.mxu0 }
 0x2d3   : > { %9722 = vmatprep.mubr.msk.f32.mxu0 %vm311_vm1, %v11780_v54  ;;  %v12478_v6 = vadd.f32 %v4584_v18, %v4260_v48  ;;  %v9374_v53 = vpop.f32.mrf.mxu1  ;;  %v13775_v18 = vld [vmem:[#allocation25_spill] sm:$0xff] }
 0x2d4   : > { %v9424_v51 = vpop.f32.mrf.mxu0 }
 0x2d5   : > { %9673 = vmatmul.mubr.msk.f32.gmra.mxu1 %vm311_vm1, %v13773_v63  ;;  %v12484_v5 = vadd.f32 %v9424_v51, %v9374_v53  ;;  %v4270_v54 = vpop.f32.mrf.mxu1  ;;  %v13776_v53 = vld [vmem:[#allocation27_spill] sm:$0xff] }
 0x2d6   : > { %9723 = vmatmul.mubr.msk.f32.gmra.mxu0 %vm311_vm1, %v11793_v29  ;;  %9675 = vmatprep.mubr.msk.f32.mxu1 %vm311_vm1, %v13774_v50  ;;  %v4594_v59 = vpop.f32.mrf.mxu0 }
 0x2d7   : > { %9725 = vmatprep.mubr.msk.f32.mxu0 %vm311_vm1, %v11813_v10  ;;  %v12490_v4 = vadd.f32 %v4594_v59, %v4270_v54  ;;  %v9377_v19 = vpop.f32.mrf.mxu1  ;;  %v13777_v59 = vld [vmem:[#allocation31_spill] sm:$0xff] }
 0x2d8   : > { %v9427_v48 = vpop.f32.mrf.mxu0 }
 0x2d9   : > { %9676 = vmatmul.mubr.msk.f32.gmra.mxu1 %vm311_vm1, %v13775_v18  ;;  %v12496_v29 = vadd.f32 %v9427_v48, %v9377_v19  ;;  %v4280_v10 = vpop.f32.mrf.mxu1  ;;  %v13778_v19 = vld [vmem:[#allocation47_spill] sm:$0xff] }
 0x2da   : > { %9726 = vmatmul.mubr.msk.f32.gmra.mxu0 %vm311_vm1, %v11826_v3  ;;  %9678 = vmatprep.mubr.msk.f32.mxu1 %vm311_vm1, %v13776_v53  ;;  %v4604_v51 = vpop.f32.mrf.mxu0 }
 0x2db   : > { %9728 = vmatprep.mubr.msk.f32.mxu0 %vm311_vm1, %v11846_v0  ;;  %v12502_v63 = vadd.f32 %v4604_v51, %v4280_v10  ;;  %v9380_v50 = vpop.f32.mrf.mxu1  ;;  %v13779_v51 = vld [vmem:[#allocation28_spill] sm:$0xff] }
 0x2dc   : > { %v9430_v54 = vpop.f32.mrf.mxu0 }
 0x2dd   : > { %9679 = vmatmul.mubr.msk.f32.gmra.mxu1 %vm311_vm1, %v13777_v59  ;;  %v12508_v3 = vadd.f32 %v9430_v54, %v9380_v50  ;;  %v4290_v0 = vpop.f32.mrf.mxu1  ;;  %v13780_v50 = vld [vmem:[#allocation30_spill] sm:$0xff] }
 0x2de   : > { %9729 = vmatmul.mubr.msk.f32.gmra.mxu0 %vm311_vm1, %v13767_v31  ;;  %9681 = vmatprep.mubr.msk.f32.mxu1 %vm311_vm1, %v13778_v19  ;;  %v4614_v48 = vpop.f32.mrf.mxu0 }
 0x2df   : > { %9731 = vmatprep.mubr.msk.f32.mxu0 %vm311_vm1, %v11879_v39  ;;  %v12514_v18 = vadd.f32 %v4614_v48, %v4290_v0  ;;  %v9383_v53 = vpop.f32.mrf.mxu1  ;;  %v13781_v48 = vld [vmem:[#allocation40_spill] sm:$0xff] }
 0x2e0   : > { %v9433_v10 = vpop.f32.mrf.mxu0 }
 0x2e1   : > { %9682 = vmatmul.mubr.msk.f32.gmra.mxu1 %vm311_vm1, %v13779_v51  ;;  %v12520_v31 = vadd.f32 %v9433_v10, %v9383_v53  ;;  %v4300_v39 = vpop.f32.mrf.mxu1  ;;  %v13782_v53 = vld [vmem:[#allocation53_spill] sm:$0xff] }
 0x2e2   : > { %9732 = vmatmul.mubr.msk.f32.gmra.mxu0 %vm311_vm1, %v13768_v11  ;;  %9684 = vmatprep.mubr.msk.f32.mxu1 %vm311_vm1, %v13780_v50  ;;  %v4624_v54 = vpop.f32.mrf.mxu0 }
 0x2e3   : > { %9734 = vmatprep.mubr.msk.f32.mxu0 %vm311_vm1, %v13769_v26  ;;  %v12526_v59 = vadd.f32 %v4624_v54, %v4300_v39  ;;  %v13783_v54 = vld [vmem:[#allocation50_spill] sm:$0xff] }
 0x2e4   : > { %v9386_v19 = vpop.f32.mrf.mxu1  ;;  %v9436_v0 = vpop.f32.mrf.mxu0 }
 0x2e5   : > { %9685 = vmatmul.mubr.msk.f32.gmra.mxu1 %vm311_vm1, %v13781_v48  ;;  %v12532_v11 = vadd.f32 %v9436_v0, %v9386_v19  ;;  %v13784_v19 = vld [vmem:[#allocation54_spill] sm:$0xff] }
 0x2e6   : > { %9735 = vmatmul.mubr.msk.f32.gmra.mxu0 %vm311_vm1, %v13770_v43  ;;  %9687 = vmatprep.mubr.msk.f32.mxu1 %vm311_vm1, %v13782_v53  ;;  %v4310_v26 = vpop.f32.mrf.mxu1  ;;  %v4634_v10 = vpop.f32.mrf.mxu0 }
 0x2e7   : > { %9737 = vmatprep.mubr.msk.f32.mxu0 %vm311_vm1, %v11943_v40  ;;  %v12538_v51 = vadd.f32 %v4634_v10, %v4310_v26  ;;  %v13785_v10 = vld [vmem:[#allocation104_spill] sm:$0xff] }
 0x2e8   : > { %v9389_v50 = vpop.f32.mrf.mxu1 }
 0x2e9   : > { %v9439_v39 = vpop.f32.mrf.mxu0  ;;  %9688 = vmatmul.mubr.msk.f32.gmra.mxu1 %vm311_vm1, %v13783_v54 }
 0x2ea   : > { %9738 = vmatmul.mubr.msk.f32.gmra.mxu0 %vm311_vm1, %v11956_v17  ;;  %v12544_v43 = vadd.f32 %v9439_v39, %v9389_v50  ;;  %9690 = vmatprep.mubr.msk.f32.mxu1 %vm311_vm1, %v13784_v19  ;;  %v4320_v40 = vpop.f32.mrf.mxu1  ;;  %v13786_v50 = vld [vmem:[#allocation44_spill] sm:$0xff] }
 0x2eb   : > { %9740 = vmatprep.mubr.msk.f32.mxu0 %vm311_vm1, %v11972_v56  ;;  %v4644_v0 = vpop.f32.mrf.mxu0 }
 0x2ec   : > { %v12550_v48 = vadd.f32 %v4644_v0, %v4320_v40  ;;  %v9392_v53 = vpop.f32.mrf.mxu1  ;;  %v13787_v0 = vld [vmem:[#allocation56_spill] sm:$0xff] }
 0x2ed   : > { %v9442_v26 = vpop.f32.mrf.mxu0  ;;  %9691 = vmatmul.mubr.msk.f32.gmra.mxu1 %vm311_vm1, %v13785_v10 }
 0x2ee   : > { %9741 = vmatmul.mubr.msk.f32.gmra.mxu0 %vm311_vm1, %v11985_v46  ;;  %v12556_v17 = vadd.f32 %v9442_v26, %v9392_v53  ;;  %9693 = vmatprep.mubr.msk.f32.mxu1 %vm311_vm1, %v13786_v50  ;;  %v4330_v56 = vpop.f32.mrf.mxu1  ;;  %v13788_v53 = vld [vmem:[#allocation55_spill] sm:$0xff] }
 0x2ef   : > { %9743 = vmatprep.mubr.msk.f32.mxu0 %vm311_vm1, %v11995_v15  ;;  %v4654_v39 = vpop.f32.mrf.mxu0 }
 0x2f0   : > { %v12562_v54 = vadd.f32 %v4654_v39, %v4330_v56  ;;  %v13789_v39 = vld [vmem:[#allocation107_spill] sm:$0xff] }
 0x2f1   : > { %v9395_v19 = vpop.f32.mrf.mxu1  ;;  %v9445_v40 = vpop.f32.mrf.mxu0  ;;  %9694 = vmatmul.mubr.msk.f32.gmra.mxu1 %vm311_vm1, %v13787_v0 }
 0x2f2   : > { %9744 = vmatmul.mubr.msk.f32.gmra.mxu0 %vm311_vm1, %v12008_v7  ;;  %v12568_v46 = vadd.f32 %v9445_v40, %v9395_v19  ;;  %9696 = vmatprep.mubr.msk.f32.mxu1 %vm311_vm1, %v13788_v53  ;;  %v13790_v19 = vld [vmem:[#allocation105_spill] sm:$0xff] }
 0x2f3   : > { %9746 = vmatprep.mubr.msk.f32.mxu0 %vm311_vm1, %v12017_v49  ;;  %v4340_v15 = vpop.f32.mrf.mxu1  ;;  %v4664_v26 = vpop.f32.mrf.mxu0 }
 0x2f4   : > { %v12574_v10 = vadd.f32 %v4664_v26, %v4340_v15  ;;  %v13791_v26 = vld [vmem:[#allocation57_spill] sm:$0xff] }
 0x2f5   : > { %v9398_v50 = vpop.f32.mrf.mxu1  ;;  %v9448_v56 = vpop.f32.mrf.mxu0  ;;  %9697 = vmatmul.mubr.msk.f32.gmra.mxu1 %vm311_vm1, %v13789_v39 }
 0x2f6   : > { %9747 = vmatmul.mubr.msk.f32.gmra.mxu0 %vm311_vm1, %v12030_v44  ;;  %v12580_v7 = vadd.f32 %v9448_v56, %v9398_v50  ;;  %9699 = vmatprep.mubr.msk.f32.mxu1 %vm311_vm1, %v13790_v19  ;;  %v13792_v50 = vld [vmem:[#allocation60_spill] sm:$0xff] }
 0x2f7   : > { %9749 = vmatprep.mubr.msk.f32.mxu0 %vm311_vm1, %v12039_v14  ;;  %v4350_v49 = vpop.f32.mrf.mxu1  ;;  %v4674_v40 = vpop.f32.mrf.mxu0 }
 0x2f8   : > { %v12586_v0 = vadd.f32 %v4674_v40, %v4350_v49  ;;  %v13793_v40 = vld [vmem:[#allocation110_spill] sm:$0xff] }
 0x2f9   : > { %v9401_v53 = vpop.f32.mrf.mxu1  ;;  %v9451_v15 = vpop.f32.mrf.mxu0  ;;  %9700 = vmatmul.mubr.msk.f32.gmra.mxu1 %vm311_vm1, %v13791_v26 }
 0x2fa   : > { %9750 = vmatmul.mubr.msk.f32.gmra.mxu0 %vm311_vm1, %v12051_v36  ;;  %v12592_v44 = vadd.f32 %v9451_v15, %v9401_v53  ;;  %9702 = vmatprep.mubr.msk.f32.mxu1 %vm311_vm1, %v13792_v50  ;;  %v13794_v53 = vld [vmem:[#allocation106_spill] sm:$0xff] }
 0x2fb   : > { %9752 = vmatprep.mubr.msk.f32.mxu0 %vm311_vm1, %v12058_v45  ;;  %v4360_v14 = vpop.f32.mrf.mxu1  ;;  %v4684_v56 = vpop.f32.mrf.mxu0 }
 0x2fc   : > { %v12598_v39 = vadd.f32 %v4684_v56, %v4360_v14  ;;  %v13795_v56 = vld [vmem:[#allocation59_spill] sm:$0xff] }
 0x2fd   : > { %v9404_v19 = vpop.f32.mrf.mxu1  ;;  %9703 = vmatmul.mubr.msk.f32.gmra.mxu1 %vm311_vm1, %v13793_v40  ;;  %v6714_v40 = vld [vmem:[#allocation3 + $0x228] sm:$0xff] }
 0x2fe   : > { %v9454_v49 = vpop.f32.mrf.mxu0  ;;  %9753 = vmatmul.mubr.msk.f32.gmra.mxu0 %vm311_vm1, %v12069_v55  ;;  %9705 = vmatprep.mubr.msk.f32.mxu1 %vm311_vm1, %v13794_v53 }
 0x2ff   : > { %v12604_v36 = vadd.f32 %v9454_v49, %v9404_v19  ;;  %9755 = vmatprep.mubr.msk.f32.mxu0 %vm311_vm1, %v12075_v20  ;;  %v4370_v45 = vpop.f32.mrf.mxu1  ;;  %v6324_v49 = vld [vmem:[#allocation3 + $0x227] sm:$0xff] }
 0x300   : > { %v4694_v15 = vpop.f32.mrf.mxu0 }
 0x301   : > { %v12610_v26 = vadd.f32 %v4694_v15, %v4370_v45  ;;  %v9407_v50 = vpop.f32.mrf.mxu1  ;;  %9706 = vmatmul.mubr.msk.f32.gmra.mxu1 %vm311_vm1, %v12079_v47 }
 0x302   : > { %v9457_v14 = vpop.f32.mrf.mxu0  ;;  %9756 = vmatmul.mubr.msk.f32.gmra.mxu0 %vm311_vm1, %v12085_v41  ;;  %9708 = vmatprep.mubr.msk.f32.mxu1 %vm311_vm1, %v13795_v56  ;;  %v6325_v41 = vld [vmem:[#allocation3 + $0x22f] sm:$0xff] }
 0x303   : > { %v12616_v55 = vadd.f32 %v9457_v14, %v9407_v50  ;;  %9758 = vmatprep.mubr.msk.f32.mxu0 %vm311_vm1, %v12434_v8  ;;  %v4380_v20 = vpop.f32.mrf.mxu1  ;;  %v6715_v8 = vld [vmem:[#allocation3 + $0x230] sm:$0xff] }
 0x304   : > { %v4704_v19 = vpop.f32.mrf.mxu0 }
 0x305   : > { %v12622_v53 = vadd.f32 %v4704_v19, %v4380_v20  ;;  %v9410_v45 = vpop.f32.mrf.mxu1  ;;  %9709 = vmatmul.mubr.msk.f32.gmra.mxu1 %vm311_vm1, %v12297_v16 }
 0x306   : > { %v9460_v15 = vpop.f32.mrf.mxu0  ;;  %9759 = vmatmul.mubr.msk.f32.gmra.mxu0 %vm311_vm1, %v12442_v1  ;;  %9711 = vmatprep.mubr.msk.f32.mxu1 %vm311_vm1, %v6324_v49 }
 0x307   : > { %v12628_v47 = vadd.f32 %v9460_v15, %v9410_v45  ;;  %9761 = vmatprep.mubr.msk.f32.mxu0 %vm311_vm1, %v6714_v40  ;;  %v4390_v50 = vpop.f32.mrf.mxu1 }
 0x308   : > { %v4714_v14 = vpop.f32.mrf.mxu0 }
 0x309   : > { %v12632_v56 = vadd.f32 %v4714_v14, %v4390_v50  ;;  %v9413_v20 = vpop.f32.mrf.mxu1  ;;  %9712 = vmatmul.mubr.msk.f32.gmra.mxu1 %vm311_vm1, %v6325_v41  ;;  %v4575_v50 = vadd.f32 %v12464_v2, %v12462_v58  ;;  %v13797_v41 = vld [vmem:[#allocation45_spill] sm:$0xff] }
 0x30a   : > { %v9463_v19 = vpop.f32.mrf.mxu0  ;;  %9762 = vmatmul.mubr.msk.f32.gmra.mxu0 %vm311_vm1, %v6715_v8  ;;  %9766 = vmatprep.mubr.msk.f32.mxu1 %vm311_vm1, %v12131_v52 }
 0x30b   : > { %v12636_v16 = vadd.f32 %v9463_v19, %v9413_v20  ;;  %v4400_v1 = vpop.f32.mrf.mxu1 }
 0x30c   : > { %v4724_v49 = vpop.f32.mrf.mxu0 }
 0x30d   : > { %v12640_v45 = vadd.f32 %v4724_v49, %v4400_v1  ;;  %v9468_v40 = vpop.f32.mrf.mxu1  ;;  %9767 = vmatmul.mubr.msk.f32.vlgmr.msra.gmra.mxu1 %vm311_vm1, %v12137_v33 }
 0x30e   : > { %v9518_v15 = vpop.f32.mrf.mxu0  ;;  %v5092_v14 = vadd.f32 %v9468_v40, %v13797_v41  ;;  %9769 = vmatprep.mubr.msk.f32.mxu1 %vm311_vm1, %v12143_v42 }
 0x30f   : > { %13796 = vst [vmem:[#allocation58_spill] sm:$0xff] %v12640_v45  ;;  %v4932_v8 = vpop.f32.mrf.mxu1 }
 0x310   : > { %v5322_v20 = vpop.f32.mrf.mxu0  ;;  %v12649_v52 = vadd.f32 %v9518_v15, %v5092_v14  ;;  %v5091_v19 = vadd.f32 %v4932_v8, %v4575_v50 }
 0x311   : > { %v9471_v1 = vpop.f32.mrf.mxu1  ;;  %9770 = vmatmul.mubr.msk.f32.gmra.mxu1 %vm311_vm1, %v12149_v62 }
 0x312   : > { %v9521_v49 = vpop.f32.mrf.mxu0  ;;  %v12653_v45 = vadd.f32 %v5322_v20, %v5091_v19  ;;  %v5094_v33 = vadd.f32 %v9471_v1, %v12472_v25  ;;  %9772 = vmatprep.mubr.msk.f32.mxu1 %vm311_vm1, %v12155_v37 }
 0x313   : > { %v4942_v58 = vpop.f32.mrf.mxu1 }
 0x314   : > { %v5332_v2 = vpop.f32.mrf.mxu0  ;;  %v12658_v42 = vadd.f32 %v9521_v49, %v5094_v33  ;;  %v5093_v40 = vadd.f32 %v4942_v58, %v12478_v6 }
 0x315   : > { %v9474_v15 = vpop.f32.mrf.mxu1  ;;  %9773 = vmatmul.mubr.msk.f32.gmra.mxu1 %vm311_vm1, %v12161_v24 }
 0x316   : > { %v9524_v50 = vpop.f32.mrf.mxu0  ;;  %v12663_v41 = vadd.f32 %v5332_v2, %v5093_v40  ;;  %v5096_v62 = vadd.f32 %v9474_v15, %v12484_v5  ;;  %9775 = vmatprep.mubr.msk.f32.mxu1 %vm311_vm1, %v12167_v28 }
 0x317   : > { %v4952_v25 = vpop.f32.mrf.mxu1 }
 0x318   : > { %v5342_v37 = vpop.f32.mrf.mxu0  ;;  %v12668_v14 = vadd.f32 %v9524_v50, %v5096_v62  ;;  %v5095_v8 = vadd.f32 %v4952_v25, %v12490_v4 }
 0x319   : > { %v9477_v20 = vpop.f32.mrf.mxu1  ;;  %9776 = vmatmul.mubr.msk.f32.gmra.mxu1 %vm311_vm1, %v12173_v22 }
 0x31a   : > { %v9527_v6 = vpop.f32.mrf.mxu0  ;;  %v12673_v19 = vadd.f32 %v5342_v37, %v5095_v8  ;;  %v5098_v24 = vadd.f32 %v9477_v20, %v12496_v29  ;;  %9778 = vmatprep.mubr.msk.f32.mxu1 %vm311_vm1, %v12179_v27 }
 0x31b   : > { %v4962_v5 = vpop.f32.mrf.mxu1 }
 0x31c   : > { %v5352_v28 = vpop.f32.mrf.mxu0  ;;  %v12678_v1 = vadd.f32 %v9527_v6, %v5098_v24  ;;  %v5097_v49 = vadd.f32 %v4962_v5, %v12502_v63 }
 0x31d   : > { %v9480_v33 = vpop.f32.mrf.mxu1  ;;  %9779 = vmatmul.mubr.msk.f32.gmra.mxu1 %vm311_vm1, %v12185_v35 }
 0x31e   : > { %v9530_v4 = vpop.f32.mrf.mxu0  ;;  %v12683_v58 = vadd.f32 %v5352_v28, %v5097_v49  ;;  %v5100_v22 = vadd.f32 %v9480_v33, %v12508_v3  ;;  %9781 = vmatprep.mubr.msk.f32.mxu1 %vm311_vm1, %v12191_v30 }
 0x31f   : > { %v4972_v29 = vpop.f32.mrf.mxu1 }
 0x320   : > { %v5362_v27 = vpop.f32.mrf.mxu0  ;;  %v12688_v2 = vadd.f32 %v9530_v4, %v5100_v22  ;;  %v5099_v40 = vadd.f32 %v4972_v29, %v12514_v18 }
 0x321   : > { %v9483_v15 = vpop.f32.mrf.mxu1  ;;  %9782 = vmatmul.mubr.msk.f32.gmra.mxu1 %vm311_vm1, %v12197_v13 }
 0x322   : > { %v9533_v63 = vpop.f32.mrf.mxu0  ;;  %v12693_v50 = vadd.f32 %v5362_v27, %v5099_v40  ;;  %v5102_v35 = vadd.f32 %v9483_v15, %v12520_v31  ;;  %9784 = vmatprep.mubr.msk.f32.mxu1 %vm311_vm1, %v12203_v12  ;;  %v7093_v27 = vld [vmem:[#allocation3 + $0x171] sm:$0xff] }
 0x323   : > { %v4982_v3 = vpop.f32.mrf.mxu1 }
 0x324   : > { %v5372_v30 = vpop.f32.mrf.mxu0  ;;  %v12698_v62 = vadd.f32 %v9533_v63, %v5102_v35  ;;  %v5101_v25 = vadd.f32 %v4982_v3, %v12526_v59  ;;  %v7095_v3 = vld [vmem:[#allocation3 + $0x191] sm:$0xff] }
 0x325   : > { %v9486_v37 = vpop.f32.mrf.mxu1  ;;  %9785 = vmatmul.mubr.msk.f32.gmra.mxu1 %vm311_vm1, %v12209_v60 }
 0x326   : > { %v9536_v18 = vpop.f32.mrf.mxu0  ;;  %v12703_v8 = vadd.f32 %v5372_v30, %v5101_v25  ;;  %v5104_v13 = vadd.f32 %v9486_v37, %v12532_v11  ;;  %9787 = vmatprep.mubr.msk.f32.mxu1 %vm311_vm1, %v12215_v61  ;;  %v7096_v25 = vld [vmem:[#allocation3 + $0x1a9] sm:$0xff] }
 0x327   : > { %v4992_v31 = vpop.f32.mrf.mxu1 }
 0x328   : > { %v5382_v12 = vpop.f32.mrf.mxu0  ;;  %v12708_v20 = vadd.f32 %v9536_v18, %v5104_v13  ;;  %v5103_v6 = vadd.f32 %v4992_v31, %v12538_v51 }
 0x329   : > { %v9489_v24 = vpop.f32.mrf.mxu1  ;;  %9788 = vmatmul.mubr.msk.f32.gmra.mxu1 %vm311_vm1, %v12221_v57 }
 0x32a   : > { %v9539_v59 = vpop.f32.mrf.mxu0  ;;  %v12713_v5 = vadd.f32 %v5382_v12, %v5103_v6  ;;  %v5106_v60 = vadd.f32 %v9489_v24, %v12544_v43  ;;  %9790 = vmatprep.mubr.msk.f32.mxu1 %vm311_vm1, %v12227_v9  ;;  %v7097_v12 = vld [vmem:[#allocation3 + $0x1b1] sm:$0xff]  ;;  %v7098_v24 = vld [vmem:[#allocation3 + $0x1c9] sm:$0xff] }
 0x32b   : > { %v5002_v11 = vpop.f32.mrf.mxu1 }
 0x32c   : > { %v5392_v61 = vpop.f32.mrf.mxu0  ;;  %v12718_v28 = vadd.f32 %v9539_v59, %v5106_v60  ;;  %v5105_v49 = vadd.f32 %v5002_v11, %v12550_v48 }
 0x32d   : > { %v9492_v33 = vpop.f32.mrf.mxu1  ;;  %9791 = vmatmul.mubr.msk.f32.gmra.mxu1 %vm311_vm1, %v12233_v21 }
 0x32e   : > { %v9542_v51 = vpop.f32.mrf.mxu0  ;;  %v12723_v4 = vadd.f32 %v5392_v61, %v5105_v49  ;;  %v5108_v57 = vadd.f32 %v9492_v33, %v12556_v17  ;;  %9793 = vmatprep.mubr.msk.f32.mxu1 %vm311_vm1, %v12239_v32  ;;  %v7099_v33 = vld [vmem:[#allocation3 + $0x1d1] sm:$0xff] }
 0x32f   : > { %v5012_v43 = vpop.f32.mrf.mxu1 }
 0x330   : > { %v5402_v9 = vpop.f32.mrf.mxu0  ;;  %v12728_v22 = vadd.f32 %v9542_v51, %v5108_v57  ;;  %v5107_v29 = vadd.f32 %v5012_v43, %v12562_v54  ;;  %v7100_v57 = vld [vmem:[#allocation3 + $0x1e9] sm:$0xff] }
 0x331   : > { %v9495_v48 = vpop.f32.mrf.mxu1  ;;  %9794 = vmatmul.mubr.msk.f32.gmra.mxu1 %vm311_vm1, %v7093_v27 }
 0x332   : > { %v9545_v40 = vpop.f32.mrf.mxu0  ;;  %v12732_v15 = vadd.f32 %v5402_v9, %v5107_v29  ;;  %v5110_v21 = vadd.f32 %v9495_v48, %v12568_v46  ;;  %9796 = vmatprep.mubr.msk.f32.mxu1 %vm311_vm1, %v12251_v23 }
 0x333   : > { %v5022_v17 = vpop.f32.mrf.mxu1 }
 0x334   : > { %v5412_v32 = vpop.f32.mrf.mxu0  ;;  %v12737_v63 = vadd.f32 %v9545_v40, %v5110_v21  ;;  %v5109_v35 = vadd.f32 %v5022_v17, %v12574_v10  ;;  %v7101_v40 = vld [vmem:[#allocation3 + $0x1f1] sm:$0xff] }
 0x335   : > { %v9498_v54 = vpop.f32.mrf.mxu1  ;;  %9797 = vmatmul.mubr.msk.f32.gmra.mxu1 %vm311_vm1, %v7095_v3  ;;  %v7104_v3 = vld [vmem:[#allocation3 + $0x229] sm:$0xff] }
 0x336   : > { %v9548_v30 = vpop.f32.mrf.mxu0  ;;  %v12741_v37 = vadd.f32 %v5412_v32, %v5109_v35  ;;  %v5112_v18 = vadd.f32 %v9498_v54, %v12580_v7  ;;  %9799 = vmatprep.mubr.msk.f32.mxu1 %vm311_vm1, %v7096_v25 }
 0x337   : > { %v5032_v46 = vpop.f32.mrf.mxu1 }
 0x338   : > { %v5422_v23 = vpop.f32.mrf.mxu0  ;;  %v12745_v13 = vadd.f32 %v9548_v30, %v5112_v18  ;;  %v5111_v31 = vadd.f32 %v5032_v46, %v12586_v0 }
 0x339   : > { %v9501_v10 = vpop.f32.mrf.mxu1  ;;  %9800 = vmatmul.mubr.msk.f32.gmra.mxu1 %vm311_vm1, %v7097_v12 }
 0x33a   : > { %v9551_v6 = vpop.f32.mrf.mxu0  ;;  %v12749_v59 = vadd.f32 %v5422_v23, %v5111_v31  ;;  %v5114_v60 = vadd.f32 %v9501_v10, %v12592_v44  ;;  %9802 = vmatprep.mubr.msk.f32.mxu1 %vm311_vm1, %v7098_v24 }
 0x33b   : > { %v5042_v7 = vpop.f32.mrf.mxu1 }
 0x33c   : > { %v5432_v11 = vpop.f32.mrf.mxu0  ;;  %v12753_v61 = vadd.f32 %v9551_v6, %v5114_v60  ;;  %v5113_v49 = vadd.f32 %v5042_v7, %v12598_v39  ;;  %v13798_v7 = vld [vmem:[#allocation58_spill] sm:$0xff] }
 0x33d   : > { %v9504_v0 = vpop.f32.mrf.mxu1  ;;  %9803 = vmatmul.mubr.msk.f32.gmra.mxu1 %vm311_vm1, %v7099_v33 }
 0x33e   : > { %v9554_v51 = vpop.f32.mrf.mxu0  ;;  %v12757_v43 = vadd.f32 %v5432_v11, %v5113_v49  ;;  %v5116_v9 = vadd.f32 %v9504_v0, %v12604_v36  ;;  %9805 = vmatprep.mubr.msk.f32.mxu1 %vm311_vm1, %v7100_v57 }
 0x33f   : > { %v5052_v44 = vpop.f32.mrf.mxu1 }
 0x340   : > { %v5442_v29 = vpop.f32.mrf.mxu0  ;;  %v12761_v27 = vadd.f32 %v9554_v51, %v5116_v9  ;;  %v5115_v48 = vadd.f32 %v5052_v44, %v12610_v26 }
 0x341   : > { %v9507_v39 = vpop.f32.mrf.mxu1  ;;  %9806 = vmatmul.mubr.msk.f32.gmra.mxu1 %vm311_vm1, %v7101_v40 }
 0x342   : > { %v9557_v21 = vpop.f32.mrf.mxu0  ;;  %v12765_v17 = vadd.f32 %v5442_v29, %v5115_v48  ;;  %v5118_v32 = vadd.f32 %v9507_v39, %v12616_v55  ;;  %9808 = vmatprep.mubr.msk.f32.mxu1 %vm311_vm1, %v12436_v34  ;;  %v7105_v55 = vld [vmem:[#allocation3 + $0x231] sm:$0xff] }
 0x343   : > { %v5062_v36 = vpop.f32.mrf.mxu1 }
 0x344   : > { %v5452_v35 = vpop.f32.mrf.mxu0  ;;  %v12770_v54 = vadd.f32 %v9557_v21, %v5118_v32  ;;  %v5117_v30 = vadd.f32 %v5062_v36, %v12622_v53 }
 0x345   : > { %v9510_v26 = vpop.f32.mrf.mxu1  ;;  %9809 = vmatmul.mubr.msk.f32.gmra.mxu1 %vm311_vm1, %v12444_v38 }
 0x346   : > { %v9560_v25 = vpop.f32.mrf.mxu0  ;;  %v12775_v18 = vadd.f32 %v5452_v35, %v5117_v30  ;;  %v5120_v46 = vadd.f32 %v9510_v26, %v12628_v47  ;;  %9811 = vmatprep.mubr.msk.f32.mxu1 %vm311_vm1, %v7104_v3 }
 0x347   : > { %v5072_v34 = vpop.f32.mrf.mxu1 }
 0x348   : > { %v5462_v23 = vpop.f32.mrf.mxu0  ;;  %v12779_v31 = vadd.f32 %v9560_v25, %v5120_v46  ;;  %v5119_v12 = vadd.f32 %v5072_v34, %v12632_v56 }
 0x349   : > { %v9513_v10 = vpop.f32.mrf.mxu1  ;;  %9812 = vmatmul.mubr.msk.f32.gmra.mxu1 %vm311_vm1, %v7105_v55 }
 0x34a   : > { %v9563_v53 = vpop.f32.mrf.mxu0  ;;  %v12783_v6 = vadd.f32 %v5462_v23, %v5119_v12  ;;  %v5122_v38 = vadd.f32 %v9513_v10, %v12636_v16 }
 0x34b   : > { %v5082_v24 = vpop.f32.mrf.mxu1 }
 0x34c   : > { %v5472_v60 = vpop.f32.mrf.mxu0  ;;  %v12786_v47 = vadd.f32 %v9563_v53, %v5122_v38  ;;  %v5121_v11 = vadd.f32 %v5082_v24, %v13798_v7 }
 0x34d   : > { %v9568_v49 = vpop.f32.mrf.mxu1 }
 0x34e   : > { %v12789_v33 = vpop.f32.mrf.mxu0  ;;  %v12791_v0 = vadd.f32 %v5472_v60, %v5121_v11  ;;  %v12794_v56 = vadd.f32 %v9568_v49, %v12649_v52 }
 0x34f   : > { %v5712_v51 = vpop.f32.mrf.mxu1 }
 0x350   : > { %v12796_v57 = vpop.f32.mrf.mxu0  ;;  %v12799_v9 = vadd.f32 %v5712_v51, %v12653_v45 }
 0x351   : > { %v9571_v16 = vpop.f32.mrf.mxu1 }
 0x352   : > { %v12801_v44 = vpop.f32.mrf.mxu0  ;;  %v12804_v29 = vadd.f32 %v9571_v16, %v12658_v42 }
 0x353   : > { %v5722_v48 = vpop.f32.mrf.mxu1 }
 0x354   : > { %v12806_v40 = vpop.f32.mrf.mxu0  ;;  %v12809_v39 = vadd.f32 %v5722_v48, %v12663_v41 }
 0x355   : > { %v9574_v52 = vpop.f32.mrf.mxu1 }
 0x356   : > { %v12811_v21 = vpop.f32.mrf.mxu0  ;;  %v12814_v32 = vadd.f32 %v9574_v52, %v12668_v14 }
 0x357   : > { %v5732_v45 = vpop.f32.mrf.mxu1 }
 0x358   : > { %v12816_v36 = vpop.f32.mrf.mxu0  ;;  %v12819_v35 = vadd.f32 %v5732_v45, %v12673_v19 }
 0x359   : > { %v9577_v42 = vpop.f32.mrf.mxu1 }
 0x35a   : > { %v12821_v3 = vpop.f32.mrf.mxu0  ;;  %v12824_v30 = vadd.f32 %v9577_v42, %v12678_v1 }
 0x35b   : > { %v5742_v41 = vpop.f32.mrf.mxu1 }
 0x35c   : > { %v12826_v26 = vpop.f32.mrf.mxu0  ;;  %v12829_v25 = vadd.f32 %v5742_v41, %v12683_v58 }
 0x35d   : > { %v9580_v14 = vpop.f32.mrf.mxu1 }
 0x35e   : > { %v12831_v46 = vpop.f32.mrf.mxu0  ;;  %v12834_v55 = vadd.f32 %v9580_v14, %v12688_v2 }
 0x35f   : > { %v5752_v19 = vpop.f32.mrf.mxu1 }
 0x360   : > { %v12836_v34 = vpop.f32.mrf.mxu0  ;;  %v12839_v23 = vadd.f32 %v5752_v19, %v12693_v50 }
 0x361   : > { %v9583_v1 = vpop.f32.mrf.mxu1 }
 0x362   : > { %v12841_v12 = vpop.f32.mrf.mxu0  ;;  %v12844_v10 = vadd.f32 %v9583_v1, %v12698_v62 }
 0x363   : > { %v5762_v58 = vpop.f32.mrf.mxu1 }
 0x364   : > { %v12846_v53 = vpop.f32.mrf.mxu0  ;;  %v12849_v38 = vadd.f32 %v5762_v58, %v12703_v8 }
 0x365   : > { %v9586_v2 = vpop.f32.mrf.mxu1 }
 0x366   : > { %v12851_v24 = vpop.f32.mrf.mxu0  ;;  %v12854_v60 = vadd.f32 %v9586_v2, %v12708_v20 }
 0x367   : > { %v5772_v50 = vpop.f32.mrf.mxu1 }
 0x368   : > { %v12856_v7 = vpop.f32.mrf.mxu0  ;;  %v12859_v11 = vadd.f32 %v5772_v50, %v12713_v5 }
 0x369   : > { %v9589_v62 = vpop.f32.mrf.mxu1 }
 0x36a   : > { %v12861_v49 = vpop.f32.mrf.mxu0  ;;  %v12864_v51 = vadd.f32 %v9589_v62, %v12718_v28 }
 0x36b   : > { %13799 = vst [vmem:[#allocation113_spill] sm:$0xff] %v12861_v49  ;;  %v5782_v8 = vpop.f32.mrf.mxu1 }
 0x36c   : > { %v12866_v16 = vpop.f32.mrf.mxu0  ;;  %v12869_v48 = vadd.f32 %v5782_v8, %v12723_v4 }
 0x36d   : > { %13800 = vst [vmem:[#allocation108_spill] sm:$0xff] %v12866_v16  ;;  %v9592_v20 = vpop.f32.mrf.mxu1 }
 0x36e   : > { %13801 = vst [vmem:[#allocation61_spill] sm:$0xff] %v12869_v48  ;;  %v12871_v52 = vpop.f32.mrf.mxu0  ;;  %v12874_v45 = vadd.f32 %v9592_v20, %v12728_v22 }
 0x36f   : > { %13802 = vst [vmem:[#allocation66_spill] sm:$0xff] %v12871_v52  ;;  %v5792_v5 = vpop.f32.mrf.mxu1 }
 0x370   : > { %13803 = vst [vmem:[#allocation116_spill] sm:$0xff] %v12874_v45  ;;  %v12876_v42 = vpop.f32.mrf.mxu0  ;;  %v12879_v41 = vadd.f32 %v5792_v5, %v12732_v15 }
 0x371   : > { %13804 = vst [vmem:[#allocation109_spill] sm:$0xff] %v12876_v42  ;;  %v9595_v28 = vpop.f32.mrf.mxu1 }
 0x372   : > { %13805 = vst [vmem:[#allocation46_spill] sm:$0xff] %v12879_v41  ;;  %v12881_v14 = vpop.f32.mrf.mxu0  ;;  %v12884_v19 = vadd.f32 %v9595_v28, %v12737_v63 }
 0x373   : > { %13806 = vst [vmem:[#allocation65_spill] sm:$0xff] %v12881_v14  ;;  %v5802_v4 = vpop.f32.mrf.mxu1 }
 0x374   : > { %13807 = vst [vmem:[#allocation64_spill] sm:$0xff] %v12884_v19  ;;  %v12886_v1 = vpop.f32.mrf.mxu0  ;;  %v12889_v58 = vadd.f32 %v5802_v4, %v12741_v37 }
 0x375   : > { %13808 = vst [vmem:[#allocation119_spill] sm:$0xff] %v12886_v1  ;;  %v9598_v22 = vpop.f32.mrf.mxu1 }
 0x376   : > { %13809 = vst [vmem:[#allocation111_spill] sm:$0xff] %v12889_v58  ;;  %v12891_v2 = vpop.f32.mrf.mxu0  ;;  %v12894_v50 = vadd.f32 %v9598_v22, %v12745_v13 }
 0x377   : > { %13810 = vst [vmem:[#allocation67_spill] sm:$0xff] %v12891_v2  ;;  %v5812_v15 = vpop.f32.mrf.mxu1 }
 0x378   : > { %13811 = vst [vmem:[#allocation70_spill] sm:$0xff] %v12894_v50  ;;  %v12896_v62 = vpop.f32.mrf.mxu0  ;;  %v12899_v8 = vadd.f32 %v5812_v15, %v12749_v59 }
 0x379   : > { %13812 = vst [vmem:[#allocation122_spill] sm:$0xff] %v12896_v62  ;;  %v9601_v63 = vpop.f32.mrf.mxu1 }
 0x37a   : > { %13813 = vst [vmem:[#allocation112_spill] sm:$0xff] %v12899_v8  ;;  %v12901_v20 = vpop.f32.mrf.mxu0  ;;  %v12904_v5 = vadd.f32 %v9601_v63, %v12753_v61 }
 0x37b   : > { %13814 = vst [vmem:[#allocation69_spill] sm:$0xff] %v12901_v20  ;;  %v5822_v37 = vpop.f32.mrf.mxu1 }
 0x37c   : > { %13815 = vst [vmem:[#allocation68_spill] sm:$0xff] %v12904_v5  ;;  %v12906_v28 = vpop.f32.mrf.mxu0  ;;  %v12909_v4 = vadd.f32 %v5822_v37, %v12757_v43 }
 0x37d   : > { %13816 = vst [vmem:[#allocation114_spill] sm:$0xff] %v12906_v28  ;;  %v9604_v13 = vpop.f32.mrf.mxu1 }
 0x37e   : > { %13817 = vst [vmem:[#allocation71_spill] sm:$0xff] %v12909_v4  ;;  %v12911_v22 = vpop.f32.mrf.mxu0  ;;  %v12914_v62 = vadd.f32 %v9604_v13, %v12761_v27 }
 0x37f   : > { %13818 = vst [vmem:[#allocation74_spill] sm:$0xff] %v12911_v22  ;;  %v5832_v59 = vpop.f32.mrf.mxu1 }
 0x380   : > { %13819 = vst [vmem:[#allocation127_spill] sm:$0xff] %v12914_v62  ;;  %v12916_v15 = vpop.f32.mrf.mxu0  ;;  %v12919_v20 = vadd.f32 %v5832_v59, %v12765_v17 }
 0x381   : > { %13820 = vst [vmem:[#allocation115_spill] sm:$0xff] %v12916_v15  ;;  %v9607_v61 = vpop.f32.mrf.mxu1 }
 0x382   : > { %13821 = vst [vmem:[#allocation73_spill] sm:$0xff] %v12919_v20  ;;  %v12921_v63 = vpop.f32.mrf.mxu0  ;;  %v12924_v28 = vadd.f32 %v9607_v61, %v12770_v54 }
 0x383   : > { %13822 = vst [vmem:[#allocation72_spill] sm:$0xff] %v12921_v63  ;;  %v5842_v43 = vpop.f32.mrf.mxu1 }
 0x384   : > { %13823 = vst [vmem:[#allocation117_spill] sm:$0xff] %v12924_v28  ;;  %v12926_v37 = vpop.f32.mrf.mxu0  ;;  %v12929_v22 = vadd.f32 %v5842_v43, %v12775_v18 }
 0x385   : > { %13824 = vst [vmem:[#allocation75_spill] sm:$0xff] %v12926_v37  ;;  %v9610_v27 = vpop.f32.mrf.mxu1 }
 0x386   : > { %13825 = vst [vmem:[#allocation78_spill] sm:$0xff] %v12929_v22  ;;  %v12931_v13 = vpop.f32.mrf.mxu0  ;;  %v12934_v15 = vadd.f32 %v9610_v27, %v12779_v31 }
 0x387   : > { %13826 = vst [vmem:[#allocation118_spill] sm:$0xff] %v12931_v13  ;;  %v5852_v17 = vpop.f32.mrf.mxu1 }
 0x388   : > { %13827 = vst [vmem:[#allocation77_spill] sm:$0xff] %v12934_v15  ;;  %v12936_v59 = vpop.f32.mrf.mxu0  ;;  %v12939_v63 = vadd.f32 %v5852_v17, %v12783_v6 }
 0x389   : > { %13828 = vst [vmem:[#allocation76_spill] sm:$0xff] %v12936_v59  ;;  %v9613_v54 = vpop.f32.mrf.mxu1 }
 0x38a   : > { %13829 = vst [vmem:[#allocation120_spill] sm:$0xff] %v12939_v63  ;;  %v12941_v61 = vpop.f32.mrf.mxu0  ;;  %v12944_v37 = vadd.f32 %v9613_v54, %v12786_v47 }
 0x38b   : > { %13830 = vst [vmem:[#allocation79_spill] sm:$0xff] %v12941_v61  ;;  %v5862_v18 = vpop.f32.mrf.mxu1 }
 0x38c   : > { %13831 = vst [vmem:[#allocation82_spill] sm:$0xff] %v12944_v37  ;;  %v12946_v43 = vpop.f32.mrf.mxu0  ;;  %v12949_v13 = vadd.f32 %v5862_v18, %v12791_v0 }
 0x38d   : > { %13832 = vst [vmem:[#allocation121_spill] sm:$0xff] %v12946_v43  ;;  %v9668_v31 = vpop.f32.mrf.mxu1 }
 0x38e   : > { %13833 = vst [vmem:[#allocation81_spill] sm:$0xff] %v12949_v13  ;;  %v9718_v27 = vpop.f32.mrf.mxu0 }
 0x38f   : > { %v6493_v15 = vpop.f32.mrf.mxu1 }
 0x390   : > { %v6883_v22 = vpop.f32.mrf.mxu0 }
 0x391   : > { %v9671_v59 = vpop.f32.mrf.mxu1 }
 0x392   : > { %v9721_v6 = vpop.f32.mrf.mxu0 }
 0x393   : > { %v6503_v28 = vpop.f32.mrf.mxu1 }
 0x394   : > { %v12955_v61 = vpop.f32.mrf.mxu0 }
 0x395   : > { %v12951_v17 = vpop.f32.mrf.mxu1 }
 0x396   : > { %v12961_v43 = vpop.f32.mrf.mxu0 }
 0x397   : > { %v12953_v63 = vpop.f32.mrf.mxu1 }
 0x398   : > { %v12967_v13 = vpop.f32.mrf.mxu0 }
 0x399   : > { %v12957_v47 = vpop.f32.mrf.mxu1 }
 0x39a   : > { %v12973_v62 = vpop.f32.mrf.mxu0 }
 0x39b   : > { %v12959_v54 = vpop.f32.mrf.mxu1 }
 0x39c   : > { %v12979_v8 = vpop.f32.mrf.mxu0 }
 0x39d   : > { %v12963_v0 = vpop.f32.mrf.mxu1 }
 0x39e   : > { %v12985_v1 = vpop.f32.mrf.mxu0 }
 0x39f   : > { %v12965_v18 = vpop.f32.mrf.mxu1 }
 0x3a0   : > { %v12991_v19 = vpop.f32.mrf.mxu0 }
 0x3a1   : > { %v12969_v37 = vpop.f32.mrf.mxu1 }
 0x3a2   : > { %v12997_v52 = vpop.f32.mrf.mxu0 }
 0x3a3   : > { %v12971_v20 = vpop.f32.mrf.mxu1 }
 0x3a5   : > { %v12975_v4 = vpop.f32.mrf.mxu1 }
 0x3a7   : > { %v12977_v5 = vpop.f32.mrf.mxu1 }
 0x3a8   : > { %13834 = vst [vmem:[#allocation80_spill] sm:$0xff] %v12977_v5 }
 0x3a9   : > { %v12981_v2 = vpop.f32.mrf.mxu1 }
 0x3aa   : > { %13835 = vst [vmem:[#allocation123_spill] sm:$0xff] %v12981_v2  ;;  %v13003_v2 = vpop.f32.mrf.mxu0 }
 0x3ab   : > { %v12983_v50 = vpop.f32.mrf.mxu1  ;;  %13843 = vst [vmem:[#allocation90_spill] sm:$0xff] %v13003_v2 }
 0x3ac   : > { %13836 = vst [vmem:[#allocation83_spill] sm:$0xff] %v12983_v50 }
 0x3ad   : > { %v12987_v58 = vpop.f32.mrf.mxu1 }
 0x3ae   : > { %13837 = vst [vmem:[#allocation86_spill] sm:$0xff] %v12987_v58  ;;  %v13009_v58 = vpop.f32.mrf.mxu0 }
 0x3af   : > { %v12989_v14 = vpop.f32.mrf.mxu1  ;;  %13846 = vst [vmem:[#allocation88_spill] sm:$0xff] %v13009_v58 }
 0x3b0   : > { %13838 = vst [vmem:[#allocation124_spill] sm:$0xff] %v12989_v14 }
 0x3b1   : > { %v12993_v42 = vpop.f32.mrf.mxu1 }
 0x3b2   : > { %13839 = vst [vmem:[#allocation85_spill] sm:$0xff] %v12993_v42  ;;  %v13015_v42 = vpop.f32.mrf.mxu0 }
 0x3b3   : > { %v12995_v41 = vpop.f32.mrf.mxu1  ;;  %13849 = vst [vmem:[#allocation94_spill] sm:$0xff] %v13015_v42 }
 0x3b4   : > { %13840 = vst [vmem:[#allocation84_spill] sm:$0xff] %v12995_v41 }
 0x3b5   : > { %v12999_v45 = vpop.f32.mrf.mxu1 }
 0x3b6   : > { %13841 = vst [vmem:[#allocation125_spill] sm:$0xff] %v12999_v45  ;;  %v13021_v45 = vpop.f32.mrf.mxu0 }
 0x3b7   : > { %v13001_v16 = vpop.f32.mrf.mxu1  ;;  %13852 = vst [vmem:[#allocation92_spill] sm:$0xff] %v13021_v45 }
 0x3b8   : > { %13842 = vst [vmem:[#allocation87_spill] sm:$0xff] %v13001_v16 }
 0x3b9   : > { %v13005_v50 = vpop.f32.mrf.mxu1 }
 0x3ba   : > { %13844 = vst [vmem:[#allocation126_spill] sm:$0xff] %v13005_v50  ;;  %v6262_v50 = vadd.f32 %v12789_v33, %v12794_v56 }
 0x3bb   : > { %v13007_v48 = vpop.f32.mrf.mxu1 }
 0x3bc   : > { %13845 = vst [vmem:[#allocation89_spill] sm:$0xff] %v13007_v48  ;;  %v6653_v58 = vadd.f32 %v9668_v31, %v6262_v50 }
 0x3bd   : > { %v13011_v14 = vpop.f32.mrf.mxu1 }
 0x3be   : > { %13847 = vst [vmem:[#allocation128_spill] sm:$0xff] %v13011_v14  ;;  %v6261_v14 = vadd.f32 %v12796_v57, %v12799_v9  ;;  %v7043_v33 = vadd.f32 %v9718_v27, %v6653_v58  ;;  %v13046_v57 = vld [vmem:[%s13353_s5] ss:$0 sm:$0xff] }
 0x3bf   : > { %v13013_v5 = vpop.f32.mrf.mxu1 }
 0x3c0   : > { %13848 = vst [vmem:[#allocation91_spill] sm:$0xff] %v13013_v5  ;;  %v13031_v5 = vpop.f32.mrf.mxu0 }
 0x3c1   : > { %v13017_v41 = vpop.f32.mrf.mxu1 }
 0x3c2   : > { %13850 = vst [vmem:[#allocation129_spill] sm:$0xff] %v13017_v41  ;;  %v6652_v41 = vadd.f32 %v6493_v15, %v6261_v14  ;;  %v6267_v15 = vadd.f32 %v12826_v26, %v12829_v25 }
 0x3c3   : > { %v13019_v49 = vpop.f32.mrf.mxu1 }
 0x3c4   : > { %13851 = vst [vmem:[#allocation93_spill] sm:$0xff] %v13019_v49  ;;  %v6264_v49 = vadd.f32 %v12801_v44, %v12804_v29  ;;  %v7042_v9 = vadd.f32 %v6883_v22, %v6652_v41  ;;  %v6266_v44 = vadd.f32 %v12811_v21, %v12814_v32  ;;  %v6265_v29 = vadd.f32 %v12816_v36, %v12819_v35 }
 0x3c5   : > { %v13023_v16 = vpop.f32.mrf.mxu1  ;;  %v6658_v26 = vadd.f32 %v12959_v54, %v6267_v15 }
 0x3c6   : > { %13853 = vst [vmem:[#allocation95_spill] sm:$0xff] %v13023_v16  ;;  %v6263_v16 = vadd.f32 %v12806_v40, %v12809_v39  ;;  %v6655_v56 = vadd.f32 %v9671_v59, %v6264_v49  ;;  %v13055_v40 = vld [vmem:[%s13354_s6] ss:$0 sm:$0xff]  ;;  %v6657_v21 = vadd.f32 %v12951_v17, %v6266_v44  ;;  %v6656_v32 = vadd.f32 %v12953_v63, %v6265_v29 }
 0x3c7   : > { %v13027_v48 = vpop.f32.mrf.mxu1 }
 0x3c8   : > { %13854 = vst [vmem:[#allocation98_spill] sm:$0xff] %v13027_v48  ;;  %v13041_v48 = vpop.f32.mrf.mxu0  ;;  %v6654_v50 = vadd.f32 %v6503_v28, %v6263_v16  ;;  %v7045_v49 = vadd.f32 %v9721_v6, %v6655_v56  ;;  %v6268_v16 = vadd.f32 %v12821_v3, %v12824_v30  ;;  %v13855_v30 = vld [vmem:[#allocation5_spill] sm:$0xff]  ;;  %v7047_v56 = vadd.f32 %v12961_v43, %v6657_v21 }
 0x3c9   : > { %v13033_v42 = vpop.f32.mrf.mxu1 }
 0x3ca   : > { %v13057_v14 = vpop.f32.mrf.mxu0  ;;  %v7044_v35 = vadd.f32 %v12955_v61, %v6654_v50  ;;  %v6659_v59 = vadd.f32 %v12957_v47, %v6268_v16  ;;  %v13856_v50 = vld [vmem:[#allocation4_spill] sm:$0xff] }
 0x3cb   : > { %v13037_v45 = vpop.f32.mrf.mxu1 }
 0x3cc   : > { %v13070_v3 = vpop.f32.mrf.mxu0 }
 0x3cd   : > { %v9768_v2 = vpop.f32.mrf.mxu1 }
 0x3ce   : > { %v7433_v31 = vadd.f32 %v9768_v2, %v7043_v33  ;;  %v6270_v33 = vadd.f32 %v12831_v46, %v12834_v55  ;;  %v6269_v55 = vadd.f32 %v12836_v34, %v12839_v23  ;;  %v6272_v34 = vadd.f32 %v12841_v12, %v12844_v10 }
 0x3cf   : > { %v7273_v39 = vpop.f32.mrf.mxu1  ;;  %v6271_v23 = vadd.f32 %v12846_v53, %v12849_v38 }
 0x3d0   : > { %v7472_v58 = vmul.f32 %v13046_v57, %v7433_v31  ;;  %v7432_v41 = vadd.f32 %v7273_v39, %v7042_v9  ;;  %v7046_v9 = vadd.f32 %v12967_v13, %v6656_v32  ;;  %v7049_v13 = vadd.f32 %v12973_v62, %v6659_v59  ;;  %v13094_v39 = vpop.f32.mrf.mxu0 }
 0x3d1   : > { %v9771_v36 = vpop.f32.mrf.mxu1  ;;  %v6661_v43 = vadd.f32 %v12963_v0, %v6270_v33  ;;  %v7048_v62 = vadd.f32 %v12979_v8, %v6658_v26  ;;  %v6660_v12 = vadd.f32 %v12965_v18, %v6269_v55  ;;  %v6663_v10 = vadd.f32 %v12969_v37, %v6272_v34  ;;  %v13860_v33 = vld [vmem:[#allocation8_spill] sm:$0xff] }
 0x3d2   : > { %v7511_v2 = vadd.f32 %v13055_v40, %v7472_v58  ;;  %v7471_v28 = vmul.f32 %v13046_v57, %v7432_v41  ;;  %v7435_v22 = vadd.f32 %v9771_v36, %v7045_v49  ;;  %v13857_v58 = vld [vmem:[#allocation7_spill] sm:$0xff]  ;;  %v13114_v8 = vpop.f32.mrf.mxu0  ;;  %v6273_v18 = vadd.f32 %v12856_v7, %v12859_v11 }
 0x3d3   : > { %v7283_v27 = vpop.f32.mrf.mxu1  ;;  %v7051_v15 = vadd.f32 %v12985_v1, %v6661_v43  ;;  %v6274_v1 = vadd.f32 %v12851_v24, %v12854_v60  ;;  %v6662_v37 = vadd.f32 %v12971_v20, %v6271_v23  ;;  %v7050_v24 = vadd.f32 %v12991_v19, %v6660_v12  ;;  %v13863_v19 = vld [vmem:[#allocation90_spill] sm:$0xff]  ;;  %v13866_v23 = vld [vmem:[#allocation61_spill] sm:$0xff] }
 0x3d4   : > { %v7543_v6 = vadd.f32 %v7511_v2, %v13855_v30  ;;  %v7510_v63 = vadd.f32 %v13055_v40, %v7471_v28  ;;  %v7474_v61 = vmul.f32 %v13046_v57, %v7435_v22  ;;  %v7434_v17 = vadd.f32 %v7283_v27, %v7044_v35  ;;  %v13858_v35 = vld [vmem:[#allocation6_spill] sm:$0xff] }
 0x3d5   : > { %v9774_v25 = vpop.f32.mrf.mxu1  ;;  %v7053_v60 = vadd.f32 %v12997_v52, %v6663_v10  ;;  %v6665_v7 = vadd.f32 %v12975_v4, %v6274_v1  ;;  %v13871_v10 = vld [vmem:[#allocation13_spill] sm:$0xff] }
 0x3d6   : > { %v7575_v47 = vmax.f32 %v7543_v6, 0.0  ;;  %v7542_v31 = vadd.f32 %v7510_v63, %v13856_v50  ;;  %v7513_v44 = vadd.f32 %v13055_v40, %v7474_v61  ;;  %v7473_v46 = vmul.f32 %v13046_v57, %v7434_v17  ;;  %v13859_v63 = vld [vmem:[#allocation9_spill] sm:$0xff] }
 0x3d7   : > { %v7437_v54 = vadd.f32 %v9774_v25, %v7047_v56  ;;  %v7293_v29 = vpop.f32.mrf.mxu1 }
 0x3d8   : > { %7607 = vst.msk [vmem:[%s13085_s16 + $0x8] sm:$0xff] %vm311_vm1, %v7575_v47  ;;  %v7574_v49 = vmax.f32 %v7542_v31, 0.0  ;;  %v7545_v41 = vadd.f32 %v7513_v44, %v13857_v58  ;;  %v7512_v16 = vadd.f32 %v13055_v40, %v7473_v46  ;;  %v7436_v21 = vadd.f32 %v7293_v29, %v7046_v9  ;;  %v13134_v47 = vpop.f32.mrf.mxu0  ;;  %v13861_v31 = vld [vmem:[#allocation11_spill] sm:$0xff]  ;;  %v13864_v29 = vld [vmem:[#allocation80_spill] sm:$0xff] }
 0x3d9   : > { %v7476_v0 = vmul.f32 %v13046_v57, %v7437_v54  ;;  %v9777_v32 = vpop.f32.mrf.mxu1  ;;  %v7052_v54 = vadd.f32 %v13863_v19, %v6662_v37  ;;  %v6664_v52 = vadd.f32 %v13864_v29, %v6273_v18  ;;  %v13874_v18 = vld [vmem:[#allocation83_spill] sm:$0xff] }
 0x3da   : > { %7606 = vst.msk [vmem:[%s13085_s16] sm:$0xff] %vm311_vm1, %v7574_v49  ;;  %v7577_v36 = vmax.f32 %v7545_v41, 0.0  ;;  %v7544_v2 = vadd.f32 %v7512_v16, %v13858_v35  ;;  %v7475_v28 = vmul.f32 %v13046_v57, %v7436_v21  ;;  %v7439_v22 = vadd.f32 %v9777_v32, %v7049_v13  ;;  %v13862_v13 = vld [vmem:[#allocation113_spill] sm:$0xff]  ;;  %v13865_v41 = vld [vmem:[#allocation10_spill] sm:$0xff]  ;;  %v13870_v35 = vld [vmem:[#allocation88_spill] sm:$0xff] }
 0x3db   : > { %v7515_v53 = vadd.f32 %v13055_v40, %v7476_v0  ;;  %v7303_v38 = vpop.f32.mrf.mxu1  ;;  %v6276_v43 = vadd.f32 %v13862_v13, %v12864_v51  ;;  %v13868_v0 = vld [vmem:[#allocation116_spill] sm:$0xff]  ;;  %v13869_v32 = vld [vmem:[#allocation66_spill] sm:$0xff]  ;;  %v13881_v13 = vld [vmem:[#allocation15_spill] sm:$0xff] }
 0x3dc   : > { %7609 = vst.msk [vmem:[%s13085_s16 + $0x18] sm:$0xff] %vm311_vm1, %v7577_v36  ;;  %v7576_v59 = vmax.f32 %v7544_v2, 0.0  ;;  %v7514_v27 = vadd.f32 %v13055_v40, %v7475_v28  ;;  %v7478_v30 = vmul.f32 %v13046_v57, %v7439_v22  ;;  %v7438_v6 = vadd.f32 %v7303_v38, %v7048_v62  ;;  %v13867_v62 = vld [vmem:[#allocation108_spill] sm:$0xff] }
 0x3dd   : > { %v7547_v61 = vadd.f32 %v7515_v53, %v13859_v63  ;;  %v9780_v17 = vpop.f32.mrf.mxu1  ;;  %v6275_v51 = vadd.f32 %v13867_v62, %v13866_v23  ;;  %v6278_v36 = vadd.f32 %v13869_v32, %v13868_v0  ;;  %v7055_v2 = vadd.f32 %v13870_v35, %v6665_v7  ;;  %v13878_v7 = vld [vmem:[#allocation65_spill] sm:$0xff]  ;;  %v13884_v23 = vld [vmem:[#allocation14_spill] sm:$0xff]  ;;  %v13885_v32 = vld [vmem:[#allocation111_spill] sm:$0xff] }
 0x3de   : > { %7608 = vst.msk [vmem:[%s13085_s16 + $0x10] sm:$0xff] %vm311_vm1, %v7576_v59  ;;  %v7546_v56 = vadd.f32 %v7514_v27, %v13860_v33  ;;  %v7517_v9 = vadd.f32 %v13055_v40, %v7478_v30  ;;  %v7477_v26 = vmul.f32 %v13046_v57, %v7438_v6  ;;  %v7441_v25 = vadd.f32 %v9780_v17, %v7051_v15  ;;  %v13155_v15 = vpop.f32.mrf.mxu0  ;;  %v13872_v27 = vld [vmem:[#allocation94_spill] sm:$0xff]  ;;  %v13873_v6 = vld [vmem:[#allocation123_spill] sm:$0xff] }
 0x3df   : > { %v7579_v11 = vmax.f32 %v7547_v61, 0.0  ;;  %v7313_v20 = vpop.f32.mrf.mxu1  ;;  %v7054_v30 = vadd.f32 %v13872_v27, %v6664_v52  ;;  %v6667_v1 = vadd.f32 %v13873_v6, %v6276_v43  ;;  %v6666_v37 = vadd.f32 %v13874_v18, %v6275_v51  ;;  %v13882_v52 = vld [vmem:[#allocation92_spill] sm:$0xff]  ;;  %v13889_v6 = vld [vmem:[#allocation70_spill] sm:$0xff] }
 0x3e0   : > { %v7578_v50 = vmax.f32 %v7546_v56, 0.0  ;;  %v7549_v44 = vadd.f32 %v7517_v9, %v13861_v31  ;;  %v7516_v46 = vadd.f32 %v13055_v40, %v7477_v26  ;;  %v7480_v55 = vmul.f32 %v13046_v57, %v7441_v25  ;;  %v13875_v26 = vld [vmem:[#allocation46_spill] sm:$0xff]  ;;  %v13876_v25 = vld [vmem:[#allocation109_spill] sm:$0xff]  ;;  %v13880_v31 = vld [vmem:[#allocation12_spill] sm:$0xff] }
 0x3e1   : > { %7611 = vst.msk [vmem:[%s13085_s16 + $0x28] sm:$0xff] %vm311_vm1, %v7579_v11  ;;  %v7440_v4 = vadd.f32 %v7313_v20, %v7050_v24  ;;  %v9783_v49 = vpop.f32.mrf.mxu1  ;;  %v6277_v24 = vadd.f32 %v13876_v25, %v13875_v26  ;;  %v13879_v20 = vld [vmem:[#allocation86_spill] sm:$0xff]  ;;  %v13891_v18 = vld [vmem:[#allocation112_spill] sm:$0xff] }
 0x3e2   : > { %7610 = vst.msk [vmem:[%s13085_s16 + $0x20] sm:$0xff] %vm311_vm1, %v7578_v50  ;;  %v7581_v58 = vmax.f32 %v7549_v44, 0.0  ;;  %v7548_v16 = vadd.f32 %v7516_v46, %v13865_v41  ;;  %v7519_v21 = vadd.f32 %v13055_v40, %v7480_v55  ;;  %v7443_v34 = vadd.f32 %v9783_v49, %v7053_v60  ;;  %v13877_v60 = vld [vmem:[#allocation64_spill] sm:$0xff]  ;;  %v13175_v55 = vpop.f32.mrf.mxu0 }
 0x3e3   : > { %v7479_v28 = vmul.f32 %v13046_v57, %v7440_v4  ;;  %v7323_v22 = vpop.f32.mrf.mxu1  ;;  %v6280_v11 = vadd.f32 %v13878_v7, %v13877_v60  ;;  %v6669_v50 = vadd.f32 %v13879_v20, %v6278_v36  ;;  %v7057_v4 = vadd.f32 %v13882_v52, %v6667_v1  ;;  %v13886_v36 = vld [vmem:[#allocation119_spill] sm:$0xff]  ;;  %v13894_v7 = vld [vmem:[#allocation84_spill] sm:$0xff]  ;;  %v13895_v20 = vld [vmem:[#allocation125_spill] sm:$0xff] }
 0x3e4   : > { %7613 = vst.msk [vmem:[%s13085_s16 + $0x38] sm:$0xff] %vm311_vm1, %v7581_v58  ;;  %v7580_v12 = vmax.f32 %v7548_v16, 0.0  ;;  %v7551_v53 = vadd.f32 %v7519_v21, %v13871_v10  ;;  %v7482_v38 = vmul.f32 %v13046_v57, %v7443_v34  ;;  %v7442_v59 = vadd.f32 %v7323_v22, %v7052_v54  ;;  %v13883_v58 = vld [vmem:[#allocation124_spill] sm:$0xff]  ;;  %v13194_v10 = vpop.f32.mrf.mxu0  ;;  %v13890_v1 = vld [vmem:[#allocation67_spill] sm:$0xff] }
 0x3e5   : > { %v7518_v63 = vadd.f32 %v13055_v40, %v7479_v28  ;;  %v9786_v61 = vpop.f32.mrf.mxu1  ;;  %v7056_v49 = vadd.f32 %v13031_v5, %v6666_v37  ;;  %v6668_v41 = vadd.f32 %v13883_v58, %v6277_v24  ;;  %v6279_v35 = vadd.f32 %v13886_v36, %v13885_v32  ;;  %v13887_v28 = vld [vmem:[#allocation85_spill] sm:$0xff]  ;;  %v13892_v37 = vld [vmem:[#allocation122_spill] sm:$0xff]  ;;  %v13898_v52 = vld [vmem:[#allocation71_spill] sm:$0xff] }
 0x3e6   : > { %7612 = vst.msk [vmem:[%s13085_s16 + $0x30] sm:$0xff] %vm311_vm1, %v7580_v12  ;;  %v7583_v17 = vmax.f32 %v7551_v53, 0.0  ;;  %v7521_v33 = vadd.f32 %v13055_v40, %v7482_v38  ;;  %v7481_v56 = vmul.f32 %v13046_v57, %v7442_v59  ;;  %v7445_v9 = vadd.f32 %v9786_v61, %v7055_v2  ;;  %v13888_v38 = vld [vmem:[#allocation17_spill] sm:$0xff]  ;;  %v13900_v58 = vld [vmem:[#allocation87_spill] sm:$0xff] }
 0x3e7   : > { %v7550_v44 = vadd.f32 %v7518_v63, %v13880_v31  ;;  %v7333_v46 = vpop.f32.mrf.mxu1  ;;  %v7059_v2 = vadd.f32 %v13041_v48, %v6669_v50  ;;  %v6671_v22 = vadd.f32 %v13887_v28, %v6280_v11  ;;  %v6282_v48 = vadd.f32 %v13890_v1, %v13889_v6  ;;  %v13905_v6 = vld [vmem:[#allocation127_spill] sm:$0xff]  ;;  %v13906_v1 = vld [vmem:[#allocation74_spill] sm:$0xff] }
 0x3e8   : > { %7615 = vst.msk [vmem:[%s13085_s16 + $0x48] sm:$0xff] %vm311_vm1, %v7583_v17  ;;  %v7553_v43 = vadd.f32 %v7521_v33, %v13881_v13  ;;  %v7520_v19 = vadd.f32 %v13055_v40, %v7481_v56  ;;  %v7484_v54 = vmul.f32 %v13046_v57, %v7445_v9  ;;  %v7444_v29 = vadd.f32 %v7333_v46, %v7054_v30  ;;  %v13893_v9 = vld [vmem:[#allocation16_spill] sm:$0xff] }
 0x3e9   : > { %v7582_v16 = vmax.f32 %v7550_v44, 0.0  ;;  %v9789_v21 = vpop.f32.mrf.mxu1  ;;  %v6281_v63 = vadd.f32 %v13892_v37, %v13891_v18  ;;  %v7058_v61 = vadd.f32 %v13057_v14, %v6668_v41  ;;  %v7061_v60 = vadd.f32 %v13070_v3, %v6671_v22  ;;  %v13214_v44 = vpop.f32.mrf.mxu0  ;;  %v13897_v3 = vld [vmem:[#allocation69_spill] sm:$0xff] }
 0x3ea   : > { %v7585_v34 = vmax.f32 %v7553_v43, 0.0  ;;  %v7552_v62 = vadd.f32 %v7520_v19, %v13884_v23  ;;  %v7523_v51 = vadd.f32 %v13055_v40, %v7484_v54  ;;  %v7483_v0 = vmul.f32 %v13046_v57, %v7444_v29  ;;  %v13896_v54 = vld [vmem:[#allocation68_spill] sm:$0xff]  ;;  %v13902_v23 = vld [vmem:[#allocation18_spill] sm:$0xff]  ;;  %v13907_v18 = vld [vmem:[#allocation89_spill] sm:$0xff] }
 0x3eb   : > { %7614 = vst.msk [vmem:[%s13085_s16 + $0x40] sm:$0xff] %vm311_vm1, %v7582_v16  ;;  %v7447_v5 = vadd.f32 %v9789_v21, %v7057_v4  ;;  %v7343_v12 = vpop.f32.mrf.mxu1  ;;  %v6670_v11 = vadd.f32 %v13894_v7, %v6279_v35  ;;  %v6673_v50 = vadd.f32 %v13895_v20, %v6282_v48  ;;  %v6284_v29 = vadd.f32 %v13897_v3, %v13896_v54  ;;  %v13899_v4 = vld [vmem:[#allocation114_spill] sm:$0xff]  ;;  %v13901_v16 = vld [vmem:[#allocation19_spill] sm:$0xff]  ;;  %v13914_v3 = vld [vmem:[#allocation128_spill] sm:$0xff] }
 0x3ec   : > { %7617 = vst.msk [vmem:[%s13085_s16 + $0x58] sm:$0xff] %vm311_vm1, %v7585_v34  ;;  %v7584_v53 = vmax.f32 %v7552_v62, 0.0  ;;  %v7555_v59 = vadd.f32 %v7523_v51, %v13888_v38  ;;  %v7522_v27 = vadd.f32 %v13055_v40, %v7483_v0  ;;  %v7446_v30 = vadd.f32 %v7343_v12, %v7056_v49  ;;  %v9757_v12 = vpop.f32.mrf.mxu0  ;;  %v13904_v38 = vld [vmem:[#allocation21_spill] sm:$0xff] }
 0x3ed   : > { %v7486_v17 = vmul.f32 %v13046_v57, %v7447_v5  ;;  %v9792_v33 = vpop.f32.mrf.mxu1  ;;  %v6283_v49 = vadd.f32 %v13899_v4, %v13898_v52  ;;  %v6672_v41 = vadd.f32 %v13900_v58, %v6281_v63  ;;  %v7060_v36 = vadd.f32 %v13094_v39, %v6670_v11  ;;  %v13915_v52 = vld [vmem:[#allocation91_spill] sm:$0xff] }
 0x3ee   : > { %7616 = vst.msk [vmem:[%s13085_s16 + $0x50] sm:$0xff] %vm311_vm1, %v7584_v53  ;;  %v7587_v56 = vmax.f32 %v7555_v59, 0.0  ;;  %v7554_v26 = vadd.f32 %v7522_v27, %v13893_v9  ;;  %v7485_v25 = vmul.f32 %v13046_v57, %v7446_v30  ;;  %v7449_v24 = vadd.f32 %v9792_v33, %v7059_v2  ;;  %v13903_v2 = vld [vmem:[#allocation126_spill] sm:$0xff] }
 0x3ef   : > { %v7525_v14 = vadd.f32 %v13055_v40, %v7486_v17  ;;  %v7353_v31 = vpop.f32.mrf.mxu1  ;;  %v7063_v35 = vadd.f32 %v13114_v8, %v6673_v50  ;;  %v6675_v28 = vadd.f32 %v13903_v2, %v6284_v29  ;;  %v6286_v48 = vadd.f32 %v13906_v1, %v13905_v6  ;;  %v13908_v17 = vld [vmem:[#allocation20_spill] sm:$0xff]  ;;  %v13923_v1 = vld [vmem:[#allocation93_spill] sm:$0xff] }
 0x3f0   : > { %7619 = vst.msk [vmem:[%s13085_s16 + $0x68] sm:$0xff] %vm311_vm1, %v7587_v56  ;;  %v7586_v46 = vmax.f32 %v7554_v26, 0.0  ;;  %v7524_v13 = vadd.f32 %v13055_v40, %v7485_v25  ;;  %v7488_v43 = vmul.f32 %v13046_v57, %v7449_v24  ;;  %v7448_v19 = vadd.f32 %v7353_v31, %v7058_v61  ;;  %v13909_v26 = vld [vmem:[#allocation73_spill] sm:$0xff]  ;;  %v13910_v25 = vld [vmem:[#allocation115_spill] sm:$0xff] }
 0x3f1   : > { %v7557_v21 = vadd.f32 %v7525_v14, %v13901_v16  ;;  %v9795_v34 = vpop.f32.mrf.mxu1  ;;  %v7062_v39 = vadd.f32 %v13134_v47, %v6672_v41  ;;  %v6674_v8 = vadd.f32 %v13907_v18, %v6283_v49  ;;  %v6285_v24 = vadd.f32 %v13910_v25, %v13909_v26  ;;  %v13912_v47 = vld [vmem:[#allocation72_spill] sm:$0xff]  ;;  %v7013_v14 = vpop.f32.mrf.mxu0  ;;  %v13927_v25 = vld [vmem:[#allocation95_spill] sm:$0xff] }
 0x3f2   : > { %7618 = vst.msk [vmem:[%s13085_s16 + $0x60] sm:$0xff] %vm311_vm1, %v7586_v46  ;;  %v7556_v62 = vadd.f32 %v7524_v13, %v13902_v23  ;;  %v7527_v51 = vadd.f32 %v13055_v40, %v7488_v43  ;;  %v7487_v0 = vmul.f32 %v13046_v57, %v7448_v19  ;;  %v7451_v32 = vadd.f32 %v9795_v34, %v7061_v60  ;;  %v13911_v60 = vld [vmem:[#allocation117_spill] sm:$0xff]  ;;  %v13913_v46 = vld [vmem:[#allocation23_spill] sm:$0xff]  ;;  %v13916_v34 = vld [vmem:[#allocation78_spill] sm:$0xff] }
 0x3f3   : > { %v7589_v22 = vmax.f32 %v7557_v21, 0.0  ;;  %v7363_v5 = vpop.f32.mrf.mxu1  ;;  %v6288_v7 = vadd.f32 %v13912_v47, %v13911_v60  ;;  %v7065_v11 = vadd.f32 %v13155_v15, %v6675_v28  ;;  %v7064_v54 = vadd.f32 %v13175_v55, %v6674_v8  ;;  %v13917_v23 = vld [vmem:[#allocation75_spill] sm:$0xff]  ;;  %v13918_v55 = vld [vmem:[#allocation77_spill] sm:$0xff] }
 0x3f4   : > { %v7588_v53 = vmax.f32 %v7556_v62, 0.0  ;;  %v7559_v59 = vadd.f32 %v7527_v51, %v13904_v38  ;;  %v7526_v27 = vadd.f32 %v13055_v40, %v7487_v0  ;;  %v7490_v30 = vmul.f32 %v13046_v57, %v7451_v32  ;;  %v13919_v51 = vld [vmem:[#allocation118_spill] sm:$0xff]  ;;  %v13920_v32 = vld [vmem:[#allocation129_spill] sm:$0xff] }
 0x3f5   : > { %7621 = vst.msk [vmem:[%s13085_s16 + $0x78] sm:$0xff] %vm311_vm1, %v7589_v22  ;;  %v7450_v37 = vadd.f32 %v7363_v5, %v7060_v36  ;;  %v9798_v63 = vpop.f32.mrf.mxu1  ;;  %v6677_v29 = vadd.f32 %v13914_v3, %v6286_v48  ;;  %v6676_v4 = vadd.f32 %v13915_v52, %v6285_v24  ;;  %v6287_v62 = vadd.f32 %v13917_v23, %v13916_v34  ;;  %v9760_v22 = vpop.f32.mrf.mxu0  ;;  %v13922_v5 = vld [vmem:[#allocation33_spill] sm:$0xff] }
 0x3f6   : > { %7620 = vst.msk [vmem:[%s13085_s16 + $0x70] sm:$0xff] %vm311_vm1, %v7588_v53  ;;  %v7591_v61 = vmax.f32 %v7559_v59, 0.0  ;;  %v7558_v33 = vadd.f32 %v7526_v27, %v13908_v17  ;;  %v7529_v56 = vadd.f32 %v13055_v40, %v7490_v30  ;;  %v7453_v9 = vadd.f32 %v9798_v63, %v7063_v35  ;;  %v13921_v35 = vld [vmem:[#allocation22_spill] sm:$0xff] }
 0x3f7   : > { %v7489_v20 = vmul.f32 %v13046_v57, %v7450_v37  ;;  %v7373_v50 = vpop.f32.mrf.mxu1  ;;  %v6290_v0 = vadd.f32 %v13919_v51, %v13918_v55  ;;  %v6679_v36 = vadd.f32 %v13920_v32, %v6288_v7  ;;  %v7067_v30 = vadd.f32 %v13194_v10, %v6677_v29  ;;  %v13924_v37 = vld [vmem:[#allocation32_spill] sm:$0xff]  ;;  %v7023_v60 = vpop.f32.mrf.mxu0  ;;  %v13928_v7 = vld [vmem:[#allocation35_spill] sm:$0xff] }
 0x3f8   : > { %7623 = vst.msk [vmem:[%s13085_s16 + $0x88] sm:$0xff] %vm311_vm1, %v7591_v61  ;;  %v7590_v31 = vmax.f32 %v7558_v33, 0.0  ;;  %v7561_v13 = vadd.f32 %v7529_v56, %v13913_v46  ;;  %v7492_v43 = vmul.f32 %v13046_v57, %v7453_v9  ;;  %v7452_v19 = vadd.f32 %v7373_v50, %v7062_v39  ;;  %v13925_v33 = vld [vmem:[#allocation120_spill] sm:$0xff]  ;;  %v13930_v46 = vld [vmem:[#allocation79_spill] sm:$0xff] }
 0x3f9   : > { %v7528_v15 = vadd.f32 %v13055_v40, %v7489_v20  ;;  %v9801_v49 = vpop.f32.mrf.mxu1  ;;  %v7066_v6 = vadd.f32 %v13214_v44, %v6676_v4  ;;  %v6678_v48 = vadd.f32 %v13923_v1, %v6287_v62  ;;  %v13926_v56 = vld [vmem:[#allocation76_spill] sm:$0xff]  ;;  %v7069_v26 = vadd.f32 %v9757_v12, %v6679_v36  ;;  %v13931_v12 = vld [vmem:[#allocation81_spill] sm:$0xff]  ;;  %v9763_v52 = vpop.f32.mrf.mxu0 }
 0x3fa   : > { %7622 = vst.msk [vmem:[%s13085_s16 + $0x80] sm:$0xff] %vm311_vm1, %v7590_v31  ;;  %v7593_v58 = vmax.f32 %v7561_v13, 0.0  ;;  %v7531_v41 = vadd.f32 %v13055_v40, %v7492_v43  ;;  %v7491_v16 = vmul.f32 %v13046_v57, %v7452_v19  ;;  %v7455_v21 = vadd.f32 %v9801_v49, %v7065_v11  ;;  %v13929_v31 = vld [vmem:[#allocation82_spill] sm:$0xff]  ;;  %v13932_v43 = vld [vmem:[#allocation121_spill] sm:$0xff] }
 0x3fb   : > { %v7560_v2 = vadd.f32 %v7528_v15, %v13921_v35  ;;  %v7383_v28 = vpop.f32.mrf.mxu1  ;;  %v6289_v9 = vadd.f32 %v13926_v56, %v13925_v33  ;;  %v6681_v10 = vadd.f32 %v13927_v25, %v6290_v0  ;;  %v6292_v13 = vadd.f32 %v13930_v46, %v13929_v31  ;;  %v13933_v15 = vld [vmem:[#allocation34_spill] sm:$0xff]  ;;  %v13935_v35 = vld [vmem:[#allocation37_spill] sm:$0xff] }
 0x3fc   : > { %7625 = vst.msk [vmem:[%s13085_s16 + $0x98] sm:$0xff] %vm311_vm1, %v7593_v58  ;;  %v7563_v53 = vadd.f32 %v7531_v41, %v13922_v5  ;;  %v7530_v38 = vadd.f32 %v13055_v40, %v7491_v16  ;;  %v7494_v59 = vmul.f32 %v13046_v57, %v7455_v21  ;;  %v7454_v27 = vadd.f32 %v7383_v28, %v7064_v54  ;;  %v13934_v21 = vld [vmem:[#allocation98_spill] sm:$0xff]  ;;  %v13940_v46 = vld [vmem:[#allocation41_spill] sm:$0xff] }
 0x3fd   : > { %v7592_v39 = vmax.f32 %v7560_v2, 0.0  ;;  %v9804_v18 = vpop.f32.mrf.mxu1  ;;  %v6291_v19 = vadd.f32 %v13932_v43, %v13931_v12  ;;  %v7068_v54 = vadd.f32 %v7013_v14, %v6678_v48  ;;  %v7071_v16 = vadd.f32 %v9760_v22, %v6681_v10  ;;  %v7033_v22 = vpop.f32.mrf.mxu0  ;;  %v13937_v48 = vld [vmem:[#allocation39_spill] sm:$0xff]  ;;  %v13938_v33 = vld [vmem:[#allocation38_spill] sm:$0xff]  ;;  %v13941_v12 = vld [vmem:[#allocation52_spill] sm:$0xff] }
 0x3fe   : > { %v7595_v8 = vmax.f32 %v7563_v53, 0.0  ;;  %v7562_v63 = vadd.f32 %v7530_v38, %v13924_v37  ;;  %v7533_v61 = vadd.f32 %v13055_v40, %v7494_v59  ;;  %v7493_v17 = vmul.f32 %v13046_v57, %v7454_v27 }
 0x3ff   : > { %7624 = vst.msk [vmem:[%s13085_s16 + $0x90] sm:$0xff] %vm311_vm1, %v7592_v39  ;;  %v7457_v44 = vadd.f32 %v9804_v18, %v7067_v30  ;;  %v7393_v24 = vpop.f32.mrf.mxu1  ;;  %v6680_v34 = vadd.f32 %v13934_v21, %v6289_v9  ;;  %v6683_v23 = vadd.f32 %v13033_v42, %v6292_v13  ;;  %v6682_v36 = vadd.f32 %v13037_v45, %v6291_v19  ;;  %v13936_v42 = vld [vmem:[#allocation36_spill] sm:$0xff] }
 0x400   : > { %7627 = vst.msk [vmem:[%s13085_s16 + $0xa8] sm:$0xff] %vm311_vm1, %v7595_v8  ;;  %v7594_v47 = vmax.f32 %v7562_v63, 0.0  ;;  %v7565_v11 = vadd.f32 %v7533_v61, %v13928_v7  ;;  %v7532_v20 = vadd.f32 %v13055_v40, %v7493_v17  ;;  %v7456_v50 = vadd.f32 %v7393_v24, %v7066_v6  ;;  %v13939_v24 = vld [vmem:[#allocation42_spill] sm:$0xff] }
 0x401   : > { %v7496_v3 = vmul.f32 %v13046_v57, %v7457_v44  ;;  %v9807_v29 = vpop.f32.mrf.mxu1  ;;  %v7070_v27 = vadd.f32 %v7023_v60, %v6680_v34  ;;  %v7073_v30 = vadd.f32 %v9763_v52, %v6683_v23  ;;  %v7072_v37 = vadd.f32 %v7033_v22, %v6682_v36 }
 0x402   : > { %7626 = vst.msk [vmem:[%s13085_s16 + $0xa0] sm:$0xff] %vm311_vm1, %v7594_v47  ;;  %v7597_v4 = vmax.f32 %v7565_v11, 0.0  ;;  %v7564_v49 = vadd.f32 %v7532_v20, %v13933_v15  ;;  %v7495_v58 = vmul.f32 %v13046_v57, %v7456_v50  ;;  %v7459_v41 = vadd.f32 %v9807_v29, %v7069_v26  ;;  %v13942_v29 = vld [vmem:[#allocation51_spill] sm:$0xff] }
 0x403   : > { %v7535_v14 = vadd.f32 %v13055_v40, %v7496_v3  ;;  %v7403_v62 = vpop.f32.mrf.mxu1 }
 0x404   : > { %7629 = vst.msk [vmem:[%s13085_s16 + $0xb8] sm:$0xff] %vm311_vm1, %v7597_v4  ;;  %v7596_v55 = vmax.f32 %v7564_v49, 0.0  ;;  %v7534_v51 = vadd.f32 %v13055_v40, %v7495_v58  ;;  %v7498_v0 = vmul.f32 %v13046_v57, %v7459_v41  ;;  %v7458_v32 = vadd.f32 %v7403_v62, %v7068_v54 }
 0x405   : > { %v7567_v2 = vadd.f32 %v7535_v14, %v13935_v35  ;;  %v9810_v28 = vpop.f32.mrf.mxu1 }
 0x406   : > { %7628 = vst.msk [vmem:[%s13085_s16 + $0xb0] sm:$0xff] %vm311_vm1, %v7596_v55  ;;  %v7566_v5 = vadd.f32 %v7534_v51, %v13936_v42  ;;  %v7537_v53 = vadd.f32 %v13055_v40, %v7498_v0  ;;  %v7497_v38 = vmul.f32 %v13046_v57, %v7458_v32  ;;  %v7461_v59 = vadd.f32 %v9810_v28, %v7071_v16 }
 0x407   : > { %v7599_v6 = vmax.f32 %v7567_v2, 0.0  ;;  %v7413_v1 = vpop.f32.mrf.mxu1 }
 0x408   : > { %v7598_v45 = vmax.f32 %v7566_v5, 0.0  ;;  %v7569_v39 = vadd.f32 %v7537_v53, %v13937_v48  ;;  %v7536_v18 = vadd.f32 %v13055_v40, %v7497_v38  ;;  %v7500_v8 = vmul.f32 %v13046_v57, %v7461_v59 }
 0x409   : > { %7631 = vst.msk [vmem:[%s13085_s16 + $0xc8] sm:$0xff] %vm311_vm1, %v7599_v6  ;;  %v7460_v63 = vadd.f32 %v7413_v1, %v7070_v27  ;;  %v9813_v61 = vpop.f32.mrf.mxu1 }
 0x40a   : > { %7630 = vst.msk [vmem:[%s13085_s16 + $0xc0] sm:$0xff] %vm311_vm1, %v7598_v45  ;;  %v7601_v17 = vmax.f32 %v7569_v39, 0.0  ;;  %v7568_v56 = vadd.f32 %v7536_v18, %v13938_v33  ;;  %v7539_v9 = vadd.f32 %v13055_v40, %v7500_v8  ;;  %v7463_v26 = vadd.f32 %v9813_v61, %v7073_v30 }
 0x40b   : > { %v7499_v25 = vmul.f32 %v13046_v57, %v7460_v63  ;;  %v7423_v10 = vpop.f32.mrf.mxu1 }
 0x40c   : > { %7633 = vst.msk [vmem:[%s13085_s16 + $0xd8] sm:$0xff] %vm311_vm1, %v7601_v17  ;;  %v7600_v44 = vmax.f32 %v7568_v56, 0.0  ;;  %v7571_v60 = vadd.f32 %v7539_v9, %v13939_v24  ;;  %v7502_v47 = vmul.f32 %v13046_v57, %v7463_v26  ;;  %v7462_v7 = vadd.f32 %v7423_v10, %v7072_v37 }
 0x40d   : > { %v7538_v11 = vadd.f32 %v13055_v40, %v7499_v25 }
 0x40e   : > { %7632 = vst.msk [vmem:[%s13085_s16 + $0xd0] sm:$0xff] %vm311_vm1, %v7600_v44  ;;  %v7603_v20 = vmax.f32 %v7571_v60, 0.0  ;;  %v7541_v50 = vadd.f32 %v13055_v40, %v7502_v47  ;;  %v7501_v31 = vmul.f32 %v13046_v57, %v7462_v7 }
 0x40f   : > { %v7570_v13 = vadd.f32 %v7538_v11, %v13940_v46 }
 0x410   : > { %7635 = vst.msk [vmem:[%s13085_s16 + $0xe8] sm:$0xff] %vm311_vm1, %v7603_v20  ;;  %v7573_v43 = vadd.f32 %v7541_v50, %v13941_v12  ;;  %v7540_v19 = vadd.f32 %v13055_v40, %v7501_v31 }
 0x411   : > { %v7602_v54 = vmax.f32 %v7570_v13, 0.0 }
 0x412   : > { %v7605_v3 = vmax.f32 %v7573_v43, 0.0  ;;  %v7572_v52 = vadd.f32 %v7540_v19, %v13942_v29 }
 0x413   : > { %7634 = vst.msk [vmem:[%s13085_s16 + $0xe0] sm:$0xff] %vm311_vm1, %v7602_v54 }
 0x414   : > { %7637 = vst.msk [vmem:[%s13085_s16 + $0xf8] sm:$0xff] %vm311_vm1, %v7605_v3  ;;  %v7604_v4 = vmax.f32 %v7572_v52, 0.0 }
 0x416   : > { %7636 = vst.msk [vmem:[%s13085_s16 + $0xf0] sm:$0xff] %vm311_vm1, %v7604_v4 }
 0x417 PF: > { %s17_s24 = sadd.s32 1, %s9830_s24  }
 0x418   : > { %p14_p4 = scmp.ge.s32.totalorder %s17_s24, 4  }
 0x41a   :  { %16 = sbr.rel (!%p14_p4) target bundleno = 1 (0x1), region = 100 }

</bundles_post_ra>
